<compile_context>
chip_gen: v5e
topology: v5e:2x2
jax: 0.10.0
libtpu: 0.0.40
codegen_flags: <defaults>
</compile_context>

<pallas_src>
import numpy as np

import jax
import jax.numpy as jnp
from jax import lax
from jax.experimental import pallas as pl
from jax.experimental.pallas import tpu as pltpu


# ------------------------------ geometry -------------------------------------

H = W = 28          # input image
K = 5               # conv kernel size
C1, C2 = 16, 32     # conv output channels
OH1 = OW1 = 24      # conv1 output spatial
PH1 = PW1 = 12      # pool1 output spatial
OH2 = OW2 = 8       # conv2 output spatial
PH2 = PW2 = 4       # pool2 output spatial

HALF1 = 256         # conv1 columns per ow-parity half: 16 slots * 16 ch (12 used)
COLS1 = 2 * HALF1   # 512 lanes, lane-dense
HALF2 = 128         # conv2 columns per ow-parity half: 4 slots * 32 ch (all used)
COLS2 = 2 * HALF2   # 256 lanes, lane-dense
NCLS = 10
NPAD = 128          # FC output padded to a lane-dense width

TB = 8              # images per grid step (multiple of 8 -> all reshapes are layout-preserving)


# --------------------------- fused Pallas kernel ------------------------------

def _cnn_kernel(x_ref, w1_ref, b1_ref, w2_ref, b2_ref, wf_ref, bf_ref, o_ref, p1s):
    f32 = jnp.float32
    bf16 = jnp.bfloat16

    # ---- conv1: 5 banded MXU matmuls, M = TB*24 --------------------------------
    # x_ref: (H, TB, W) bf16; band kh uses image rows kh..kh+23 of every image.
    acc1 = jnp.dot(x_ref[0:OH1].reshape(OH1 * TB, W), w1_ref[0],
                   preferred_element_type=f32)                       # (TB*24, 512)
    for kh in range(1, K):
        lhs = x_ref[kh:kh + OH1].reshape(OH1 * TB, W)                # leading-dim slice, free
        acc1 = acc1 + jnp.dot(lhs, w1_ref[kh], preferred_element_type=f32)

    # ---- maxpool1 (2x2), then bias + ReLU on the pooled tensor -----------------
    # rows of acc1 are ordered (oh1, b); group row pairs per image via a
    # layout-preserving reshape and two aligned sublane-half slices.
    a1 = acc1.reshape(PH1, 2 * TB, COLS1)
    rp1 = jnp.maximum(a1[:, :TB, :], a1[:, TB:, :])                  # (12, TB, 512) row-pair max
    pool1 = jnp.maximum(rp1[..., :HALF1], rp1[..., HALF1:])          # (12, TB, 256) ow-pair max
    p1s[...] = jnp.maximum(pool1 + b1_ref[...], 0.0).astype(bf16)    # bias+ReLU after pool

    # ---- conv2: 5 banded MXU matmuls, M = TB*8, K = 256 -------------------------
    acc2 = jnp.dot(p1s[0:OH2].reshape(OH2 * TB, HALF1), w2_ref[0],
                   preferred_element_type=f32)                       # (TB*8, 256)
    for kh in range(1, K):
        lhs = p1s[kh:kh + OH2].reshape(OH2 * TB, HALF1)
        acc2 = acc2 + jnp.dot(lhs, w2_ref[kh], preferred_element_type=f32)

    # ---- maxpool2 (2x2), then bias + ReLU ---------------------------------------
    a2 = acc2.reshape(PH2, 2 * TB, COLS2)
    rp2 = jnp.maximum(a2[:, :TB, :], a2[:, TB:, :])                  # (4, TB, 256)
    pool2 = jnp.maximum(rp2[..., :HALF2], rp2[..., HALF2:])          # (4, TB, 128)
    p2 = jnp.maximum(pool2 + b2_ref[...], 0.0).astype(bf16)          # (4, TB, 128) bf16 value

    # ---- fc1: 4 (TB,128)@(128,128) matmuls (CHW flatten folded into WF) ---------
    accf = jnp.dot(p2[0], wf_ref[0], preferred_element_type=f32)     # (TB, 128)
    for h in range(1, PH2):
        accf = accf + jnp.dot(p2[h], wf_ref[h], preferred_element_type=f32)
    o_ref[...] = accf + bf_ref[...]                                  # lane-dense full store


def cnn_forward(x_nchw, prep):
    """x_nchw: (B, 1, 28, 28) f32; prep: output of prepare_params. Returns (B, 10)."""
    w1b, b1p, w2b, b2p, wf, bfp = prep
    B = x_nchw.shape[0]
    Bp = ((B + TB - 1) // TB) * TB

    x = x_nchw.reshape(B, H, W).astype(jnp.bfloat16)
    if Bp != B:
        x = jnp.pad(x, ((0, Bp - B), (0, 0), (0, 0)))
    # (H, batch, W): batch sits on the sublane dim, conv row-slices become
    # leading-dim slices (no misaligned reads inside the kernel).
    xt = jnp.transpose(x, (1, 0, 2))                                  # (28, Bp, 28) bf16
    grid = (Bp // TB,)

    out = pl.pallas_call(
        _cnn_kernel,
        out_shape=jax.ShapeDtypeStruct((Bp, NPAD), jnp.float32),
        grid_spec=pltpu.PrefetchScalarGridSpec(
            num_scalar_prefetch=0,
            grid=grid,
            in_specs=[
                pl.BlockSpec((H, TB, W), lambda g: (0, g, 0)),           # images (bf16)
                pl.BlockSpec((K, W, COLS1), lambda g: (0, 0, 0)),        # conv1 banded W (bf16)
                pl.BlockSpec((1, HALF1), lambda g: (0, 0)),              # conv1 bias, post-pool (f32)
                pl.BlockSpec((K, HALF1, COLS2), lambda g: (0, 0, 0)),    # conv2 banded W (bf16)
                pl.BlockSpec((1, HALF2), lambda g: (0, 0)),              # conv2 bias, post-pool (f32)
                pl.BlockSpec((PH2, HALF2, NPAD), lambda g: (0, 0, 0)),   # fc weight, padded (bf16)
                pl.BlockSpec((1, NPAD), lambda g: (0, 0)),               # fc bias, padded (f32)
            ],
            out_specs=pl.BlockSpec((TB, NPAD), lambda g: (g, 0)),
            scratch_shapes=[
                pltpu.VMEM((PH1, TB, HALF1), jnp.bfloat16),              # pool1 activations
            ],
        ),
        compiler_params=pltpu.CompilerParams(
            dimension_semantics=("parallel",),
        ),
    )(xt, w1b, b1p, w2b, b2p, wf, bfp)
    return out[:B, :NCLS]


# ------------------- host-side (one-time) weight packing ----------------------

def prepare_params(params):
    """Pack PyTorch-layout weights into banded, pool-parity-ordered matrices."""
    w1, b1, w2, b2, fcw, fcb = (np.asarray(p, np.float32) for p in params)

    # conv1 banded weights: W1b[kh, iw, col], col = (ow%2)*256 + (ow//2)*16 + co
    W1b = np.zeros((K, H, 2, HALF1 // C1, C1), np.float32)
    for kh in range(K):
        for ow in range(OW1):
            par, q = ow % 2, ow // 2
            for kw in range(K):
                W1b[kh, ow + kw, par, q, :] = w1[:, 0, kh, kw]
    W1b = W1b.reshape(K, H, COLS1)

    # conv1 bias, applied AFTER pooling: (1, 256), col = q*16 + co; zero in padded slots q>=12.
    b1p = np.zeros((HALF1 // C1, C1), np.float32)
    b1p[:PW1, :] = b1[None, :]
    b1p = b1p.reshape(1, HALF1)

    # conv2 banded weights: rows indexed by pool1 column (q*16+ci),
    # cols = (ow2%2)*128 + (ow2//2)*32 + c2. Rows q>=12 stay zero (padding invariant).
    W2b = np.zeros((K, HALF1 // C1, C1, 2, HALF2 // C2, C2), np.float32)
    for kh in range(K):
        for ow in range(OW2):
            par, r = ow % 2, ow // 2
            for kw in range(K):
                W2b[kh, ow + kw, :, par, r, :] = w2[:, :, kh, kw].T   # (ci, c2)
    W2b = W2b.reshape(K, HALF1, COLS2)

    # conv2 bias, applied AFTER pooling: (1, 128), col = pw2*32 + c2.
    b2p = np.tile(b2, HALF2 // C2)[None, :].astype(np.float32)

    # fc1: WF[h, pw2*32 + c2, j] = fcw[j, c2*16 + h*4 + pw2] (PyTorch CHW flatten),
    # padded from 10 to 128 output lanes.
    fcw4 = fcw.reshape(NCLS, C2, PH2, PW2)                            # (j, c2, h, pw2)
    WFc = np.transpose(fcw4, (2, 3, 1, 0)).reshape(PH2, PW2 * C2, NCLS)
    WF = np.zeros((PH2, HALF2, NPAD), np.float32)
    WF[:, :, :NCLS] = WFc
    bfp = np.zeros((1, NPAD), np.float32)
    bfp[0, :NCLS] = fcb

    return (jnp.asarray(W1b, jnp.bfloat16), jnp.asarray(b1p, jnp.float32),
            jnp.asarray(W2b, jnp.bfloat16), jnp.asarray(b2p, jnp.float32),
            jnp.asarray(WF, jnp.bfloat16), jnp.asarray(bfp, jnp.float32))


# ------------------------- pure-JAX PyTorch reference -------------------------

def torch_style_reference(x_nchw, params):
    w1, b1, w2, b2, fcw, fcb = params
    dn = ("NCHW", "OIHW", "NCHW")
    y = lax.conv_general_dilated(x_nchw, w1, (1, 1), "VALID", dimension_numbers=dn)
    y = jnp.maximum(y + b1[None, :, None, None], 0.0)
    y = lax.reduce_window(y, -jnp.inf, lax.max, (1, 1, 2, 2), (1, 1, 2, 2), "VALID")
    y = lax.conv_general_dilated(y, w2, (1, 1), "VALID", dimension_numbers=dn)
    y = jnp.maximum(y + b2[None, :, None, None], 0.0)
    y = lax.reduce_window(y, -jnp.inf, lax.max, (1, 1, 2, 2), (1, 1, 2, 2), "VALID")
    y = y.reshape(y.shape[0], -1)
    return y @ fcw.T + fcb


# ---------------------------------- main --------------------------------------

def init_params(key):
    ks = jax.random.split(key, 6)
    w1 = 0.10 * jax.random.normal(ks[0], (16, 1, 5, 5), jnp.float32)    # Conv2d(1, 16, 5)
    b1 = 0.10 * jax.random.normal(ks[1], (16,), jnp.float32)
    w2 = 0.05 * jax.random.normal(ks[2], (32, 16, 5, 5), jnp.float32)   # Conv2d(16, 32, 5)
    b2 = 0.10 * jax.random.normal(ks[3], (32,), jnp.float32)
    fcw = 0.05 * jax.random.normal(ks[4], (10, 512), jnp.float32)       # Linear(32*4*4, 10)
    fcb = 0.10 * jax.random.normal(ks[5], (10,), jnp.float32)
    return (w1, b1, w2, b2, fcw, fcb)


if __name__ == "__main__":
    key = jax.random.PRNGKey(0)
    k_x, k_p = jax.random.split(key)
    params = init_params(k_p)
    prep = prepare_params(params)                 # one-time host-side packing

    B = 16                                        # 2 grid steps of TB=8 (keeps both v7x TCs busy)
    x = jax.random.normal(k_x, (B, 1, 28, 28), jnp.float32)   # NCHW, like PyTorch

    fwd = jax.jit(cnn_forward)
    out = jax.block_until_ready(fwd(x, prep))

    ref = jax.block_until_ready(torch_style_reference(x, params))
    assert out.shape == (B, NCLS), out.shape
    max_err = float(jnp.max(jnp.abs(out - ref)))
    # bf16 MXU inputs (f32 accumulation) vs. the pure-f32 reference.
    assert max_err < 5e-2, f"mismatch vs reference: {max_err}"

    print("KERNEL_OK")
</pallas_src>

<mosaic_0001>
module attributes {stable_mosaic.version = 11 : i64} {
  func.func @_cnn_kernel(%arg0: i32, %arg1: memref<28x8x28xbf16, #tpu.memory_space<vmem>>, %arg2: memref<5x28x512xbf16, #tpu.memory_space<vmem>>, %arg3: memref<1x256xf32, #tpu.memory_space<vmem>>, %arg4: memref<5x256x256xbf16, #tpu.memory_space<vmem>>, %arg5: memref<1x128xf32, #tpu.memory_space<vmem>>, %arg6: memref<4x128x128xbf16, #tpu.memory_space<vmem>>, %arg7: memref<1x128xf32, #tpu.memory_space<vmem>>, %arg8: memref<8x128xf32, #tpu.memory_space<vmem>>, %arg9: memref<12x8x256xbf16, #tpu.memory_space<vmem>>) attributes {dimension_semantics = [#tpu.dimension_semantics<parallel>], iteration_bounds = array<i64: 2>, scalar_prefetch = 0 : i64, scratch_operands = 1 : i64, tpu.core_type = #tpu.core_type<tc>, window_params = [{transform_indices = @transform_0, window_bounds = array<i64: 28, 8, 28>}, {pipeline_mode = #tpu.pipeline_mode<synchronous>, transform_indices = @transform_1, window_bounds = array<i64: 5, 28, 512>}, {pipeline_mode = #tpu.pipeline_mode<synchronous>, transform_indices = @transform_2, window_bounds = array<i64: 1, 256>}, {pipeline_mode = #tpu.pipeline_mode<synchronous>, transform_indices = @transform_3, window_bounds = array<i64: 5, 256, 256>}, {pipeline_mode = #tpu.pipeline_mode<synchronous>, transform_indices = @transform_4, window_bounds = array<i64: 1, 128>}, {pipeline_mode = #tpu.pipeline_mode<synchronous>, transform_indices = @transform_5, window_bounds = array<i64: 4, 128, 128>}, {pipeline_mode = #tpu.pipeline_mode<synchronous>, transform_indices = @transform_6, window_bounds = array<i64: 1, 128>}, {transform_indices = @transform_7, window_bounds = array<i64: 8, 128>}]} {
    %c0 = arith.constant 0 : index
    %c0_0 = arith.constant 0 : index
    %c0_1 = arith.constant 0 : index
    %0 = vector.load %arg1[%c0, %c0_0, %c0_1] : memref<28x8x28xbf16, #tpu.memory_space<vmem>>, vector<24x8x28xbf16>
    %1 = vector.shape_cast %0 : vector<24x8x28xbf16> to vector<192x28xbf16>
    %c0_2 = arith.constant 0 : index
    %c0_3 = arith.constant 0 : index
    %c0_4 = arith.constant 0 : index
    %2 = vector.load %arg2[%c0_2, %c0_3, %c0_4] : memref<5x28x512xbf16, #tpu.memory_space<vmem>>, vector<1x28x512xbf16>
    %3 = vector.shape_cast %2 : vector<1x28x512xbf16> to vector<28x512xbf16>
    %cst = arith.constant dense<0.000000e+00> : vector<192x512xf32>
    %4 = tpu.matmul %1, %3, %cst {dimension_numbers = #tpu.dot_dimension_numbers<[1], [0], [0], [1], [0, 0, 1, 1], [], []>} : vector<192x28xbf16>, vector<28x512xbf16>, vector<192x512xf32> -> vector<192x512xf32>
    %c1 = arith.constant 1 : index
    %c0_5 = arith.constant 0 : index
    %c0_6 = arith.constant 0 : index
    %5 = vector.load %arg1[%c1, %c0_5, %c0_6] : memref<28x8x28xbf16, #tpu.memory_space<vmem>>, vector<24x8x28xbf16>
    %6 = vector.shape_cast %5 : vector<24x8x28xbf16> to vector<192x28xbf16>
    %c1_7 = arith.constant 1 : index
    %c0_8 = arith.constant 0 : index
    %c0_9 = arith.constant 0 : index
    %7 = vector.load %arg2[%c1_7, %c0_8, %c0_9] : memref<5x28x512xbf16, #tpu.memory_space<vmem>>, vector<1x28x512xbf16>
    %8 = vector.shape_cast %7 : vector<1x28x512xbf16> to vector<28x512xbf16>
    %cst_10 = arith.constant dense<0.000000e+00> : vector<192x512xf32>
    %9 = tpu.matmul %6, %8, %cst_10 {dimension_numbers = #tpu.dot_dimension_numbers<[1], [0], [0], [1], [0, 0, 1, 1], [], []>} : vector<192x28xbf16>, vector<28x512xbf16>, vector<192x512xf32> -> vector<192x512xf32>
    %10 = arith.addf %4, %9 : vector<192x512xf32>
    %c2 = arith.constant 2 : index
    %c0_11 = arith.constant 0 : index
    %c0_12 = arith.constant 0 : index
    %11 = vector.load %arg1[%c2, %c0_11, %c0_12] : memref<28x8x28xbf16, #tpu.memory_space<vmem>>, vector<24x8x28xbf16>
    %12 = vector.shape_cast %11 : vector<24x8x28xbf16> to vector<192x28xbf16>
    %c2_13 = arith.constant 2 : index
    %c0_14 = arith.constant 0 : index
    %c0_15 = arith.constant 0 : index
    %13 = vector.load %arg2[%c2_13, %c0_14, %c0_15] : memref<5x28x512xbf16, #tpu.memory_space<vmem>>, vector<1x28x512xbf16>
    %14 = vector.shape_cast %13 : vector<1x28x512xbf16> to vector<28x512xbf16>
    %cst_16 = arith.constant dense<0.000000e+00> : vector<192x512xf32>
    %15 = tpu.matmul %12, %14, %cst_16 {dimension_numbers = #tpu.dot_dimension_numbers<[1], [0], [0], [1], [0, 0, 1, 1], [], []>} : vector<192x28xbf16>, vector<28x512xbf16>, vector<192x512xf32> -> vector<192x512xf32>
    %16 = arith.addf %10, %15 : vector<192x512xf32>
    %c3 = arith.constant 3 : index
    %c0_17 = arith.constant 0 : index
    %c0_18 = arith.constant 0 : index
    %17 = vector.load %arg1[%c3, %c0_17, %c0_18] : memref<28x8x28xbf16, #tpu.memory_space<vmem>>, vector<24x8x28xbf16>
    %18 = vector.shape_cast %17 : vector<24x8x28xbf16> to vector<192x28xbf16>
    %c3_19 = arith.constant 3 : index
    %c0_20 = arith.constant 0 : index
    %c0_21 = arith.constant 0 : index
    %19 = vector.load %arg2[%c3_19, %c0_20, %c0_21] : memref<5x28x512xbf16, #tpu.memory_space<vmem>>, vector<1x28x512xbf16>
    %20 = vector.shape_cast %19 : vector<1x28x512xbf16> to vector<28x512xbf16>
    %cst_22 = arith.constant dense<0.000000e+00> : vector<192x512xf32>
    %21 = tpu.matmul %18, %20, %cst_22 {dimension_numbers = #tpu.dot_dimension_numbers<[1], [0], [0], [1], [0, 0, 1, 1], [], []>} : vector<192x28xbf16>, vector<28x512xbf16>, vector<192x512xf32> -> vector<192x512xf32>
    %22 = arith.addf %16, %21 : vector<192x512xf32>
    %c4 = arith.constant 4 : index
    %c0_23 = arith.constant 0 : index
    %c0_24 = arith.constant 0 : index
    %23 = vector.load %arg1[%c4, %c0_23, %c0_24] : memref<28x8x28xbf16, #tpu.memory_space<vmem>>, vector<24x8x28xbf16>
    %24 = vector.shape_cast %23 : vector<24x8x28xbf16> to vector<192x28xbf16>
    %c4_25 = arith.constant 4 : index
    %c0_26 = arith.constant 0 : index
    %c0_27 = arith.constant 0 : index
    %25 = vector.load %arg2[%c4_25, %c0_26, %c0_27] : memref<5x28x512xbf16, #tpu.memory_space<vmem>>, vector<1x28x512xbf16>
    %26 = vector.shape_cast %25 : vector<1x28x512xbf16> to vector<28x512xbf16>
    %cst_28 = arith.constant dense<0.000000e+00> : vector<192x512xf32>
    %27 = tpu.matmul %24, %26, %cst_28 {dimension_numbers = #tpu.dot_dimension_numbers<[1], [0], [0], [1], [0, 0, 1, 1], [], []>} : vector<192x28xbf16>, vector<28x512xbf16>, vector<192x512xf32> -> vector<192x512xf32>
    %28 = arith.addf %22, %27 : vector<192x512xf32>
    %29 = vector.shape_cast %28 : vector<192x512xf32> to vector<12x16x512xf32>
    %30 = vector.extract_strided_slice %29 {offsets = [0, 0, 0], sizes = [12, 8, 512], strides = [1, 1, 1]} : vector<12x16x512xf32> to vector<12x8x512xf32>
    %31 = vector.extract_strided_slice %29 {offsets = [0, 8, 0], sizes = [12, 8, 512], strides = [1, 1, 1]} : vector<12x16x512xf32> to vector<12x8x512xf32>
    %32 = arith.maximumf %30, %31 : vector<12x8x512xf32>
    %33 = vector.extract_strided_slice %32 {offsets = [0, 0, 0], sizes = [12, 8, 256], strides = [1, 1, 1]} : vector<12x8x512xf32> to vector<12x8x256xf32>
    %34 = vector.extract_strided_slice %32 {offsets = [0, 0, 256], sizes = [12, 8, 256], strides = [1, 1, 1]} : vector<12x8x512xf32> to vector<12x8x256xf32>
    %35 = arith.maximumf %33, %34 : vector<12x8x256xf32>
    %c0_29 = arith.constant 0 : index
    %c0_30 = arith.constant 0 : index
    %36 = vector.load %arg3[%c0_29, %c0_30] : memref<1x256xf32, #tpu.memory_space<vmem>>, vector<1x256xf32>
    %37 = vector.shape_cast %36 : vector<1x256xf32> to vector<1x1x256xf32>
    %38 = vector.broadcast %37 : vector<1x1x256xf32> to vector<12x8x256xf32>
    %39 = arith.addf %35, %38 : vector<12x8x256xf32>
    %cst_31 = arith.constant 0.000000e+00 : f32
    %40 = vector.broadcast %cst_31 : f32 to vector<12x8x256xf32>
    %41 = arith.maximumf %39, %40 : vector<12x8x256xf32>
    %42 = arith.truncf %41 : vector<12x8x256xf32> to vector<12x8x256xbf16>
    %c0_32 = arith.constant 0 : index
    %c0_33 = arith.constant 0 : index
    %c0_34 = arith.constant 0 : index
    %43 = vector.load %arg9[%c0_32, %c0_33, %c0_34] : memref<12x8x256xbf16, #tpu.memory_space<vmem>>, vector<12x8x256xbf16>
    tpu.vector_store %arg9[%c0_32, %c0_33, %c0_34], %42 {strides = array<i32>} : memref<12x8x256xbf16, #tpu.memory_space<vmem>>, vector<12x8x256xbf16>,
    %c0_35 = arith.constant 0 : index
    %c0_36 = arith.constant 0 : index
    %c0_37 = arith.constant 0 : index
    %44 = vector.load %arg9[%c0_35, %c0_36, %c0_37] : memref<12x8x256xbf16, #tpu.memory_space<vmem>>, vector<8x8x256xbf16>
    %45 = vector.shape_cast %44 : vector<8x8x256xbf16> to vector<64x256xbf16>
    %c0_38 = arith.constant 0 : index
    %c0_39 = arith.constant 0 : index
    %c0_40 = arith.constant 0 : index
    %46 = vector.load %arg4[%c0_38, %c0_39, %c0_40] : memref<5x256x256xbf16, #tpu.memory_space<vmem>>, vector<1x256x256xbf16>
    %47 = vector.shape_cast %46 : vector<1x256x256xbf16> to vector<256x256xbf16>
    %cst_41 = arith.constant dense<0.000000e+00> : vector<64x256xf32>
    %48 = tpu.matmul %45, %47, %cst_41 {dimension_numbers = #tpu.dot_dimension_numbers<[1], [0], [0], [1], [0, 0, 1, 1], [], []>} : vector<64x256xbf16>, vector<256x256xbf16>, vector<64x256xf32> -> vector<64x256xf32>
    %c1_42 = arith.constant 1 : index
    %c0_43 = arith.constant 0 : index
    %c0_44 = arith.constant 0 : index
    %49 = vector.load %arg9[%c1_42, %c0_43, %c0_44] : memref<12x8x256xbf16, #tpu.memory_space<vmem>>, vector<8x8x256xbf16>
    %50 = vector.shape_cast %49 : vector<8x8x256xbf16> to vector<64x256xbf16>
    %c1_45 = arith.constant 1 : index
    %c0_46 = arith.constant 0 : index
    %c0_47 = arith.constant 0 : index
    %51 = vector.load %arg4[%c1_45, %c0_46, %c0_47] : memref<5x256x256xbf16, #tpu.memory_space<vmem>>, vector<1x256x256xbf16>
    %52 = vector.shape_cast %51 : vector<1x256x256xbf16> to vector<256x256xbf16>
    %cst_48 = arith.constant dense<0.000000e+00> : vector<64x256xf32>
    %53 = tpu.matmul %50, %52, %cst_48 {dimension_numbers = #tpu.dot_dimension_numbers<[1], [0], [0], [1], [0, 0, 1, 1], [], []>} : vector<64x256xbf16>, vector<256x256xbf16>, vector<64x256xf32> -> vector<64x256xf32>
    %54 = arith.addf %48, %53 : vector<64x256xf32>
    %c2_49 = arith.constant 2 : index
    %c0_50 = arith.constant 0 : index
    %c0_51 = arith.constant 0 : index
    %55 = vector.load %arg9[%c2_49, %c0_50, %c0_51] : memref<12x8x256xbf16, #tpu.memory_space<vmem>>, vector<8x8x256xbf16>
    %56 = vector.shape_cast %55 : vector<8x8x256xbf16> to vector<64x256xbf16>
    %c2_52 = arith.constant 2 : index
    %c0_53 = arith.constant 0 : index
    %c0_54 = arith.constant 0 : index
    %57 = vector.load %arg4[%c2_52, %c0_53, %c0_54] : memref<5x256x256xbf16, #tpu.memory_space<vmem>>, vector<1x256x256xbf16>
    %58 = vector.shape_cast %57 : vector<1x256x256xbf16> to vector<256x256xbf16>
    %cst_55 = arith.constant dense<0.000000e+00> : vector<64x256xf32>
    %59 = tpu.matmul %56, %58, %cst_55 {dimension_numbers = #tpu.dot_dimension_numbers<[1], [0], [0], [1], [0, 0, 1, 1], [], []>} : vector<64x256xbf16>, vector<256x256xbf16>, vector<64x256xf32> -> vector<64x256xf32>
    %60 = arith.addf %54, %59 : vector<64x256xf32>
    %c3_56 = arith.constant 3 : index
    %c0_57 = arith.constant 0 : index
    %c0_58 = arith.constant 0 : index
    %61 = vector.load %arg9[%c3_56, %c0_57, %c0_58] : memref<12x8x256xbf16, #tpu.memory_space<vmem>>, vector<8x8x256xbf16>
    %62 = vector.shape_cast %61 : vector<8x8x256xbf16> to vector<64x256xbf16>
    %c3_59 = arith.constant 3 : index
    %c0_60 = arith.constant 0 : index
    %c0_61 = arith.constant 0 : index
    %63 = vector.load %arg4[%c3_59, %c0_60, %c0_61] : memref<5x256x256xbf16, #tpu.memory_space<vmem>>, vector<1x256x256xbf16>
    %64 = vector.shape_cast %63 : vector<1x256x256xbf16> to vector<256x256xbf16>
    %cst_62 = arith.constant dense<0.000000e+00> : vector<64x256xf32>
    %65 = tpu.matmul %62, %64, %cst_62 {dimension_numbers = #tpu.dot_dimension_numbers<[1], [0], [0], [1], [0, 0, 1, 1], [], []>} : vector<64x256xbf16>, vector<256x256xbf16>, vector<64x256xf32> -> vector<64x256xf32>
    %66 = arith.addf %60, %65 : vector<64x256xf32>
    %c4_63 = arith.constant 4 : index
    %c0_64 = arith.constant 0 : index
    %c0_65 = arith.constant 0 : index
    %67 = vector.load %arg9[%c4_63, %c0_64, %c0_65] : memref<12x8x256xbf16, #tpu.memory_space<vmem>>, vector<8x8x256xbf16>
    %68 = vector.shape_cast %67 : vector<8x8x256xbf16> to vector<64x256xbf16>
    %c4_66 = arith.constant 4 : index
    %c0_67 = arith.constant 0 : index
    %c0_68 = arith.constant 0 : index
    %69 = vector.load %arg4[%c4_66, %c0_67, %c0_68] : memref<5x256x256xbf16, #tpu.memory_space<vmem>>, vector<1x256x256xbf16>
    %70 = vector.shape_cast %69 : vector<1x256x256xbf16> to vector<256x256xbf16>
    %cst_69 = arith.constant dense<0.000000e+00> : vector<64x256xf32>
    %71 = tpu.matmul %68, %70, %cst_69 {dimension_numbers = #tpu.dot_dimension_numbers<[1], [0], [0], [1], [0, 0, 1, 1], [], []>} : vector<64x256xbf16>, vector<256x256xbf16>, vector<64x256xf32> -> vector<64x256xf32>
    %72 = arith.addf %66, %71 : vector<64x256xf32>
    %73 = vector.shape_cast %72 : vector<64x256xf32> to vector<4x16x256xf32>
    %74 = vector.extract_strided_slice %73 {offsets = [0, 0, 0], sizes = [4, 8, 256], strides = [1, 1, 1]} : vector<4x16x256xf32> to vector<4x8x256xf32>
    %75 = vector.extract_strided_slice %73 {offsets = [0, 8, 0], sizes = [4, 8, 256], strides = [1, 1, 1]} : vector<4x16x256xf32> to vector<4x8x256xf32>
    %76 = arith.maximumf %74, %75 : vector<4x8x256xf32>
    %77 = vector.extract_strided_slice %76 {offsets = [0, 0, 0], sizes = [4, 8, 128], strides = [1, 1, 1]} : vector<4x8x256xf32> to vector<4x8x128xf32>
    %78 = vector.extract_strided_slice %76 {offsets = [0, 0, 128], sizes = [4, 8, 128], strides = [1, 1, 1]} : vector<4x8x256xf32> to vector<4x8x128xf32>
    %79 = arith.maximumf %77, %78 : vector<4x8x128xf32>
    %c0_70 = arith.constant 0 : index
    %c0_71 = arith.constant 0 : index
    %80 = vector.load %arg5[%c0_70, %c0_71] : memref<1x128xf32, #tpu.memory_space<vmem>>, vector<1x128xf32>
    %81 = vector.shape_cast %80 : vector<1x128xf32> to vector<1x1x128xf32>
    %82 = vector.broadcast %81 : vector<1x1x128xf32> to vector<4x8x128xf32>
    %83 = arith.addf %79, %82 : vector<4x8x128xf32>
    %cst_72 = arith.constant 0.000000e+00 : f32
    %84 = vector.broadcast %cst_72 : f32 to vector<4x8x128xf32>
    %85 = arith.maximumf %83, %84 : vector<4x8x128xf32>
    %86 = arith.truncf %85 : vector<4x8x128xf32> to vector<4x8x128xbf16>
    %87 = vector.extract_strided_slice %86 {offsets = [0, 0, 0], sizes = [1, 8, 128], strides = [1, 1, 1]} : vector<4x8x128xbf16> to vector<1x8x128xbf16>
    %88 = vector.shape_cast %87 : vector<1x8x128xbf16> to vector<8x128xbf16>
    %c0_73 = arith.constant 0 : index
    %c0_74 = arith.constant 0 : index
    %c0_75 = arith.constant 0 : index
    %89 = vector.load %arg6[%c0_73, %c0_74, %c0_75] : memref<4x128x128xbf16, #tpu.memory_space<vmem>>, vector<1x128x128xbf16>
    %90 = vector.shape_cast %89 : vector<1x128x128xbf16> to vector<128x128xbf16>
    %cst_76 = arith.constant dense<0.000000e+00> : vector<8x128xf32>
    %91 = tpu.matmul %88, %90, %cst_76 {dimension_numbers = #tpu.dot_dimension_numbers<[1], [0], [0], [1], [0, 0, 1, 1], [], []>} : vector<8x128xbf16>, vector<128x128xbf16>, vector<8x128xf32> -> vector<8x128xf32>
    %92 = vector.extract_strided_slice %86 {offsets = [1, 0, 0], sizes = [1, 8, 128], strides = [1, 1, 1]} : vector<4x8x128xbf16> to vector<1x8x128xbf16>
    %93 = vector.shape_cast %92 : vector<1x8x128xbf16> to vector<8x128xbf16>
    %c1_77 = arith.constant 1 : index
    %c0_78 = arith.constant 0 : index
    %c0_79 = arith.constant 0 : index
    %94 = vector.load %arg6[%c1_77, %c0_78, %c0_79] : memref<4x128x128xbf16, #tpu.memory_space<vmem>>, vector<1x128x128xbf16>
    %95 = vector.shape_cast %94 : vector<1x128x128xbf16> to vector<128x128xbf16>
    %cst_80 = arith.constant dense<0.000000e+00> : vector<8x128xf32>
    %96 = tpu.matmul %93, %95, %cst_80 {dimension_numbers = #tpu.dot_dimension_numbers<[1], [0], [0], [1], [0, 0, 1, 1], [], []>} : vector<8x128xbf16>, vector<128x128xbf16>, vector<8x128xf32> -> vector<8x128xf32>
    %97 = arith.addf %91, %96 : vector<8x128xf32>
    %98 = vector.extract_strided_slice %86 {offsets = [2, 0, 0], sizes = [1, 8, 128], strides = [1, 1, 1]} : vector<4x8x128xbf16> to vector<1x8x128xbf16>
    %99 = vector.shape_cast %98 : vector<1x8x128xbf16> to vector<8x128xbf16>
    %c2_81 = arith.constant 2 : index
    %c0_82 = arith.constant 0 : index
    %c0_83 = arith.constant 0 : index
    %100 = vector.load %arg6[%c2_81, %c0_82, %c0_83] : memref<4x128x128xbf16, #tpu.memory_space<vmem>>, vector<1x128x128xbf16>
    %101 = vector.shape_cast %100 : vector<1x128x128xbf16> to vector<128x128xbf16>
    %cst_84 = arith.constant dense<0.000000e+00> : vector<8x128xf32>
    %102 = tpu.matmul %99, %101, %cst_84 {dimension_numbers = #tpu.dot_dimension_numbers<[1], [0], [0], [1], [0, 0, 1, 1], [], []>} : vector<8x128xbf16>, vector<128x128xbf16>, vector<8x128xf32> -> vector<8x128xf32>
    %103 = arith.addf %97, %102 : vector<8x128xf32>
    %104 = vector.extract_strided_slice %86 {offsets = [3, 0, 0], sizes = [1, 8, 128], strides = [1, 1, 1]} : vector<4x8x128xbf16> to vector<1x8x128xbf16>
    %105 = vector.shape_cast %104 : vector<1x8x128xbf16> to vector<8x128xbf16>
    %c3_85 = arith.constant 3 : index
    %c0_86 = arith.constant 0 : index
    %c0_87 = arith.constant 0 : index
    %106 = vector.load %arg6[%c3_85, %c0_86, %c0_87] : memref<4x128x128xbf16, #tpu.memory_space<vmem>>, vector<1x128x128xbf16>
    %107 = vector.shape_cast %106 : vector<1x128x128xbf16> to vector<128x128xbf16>
    %cst_88 = arith.constant dense<0.000000e+00> : vector<8x128xf32>
    %108 = tpu.matmul %105, %107, %cst_88 {dimension_numbers = #tpu.dot_dimension_numbers<[1], [0], [0], [1], [0, 0, 1, 1], [], []>} : vector<8x128xbf16>, vector<128x128xbf16>, vector<8x128xf32> -> vector<8x128xf32>
    %109 = arith.addf %103, %108 : vector<8x128xf32>
    %c0_89 = arith.constant 0 : index
    %c0_90 = arith.constant 0 : index
    %110 = vector.load %arg7[%c0_89, %c0_90] : memref<1x128xf32, #tpu.memory_space<vmem>>, vector<1x128xf32>
    %111 = vector.broadcast %110 : vector<1x128xf32> to vector<8x128xf32>
    %112 = arith.addf %109, %111 : vector<8x128xf32>
    %c0_91 = arith.constant 0 : index
    %c0_92 = arith.constant 0 : index
    %113 = vector.load %arg8[%c0_91, %c0_92] : memref<8x128xf32, #tpu.memory_space<vmem>>, vector<8x128xf32>
    tpu.vector_store %arg8[%c0_91, %c0_92], %112 {strides = array<i32>} : memref<8x128xf32, #tpu.memory_space<vmem>>, vector<8x128xf32>,
    return
  }
  func.func @transform_0(%arg0: i32) -> (i32, i32, i32) {
    %c0_i32 = arith.constant 0 : i32
    %c0_i32_0 = arith.constant 0 : i32
    %c0_i32_1 = arith.constant 0 : i32
    return %c0_i32, %arg0, %c0_i32_0 : i32, i32, i32
  }
  func.func @transform_1(%arg0: i32) -> (i32, i32, i32) {
    %c0_i32 = arith.constant 0 : i32
    %c0_i32_0 = arith.constant 0 : i32
    %c0_i32_1 = arith.constant 0 : i32
    %c0_i32_2 = arith.constant 0 : i32
    return %c0_i32, %c0_i32_0, %c0_i32_1 : i32, i32, i32
  }
  func.func @transform_2(%arg0: i32) -> (i32, i32) {
    %c0_i32 = arith.constant 0 : i32
    %c0_i32_0 = arith.constant 0 : i32
    %c0_i32_1 = arith.constant 0 : i32
    return %c0_i32, %c0_i32_0 : i32, i32
  }
  func.func @transform_3(%arg0: i32) -> (i32, i32, i32) {
    %c0_i32 = arith.constant 0 : i32
    %c0_i32_0 = arith.constant 0 : i32
    %c0_i32_1 = arith.constant 0 : i32
    %c0_i32_2 = arith.constant 0 : i32
    return %c0_i32, %c0_i32_0, %c0_i32_1 : i32, i32, i32
  }
  func.func @transform_4(%arg0: i32) -> (i32, i32) {
    %c0_i32 = arith.constant 0 : i32
    %c0_i32_0 = arith.constant 0 : i32
    %c0_i32_1 = arith.constant 0 : i32
    return %c0_i32, %c0_i32_0 : i32, i32
  }
  func.func @transform_5(%arg0: i32) -> (i32, i32, i32) {
    %c0_i32 = arith.constant 0 : i32
    %c0_i32_0 = arith.constant 0 : i32
    %c0_i32_1 = arith.constant 0 : i32
    %c0_i32_2 = arith.constant 0 : i32
    return %c0_i32, %c0_i32_0, %c0_i32_1 : i32, i32, i32
  }
  func.func @transform_6(%arg0: i32) -> (i32, i32) {
    %c0_i32 = arith.constant 0 : i32
    %c0_i32_0 = arith.constant 0 : i32
    %c0_i32_1 = arith.constant 0 : i32
    return %c0_i32, %c0_i32_0 : i32, i32
  }
  func.func @transform_7(%arg0: i32) -> (i32, i32) {
    %c0_i32 = arith.constant 0 : i32
    %c0_i32_0 = arith.constant 0 : i32
    return %arg0, %c0_i32 : i32, i32
  }
}

</mosaic_0001>

<bundles_post_ra>
// kernel: cnn_forward.1
= control target key start
LH: loop header
LB: loop body
LE: loop exit
PB: predicated region body
PF: predicated region fallthrough
CT: control target
= control target key end

     0   :  { %12 = vsyncpa [#allocation5], 0  ;;  %s9987_s0 = inlined_call_operand.vmem [shape: bf16[28,16,28], index: 0, kind: input, shape index: {}]   ;;  %s9988_s1 = inlined_call_operand.vmem [shape: bf16[5,28,512], index: 1, kind: input, shape index: {}]   ;;  %s9989_s2 = inlined_call_operand.vmem [shape: f32[1,256], index: 2, kind: input, shape index: {}]   ;;  %s9990_s3 = inlined_call_operand.hbm [shape: bf16[5,256,256], index: 3, kind: input, shape index: {}]   ;;  %s9991_s4 = inlined_call_operand.vmem [shape: f32[1,128], index: 4, kind: input, shape index: {}]   ;;  %s9992_s5 = inlined_call_operand.vmem [shape: bf16[4,128,128], index: 5, kind: input, shape index: {}]   ;;  %s9993_s6 = inlined_call_operand.vmem [shape: f32[1,128], index: 6, kind: input, shape index: {}]   ;;  %s9994_s7 = inlined_call_operand.hbm [shape: f32[16,128], index: 7, kind: output, shape index: {}]  }
   0x1   :  { %13 = vsyncpa [#allocation6], 0 }
   0x2   :  { %15 = vsyncpa [#allocation6 + $0x1], 0  ;;  %s7715_s24 = smov 0   ;;  %s7717_s25 = smov 0  }
   0x3   :  { %s7719_s26 = smov 0   ;;  %s7721_s27 = smov 0  }
   0x4 LB: > { %s7736_s28 = sadd.s32 4294967295, %s7670_s27   ;;  %s5430_s29 = sadd.s32 4294967294, %s7670_s27   ;;  %s7670_s27 = sphi %s7721_s27, %s10470_s27   ;;  %s7666_s26 = sphi %s7719_s26, %s10469_s26   ;;  %s7662_s25 = sphi %s7717_s25, %s10468_s25   ;;  %s7658_s24 = sphi %s7715_s24, %s10467_s24  }
   0x5   : > { %s7740_s30 = sadd.s32 1, %s7670_s27   ;;  %s28_s8 = sadd.s32 1, %s7666_s26 }
   0x6   : > { %s25_s9 = ssub.s32 %s7670_s27, %s7740_s30  ;;  %p35_p0 = scmp.ne.s32.totalorder %s7666_s26, %s7662_s25 }
   0x7   : > { %p26_p1 = scmp.eq.s32.totalorder %s25_s9, 0  ;;  %p36_p2 = scmp.eq.s32.totalorder %s7670_s27, 0 }
   0x8   : > { %p191_p3 = scmp.eq.s32.totalorder %s7736_s28, 1  ;;  %p196_p4 = scmp.ne.s32.totalorder %s7662_s25, %s7658_s24 }
   0x9   : > { %s7752_s10 = scalar_select %p26_p1, %s7666_s26, %s28_s8  }
   0xa   : > { %p7754_p5 = por %p36_p2, %p35_p0  ;;  %p7758_p6 = por %p191_p3, %p35_p0 }
   0xb   : > { %p197_p7 = scmp.eq.s32.totalorder %s5430_s29, 1  ;;  %p5431_p8 = scmp.ge.s32.totalorder %s7670_s27, 1 }
   0xc   : > { %p204_p9 = scmp.lt.s32.totalorder %s7670_s27, 3  ;;  %p7534_p11 = scmp.eq.s32.totalorder %s7736_s28, 0 }
   0xd   : > { %p7764_p10 = por %p197_p7, %p196_p4  ;;  %s221_s17 = sshll.u32 %s9990_s3, 4  ;;  %s222_s17 = int_to_ptr.hbm [resolvable:$true] %s221_s17 }
   0xe   : > { %p7769_p12 = pnand %p5431_p8, %p204_p9  ;;  %s7672_s18 = smov [#allocation4]  }
   0xf   : > { %s223_s19 = sshll.u32 %s7672_s18, 4  ;;  %s7673_s20 = smov 128   ;;  %s224_s19 = int_to_ptr.vmem [resolvable:$true] %s223_s19 }
  0x10   : > { %p7526_p13 = pneg %p7769_p12  ;;  %s7674_s21 = smov 8  }
  0x11   : > { %p5433_p1 = scmp.ge.s32.totalorder %s7670_s27, 2 }
  0x12   : > { %p7527_p0 = pnand %p7534_p11, %p7526_p13 }
  0x13   : > { %242 = sbr.rel (%p5433_p1) target bundleno = 57 (0x39), region = 40 }
  0x14   : > { %7529 = dma.hbm_to_vmem [thread:$0]  (!%p7527_p0), %s222_s17, 20480, %s224_s19, [#allocation5], %s7673_s20, %s7673_s20, %s7674_s21  }
  0x18   : > { %245 = sbr.rel (!%p7754_p5) target bundleno = 57 (0x39), region = 44  ;;  %s247_s22 = sand.u32 (%p7754_p5), 1, %s7666_s26  }
  0x19   : > { %s5434_s23 = sshll.u32 (%p7754_p5), %s7670_s27, 2  ;;  %s7518_s29 = smul.u32 (%p7754_p5), 112, %s247_s22 }
  0x1a   : > { %s7790_s15 = scalar_lea.vmem (%p7754_p5), %s9987_s0, %s5434_s23 }
  0x1b   : > { %v268_v0 = vld [vmem:[%s7790_s15] sm:$0xf] (%p7754_p5)  ;;  %v270_v1 = vld [vmem:[%s7790_s15 + $0x8] sm:$0xf] (%p7754_p5)  ;;  %v272_v2 = vld [vmem:[%s7790_s15 + $0x10] sm:$0xf] (%p7754_p5) }
  0x1c   : > { %s7795_s11 = scalar_lea.vmem (%p7754_p5), [#allocation3], %s7518_s29  ;;  %v274_v3 = vld [vmem:[%s7790_s15 + $0x18] sm:$0xf] (%p7754_p5)  ;;  %v276_v4 = vld [vmem:[%s7790_s15 + $0x20] sm:$0xf] (%p7754_p5) }
  0x1d   : > { %269 = vst [vmem:[%s7795_s11] sm:$0xf] %v268_v0  ;;  %v278_v5 = vld [vmem:[%s7790_s15 + $0x28] sm:$0xf]  ;;  %v280_v6 = vld [vmem:[%s7790_s15 + $0x30] sm:$0xf] }
  0x1e   : > { %271 = vst [vmem:[%s7795_s11 + $0x4] sm:$0xf] %v270_v1  ;;  %v282_v7 = vld [vmem:[%s7790_s15 + $0x38] sm:$0xf]  ;;  %v284_v8 = vld [vmem:[%s7790_s15 + $0x40] sm:$0xf] }
  0x1f   : > { %273 = vst [vmem:[%s7795_s11 + $0x8] sm:$0xf] %v272_v2  ;;  %v286_v9 = vld [vmem:[%s7790_s15 + $0x48] sm:$0xf]  ;;  %v288_v10 = vld [vmem:[%s7790_s15 + $0x50] sm:$0xf] }
  0x20   : > { %275 = vst [vmem:[%s7795_s11 + $0xc] sm:$0xf] %v274_v3  ;;  %v290_v11 = vld [vmem:[%s7790_s15 + $0x58] sm:$0xf]  ;;  %v292_v12 = vld [vmem:[%s7790_s15 + $0x60] sm:$0xf] }
  0x21   : > { %277 = vst [vmem:[%s7795_s11 + $0x10] sm:$0xf] %v276_v4  ;;  %v294_v13 = vld [vmem:[%s7790_s15 + $0x68] sm:$0xf]  ;;  %v296_v14 = vld [vmem:[%s7790_s15 + $0x70] sm:$0xf] }
  0x22   : > { %279 = vst [vmem:[%s7795_s11 + $0x14] sm:$0xf] %v278_v5  ;;  %v298_v15 = vld [vmem:[%s7790_s15 + $0x78] sm:$0xf]  ;;  %v300_v16 = vld [vmem:[%s7790_s15 + $0x80] sm:$0xf] }
  0x23   : > { %281 = vst [vmem:[%s7795_s11 + $0x18] sm:$0xf] %v280_v6  ;;  %v302_v17 = vld [vmem:[%s7790_s15 + $0x88] sm:$0xf]  ;;  %v304_v18 = vld [vmem:[%s7790_s15 + $0x90] sm:$0xf] }
  0x24   : > { %283 = vst [vmem:[%s7795_s11 + $0x1c] sm:$0xf] %v282_v7  ;;  %v306_v19 = vld [vmem:[%s7790_s15 + $0x98] sm:$0xf]  ;;  %v308_v20 = vld [vmem:[%s7790_s15 + $0xa0] sm:$0xf] }
  0x25   : > { %285 = vst [vmem:[%s7795_s11 + $0x20] sm:$0xf] %v284_v8  ;;  %v310_v21 = vld [vmem:[%s7790_s15 + $0xa8] sm:$0xf]  ;;  %v312_v22 = vld [vmem:[%s7790_s15 + $0xb0] sm:$0xf] }
  0x26   : > { %287 = vst [vmem:[%s7795_s11 + $0x24] sm:$0xf] %v286_v9  ;;  %v314_v23 = vld [vmem:[%s7790_s15 + $0xb8] sm:$0xf]  ;;  %v316_v24 = vld [vmem:[%s7790_s15 + $0xc0] sm:$0xf] }
  0x27   : > { %289 = vst [vmem:[%s7795_s11 + $0x28] sm:$0xf] %v288_v10  ;;  %v318_v25 = vld [vmem:[%s7790_s15 + $0xc8] sm:$0xf]  ;;  %v320_v26 = vld [vmem:[%s7790_s15 + $0xd0] sm:$0xf] }
  0x28   : > { %291 = vst [vmem:[%s7795_s11 + $0x2c] sm:$0xf] %v290_v11  ;;  %v322_v27 = vld [vmem:[%s7790_s15 + $0xd8] sm:$0xf] }
  0x29   : > { %293 = vst [vmem:[%s7795_s11 + $0x30] sm:$0xf] %v292_v12 }
  0x2a   : > { %295 = vst [vmem:[%s7795_s11 + $0x34] sm:$0xf] %v294_v13 }
  0x2b   : > { %297 = vst [vmem:[%s7795_s11 + $0x38] sm:$0xf] %v296_v14 }
  0x2c   : > { %299 = vst [vmem:[%s7795_s11 + $0x3c] sm:$0xf] %v298_v15 }
  0x2d   : > { %301 = vst [vmem:[%s7795_s11 + $0x40] sm:$0xf] %v300_v16 }
  0x2e   : > { %303 = vst [vmem:[%s7795_s11 + $0x44] sm:$0xf] %v302_v17 }
  0x2f   : > { %305 = vst [vmem:[%s7795_s11 + $0x48] sm:$0xf] %v304_v18 }
  0x30   : > { %307 = vst [vmem:[%s7795_s11 + $0x4c] sm:$0xf] %v306_v19 }
  0x31   : > { %309 = vst [vmem:[%s7795_s11 + $0x50] sm:$0xf] %v308_v20 }
  0x32   : > { %311 = vst [vmem:[%s7795_s11 + $0x54] sm:$0xf] %v310_v21 }
  0x33   : > { %313 = vst [vmem:[%s7795_s11 + $0x58] sm:$0xf] %v312_v22 }
  0x34   : > { %315 = vst [vmem:[%s7795_s11 + $0x5c] sm:$0xf] %v314_v23 }
  0x35   : > { %317 = vst [vmem:[%s7795_s11 + $0x60] sm:$0xf] %v316_v24 }
  0x36   : > { %319 = vst [vmem:[%s7795_s11 + $0x64] sm:$0xf] %v318_v25 }
  0x37   : > { %321 = vst [vmem:[%s7795_s11 + $0x68] sm:$0xf] %v320_v26 }
  0x38   : > { %323 = vst [vmem:[%s7795_s11 + $0x6c] sm:$0xf] %v322_v27 }
  0x39 PF: > { %406 = sbr.rel (%p7769_p12) target bundleno = 1690 (0x69a), region = 85 }
  0x3e   : > { %s7853_s16 = sand.u32 1, %s7662_s25  }
  0x3f   : > { %s7519_s17 = smul.u32 112, %s7853_s16 }
  0x41   : > { %s7856_s18 = scalar_lea.vmem [#allocation3], %s7519_s17 }
  0x42   : > { %7649 = dma.done.wait (%p7534_p11), [#allocation5], 20480  }
  0x43   : > { %7651 = vsyncadd (%p7534_p11), [#allocation5], 4294946816  ;;  %vm645_vm0 = vcmask 1045504   ;;  %v5536_v28 = vld [vmem:[%s9988_s1 + $0x60] sm:$0xf]  ;;  %vm608_vm1 = vcmask 228352  }
  0x44   : > { %v7224_v29 = vld [vmem:[%s9988_s1 + $0x6c] sm:$0x30]  ;;  %v7222_v30 = vld [vmem:[%s9988_s1 + $0x64] sm:$0xf]  ;;  %v5538_v32 = vld [vmem:[%s9988_s1 + $0x70] sm:$0x30] }
  0x45   : > { %v5537_v31 = vor.u32 %v7224_v29, %v5536_v28  ;;  %v5544_v33 = vld [vmem:[%s9988_s1 + $0x68] sm:$0xf]  ;;  %v7225_v34 = vld [vmem:[%s9988_s1 + $0x74] sm:$0x30]  ;;  %v5541_v35 = vor.u32 %v7222_v30, %v5538_v32  ;;  %v7223_v37 = vld [vmem:[%s9988_s1 + $0x6c] sm:$0xf] }
  0x46   : > { %v5545_v36 = vor.u32 %v7225_v34, %v5544_v33  ;;  %v5546_v38 = vld [vmem:[%s9988_s1 + $0x78] sm:$0x30]  ;;  %v5520_v39 = vld [vmem:[%s9988_s1 + $0x40] sm:$0xf]  ;;  %v7220_v42 = vld [vmem:[%s9988_s1 + $0x4c] sm:$0xf0] }
  0x47   : > { %v647_v40 = vsel %vm645_vm0, %v5537_v31, 0  ;;  %v5549_v41 = vor.u32 %v7223_v37, %v5546_v38  ;;  %v7218_v43 = vld [vmem:[%s9988_s1 + $0x44] sm:$0xf]  ;;  %v650_v44 = vsel %vm645_vm0, %v5541_v35, 0  ;;  %v5521_v46 = vor.u32 %v7220_v42, %v5520_v39  ;;  %v5522_v47 = vld [vmem:[%s9988_s1 + $0x50] sm:$0xf0] }
  0x48   : > { %664 = vmatpush.bf16.msra.mxu0 %v647_v40  ;;  %v653_v45 = vsel %vm645_vm0, %v5545_v36, 0  ;;  %v5528_v48 = vld [vmem:[%s9988_s1 + $0x48] sm:$0xf]  ;;  %733 = vmatpush.bf16.msra.mxu1 %v650_v44  ;;  %v5525_v50 = vor.u32 %v7218_v43, %v5522_v47  ;;  %v7221_v51 = vld [vmem:[%s9988_s1 + $0x54] sm:$0xf0]  ;;  %v7207_v9 = vld [vmem:[%s7856_s18 + $0xc] sm:$0xff] }
  0x49   : > { %802 = vmatpush.bf16.msra.mxu2 %v653_v45  ;;  %v656_v49 = vsel %vm645_vm0, %v5549_v41, 0  ;;  %v7219_v52 = vld [vmem:[%s9988_s1 + $0x4c] sm:$0xf]  ;;  %v7206_v53 = vld [vmem:[%s7856_s18 + $0x4] sm:$0xff]  ;;  %v5529_v54 = vor.u32 %v7221_v51, %v5528_v48  ;;  %v5530_v55 = vld [vmem:[%s9988_s1 + $0x58] sm:$0xf0] }
  0x4a   : > { %871 = vmatpush.bf16.msra.mxu3 %v656_v49  ;;  %v5672_v56 = vld [vmem:[%s9988_s1 + $0x28] sm:$0xf]  ;;  %v7205_v57 = vld [vmem:[%s9988_s1 + $0x34] sm:$0x30]  ;;  %v5533_v58 = vor.u32 %v7219_v52, %v5530_v55  ;;  %v7203_v60 = vld [vmem:[%s9988_s1 + $0x2c] sm:$0xf] }
  0x4b   : > { %v5673_v59 = vor.u32 %v7205_v57, %v5672_v56  ;;  %v5674_v61 = vld [vmem:[%s9988_s1 + $0x38] sm:$0x30]  ;;  %v5664_v62 = vld [vmem:[%s9988_s1 + $0x20] sm:$0xf]  ;;  %v7204_v0 = vld [vmem:[%s9988_s1 + $0x2c] sm:$0x30] }
  0x4c   : > { %665 = vmatpush.bf16.msra.mxu0 %v5521_v46  ;;  %v5677_v63 = vor.u32 %v7203_v60, %v5674_v61  ;;  %v7202_v1 = vld [vmem:[%s9988_s1 + $0x24] sm:$0xf]  ;;  %v5666_v2 = vld [vmem:[%s9988_s1 + $0x30] sm:$0x30]  ;;  %734 = vmatpush.bf16.msra.mxu1 %v5525_v50  ;;  %v5665_v4 = vor.u32 %v7204_v0, %v5664_v62  ;;  %v7209_v11 = vld [vmem:[%s7856_s18 + $0x1c] sm:$0xff]  ;;  %s5437_s29 = sshll.u32 %s7853_s16, 3 }
  0x4d   : > { %803 = vmatpush.bf16.msra.mxu2 %v5529_v54  ;;  %v1073_v3 = vsel %vm645_vm0, %v5673_v59, 0  ;;  %v5669_v5 = vor.u32 %v7202_v1, %v5666_v2  ;;  %v7208_v10 = vld [vmem:[%s7856_s18 + $0x14] sm:$0xff]  ;;  %v7210_v12 = vld [vmem:[%s7856_s18 + $0x24] sm:$0xff]  ;;  %v7199_v15 = vld [vmem:[%s9988_s1 + $0xc] sm:$0xf]  ;;  %s7183_s8 = sshll.u32 %s7736_s28, 3 }
  0x4e   : > { %872 = vmatpush.bf16.msra.mxu3 %v5533_v58  ;;  %v1076_v6 = vsel %vm645_vm0, %v5677_v63, 0  ;;  %v1067_v7 = vsel %vm645_vm0, %v5665_v4, 0  ;;  %v5656_v13 = vld [vmem:[%s9988_s1 + $0x8] sm:$0xf]  ;;  %v7201_v14 = vld [vmem:[%s9988_s1 + $0x14] sm:$0xf0]  ;;  %s5348_s11 = scalar_lea.hbm %s9994_s7, %s7183_s8 }
  0x4f   : > { %5550 = vmatmul.msk.bf16.vlgmr.msra.gmra.mxu0 %vm608_vm1, %v7206_v53  ;;  %v1070_v8 = vsel %vm645_vm0, %v5669_v5, 0  ;;  %5562 = vmatmul.msk.bf16.vlgmr.msra.gmra.mxu1 %vm608_vm1, %v7206_v53  ;;  %v5657_v16 = vor.u32 %v7201_v14, %v5656_v13  ;;  %v5658_v17 = vld [vmem:[%s9988_s1 + $0x18] sm:$0xf0]  ;;  %v5648_v18 = vld [vmem:[%s9988_s1] sm:$0xf]  ;;  %v7212_v26 = vld [vmem:[%s7856_s18 + $0x34] sm:$0xff] }
  0x50   : > { %5574 = vmatmul.msk.bf16.vlgmr.msra.gmra.mxu2 %vm608_vm1, %v7206_v53  ;;  %1084 = vmatpush.bf16.msrb.mxu0 %v1067_v7  ;;  %v7200_v19 = vld [vmem:[%s9988_s1 + $0xc] sm:$0xf0]  ;;  %v5661_v20 = vor.u32 %v7199_v15, %v5658_v17  ;;  %v7198_v22 = vld [vmem:[%s9988_s1 + $0x4] sm:$0xf]  ;;  %v5650_v23 = vld [vmem:[%s9988_s1 + $0x10] sm:$0xf0] }
  0x51   : > { %1222 = vmatpush.bf16.msrb.mxu2 %v1073_v3  ;;  %5586 = vmatmul.msk.bf16.vlgmr.msra.gmra.mxu3 %vm608_vm1, %v7206_v53  ;;  %v5649_v21 = vor.u32 %v7200_v19, %v5648_v18  ;;  %v5653_v24 = vor.u32 %v7198_v22, %v5650_v23  ;;  %v7211_v25 = vld [vmem:[%s7856_s18 + $0x2c] sm:$0xff]  ;;  %v7213_v27 = vld [vmem:[%s7856_s18 + $0x3c] sm:$0xff]  ;;  %v7214_v28 = vld [vmem:[%s7856_s18 + $0x44] sm:$0xff]  ;;  %s444_s20 = scalar_lea.vmem [#allocation7], %s5437_s29  ;;  %s5352_s21 = sshll.u32 %s5348_s11, 4  ;;  %s5353_s21 = int_to_ptr.hbm [resolvable:$true] %s5352_s21 }
  0x52   : > { %1291 = vmatpush.bf16.msrb.mxu3 %v1076_v6  ;;  %1153 = vmatpush.bf16.msrb.mxu1 %v1070_v8  ;;  %v7215_v36 = vld [vmem:[%s7856_s18 + $0x4c] sm:$0xff]  ;;  %v7216_v45 = vld [vmem:[%s7856_s18 + $0x54] sm:$0xff]  ;;  %v7217_v6 = vld [vmem:[%s7856_s18 + $0x5c] sm:$0xff]  ;;  %s5350_s14 = sshll.u32 %s444_s20, 4  ;;  %s5338_s28 = scalar_lea.sflag [#allocation6], %s7853_s16  ;;  %s5351_s14 = int_to_ptr.vmem [resolvable:$true] %s5350_s14 }
  0x53   : > { %v5832_v49 = vld [vmem:[%s9988_s1 + $0xa8] sm:$0xf]  ;;  %v7245_v50 = vld [vmem:[%s9988_s1 + $0xb4] sm:$0x30]  ;;  %v7243_v51 = vld [vmem:[%s9988_s1 + $0xac] sm:$0xf] }
  0x54   : > { %1085 = vmatpush.bf16.msrb.mxu0 %v5649_v21  ;;  %v5833_v52 = vor.u32 %v7245_v50, %v5832_v49  ;;  %v5834_v53 = vld [vmem:[%s9988_s1 + $0xb8] sm:$0x30]  ;;  %v5824_v61 = vld [vmem:[%s9988_s1 + $0xa0] sm:$0xf]  ;;  %v7244_v62 = vld [vmem:[%s9988_s1 + $0xac] sm:$0x30] }
  0x55   : > { %1223 = vmatpush.bf16.msrb.mxu2 %v5657_v16  ;;  %v5837_v55 = vor.u32 %v7243_v51, %v5834_v53  ;;  %v5825_v63 = vor.u32 %v7244_v62, %v5824_v61  ;;  %v7242_v0 = vld [vmem:[%s9988_s1 + $0xa4] sm:$0xf]  ;;  %v5826_v1 = vld [vmem:[%s9988_s1 + $0xb0] sm:$0x30]  ;;  %s7618_s22 = sshra.s32 %s5353_s21, 4  ;;  %s7624_s9 = scalar_lea.hbm %s9994_s7, 16  ;;  %s7619_s22 = int_to_ptr.hbm [resolvable:$true] %s7618_s22 }
  0x56   : > { %1292 = vmatpush.bf16.msrb.mxu3 %v5661_v20  ;;  %1154 = vmatpush.bf16.msrb.mxu1 %v5653_v24  ;;  %v1527_v58 = vsel %vm645_vm0, %v5833_v52, 0  ;;  %v5829_v2 = vor.u32 %v7242_v0, %v5826_v1  ;;  %v7186_v15 = vld [vmem:[%s7856_s18] sm:$0xff]  ;;  %v7187_v24 = vld [vmem:[%s7856_s18 + $0x8] sm:$0xff]  ;;  %v7188_v51 = vld [vmem:[%s7856_s18 + $0x10] sm:$0xff]  ;;  %s7620_s23 = scalar_lea.hbm %s7619_s22, 8  ;;  %p7625_p5 = scmp.lt.s32.totalorder %s7619_s22, %s9994_s7 }
  0x57   : > { %v1530_v60 = vsel %vm645_vm0, %v5837_v55, 0  ;;  %v1521_v3 = vsel %vm645_vm0, %v5825_v63, 0  ;;  %v7189_v0 = vld [vmem:[%s7856_s18 + $0x18] sm:$0xff]  ;;  %p7621_p2 = scmp.ne.s32.totalorder %s7619_s22, %s7620_s23  ;;  %p7626_p7 = scmp.lt.s32.totalorder %s7624_s9, %s7620_s23 }
  0x58   : > { %1538 = vmatpush.bf16.msra.mxu0 %v1521_v3  ;;  %v1524_v4 = vsel %vm645_vm0, %v5829_v2, 0 }
  0x59   : > { %1676 = vmatpush.bf16.msra.mxu2 %v1527_v58  ;;  %p7622_p3 = pnand %p7621_p2, %p7758_p6  ;;  %p7627_p8 = por %p7626_p7, %p7625_p5 }
  0x5a   : > { %1745 = vmatpush.bf16.msra.mxu3 %v1530_v60  ;;  %1607 = vmatpush.bf16.msra.mxu1 %v1524_v4 }
  0x5b   : > { %p7623_p4 = pneg %p7622_p3 }
  0x5d   : > { %p7628_p9 = pnand %p7627_p8, %p7623_p4 }
  0x5f   : > { %5551 = vmatmul.msk.bf16.gmra.mxu0 %vm608_vm1, %v7207_v9  ;;  %5563 = vmatmul.msk.bf16.gmra.mxu1 %vm608_vm1, %v7207_v9 }
  0x60   : > { %5575 = vmatmul.msk.bf16.gmra.mxu2 %vm608_vm1, %v7207_v9 }
  0x61   : > { %5587 = vmatmul.msk.bf16.gmra.mxu3 %vm608_vm1, %v7207_v9 }
  0x6f   : > { %5552 = vmatmul.msk.bf16.gmra.mxu0 %vm608_vm1, %v7208_v10  ;;  %5564 = vmatmul.msk.bf16.gmra.mxu1 %vm608_vm1, %v7208_v10 }
  0x70   : > { %5576 = vmatmul.msk.bf16.gmra.mxu2 %vm608_vm1, %v7208_v10 }
  0x71   : > { %5588 = vmatmul.msk.bf16.gmra.mxu3 %vm608_vm1, %v7208_v10 }
  0x7f   : > { %5553 = vmatmul.msk.bf16.gmra.mxu0 %vm608_vm1, %v7209_v11  ;;  %5565 = vmatmul.msk.bf16.gmra.mxu1 %vm608_vm1, %v7209_v11 }
  0x80   : > { %5577 = vmatmul.msk.bf16.gmra.mxu2 %vm608_vm1, %v7209_v11 }
  0x81   : > { %5589 = vmatmul.msk.bf16.gmra.mxu3 %vm608_vm1, %v7209_v11 }
  0x8f   : > { %5554 = vmatmul.msk.bf16.gmra.mxu0 %vm608_vm1, %v7210_v12  ;;  %5566 = vmatmul.msk.bf16.gmra.mxu1 %vm608_vm1, %v7210_v12 }
  0x90   : > { %5578 = vmatmul.msk.bf16.gmra.mxu2 %vm608_vm1, %v7210_v12 }
  0x91   : > { %5590 = vmatmul.msk.bf16.gmra.mxu3 %vm608_vm1, %v7210_v12 }
  0x9f   : > { %5555 = vmatmul.msk.bf16.gmra.mxu0 %vm608_vm1, %v7211_v25  ;;  %5567 = vmatmul.msk.bf16.gmra.mxu1 %vm608_vm1, %v7211_v25 }
  0xa0   : > { %5579 = vmatmul.msk.bf16.gmra.mxu2 %vm608_vm1, %v7211_v25 }
  0xa1   : > { %5591 = vmatmul.msk.bf16.gmra.mxu3 %vm608_vm1, %v7211_v25 }
  0xaf   : > { %5556 = vmatmul.msk.bf16.gmra.mxu0 %vm608_vm1, %v7212_v26  ;;  %5568 = vmatmul.msk.bf16.gmra.mxu1 %vm608_vm1, %v7212_v26 }
  0xb0   : > { %5580 = vmatmul.msk.bf16.gmra.mxu2 %vm608_vm1, %v7212_v26 }
  0xb1   : > { %5592 = vmatmul.msk.bf16.gmra.mxu3 %vm608_vm1, %v7212_v26 }
  0xbf   : > { %5557 = vmatmul.msk.bf16.gmra.mxu0 %vm608_vm1, %v7213_v27  ;;  %5569 = vmatmul.msk.bf16.gmra.mxu1 %vm608_vm1, %v7213_v27 }
  0xc0   : > { %5581 = vmatmul.msk.bf16.gmra.mxu2 %vm608_vm1, %v7213_v27 }
  0xc1   : > { %5593 = vmatmul.msk.bf16.gmra.mxu3 %vm608_vm1, %v7213_v27 }
  0xcc   : > { %v8007_v29 = vpop.f32.mrf.mxu0  ;;  %v8009_v30 = vpop.f32.mrf.mxu1 }
  0xcf   : > { %5558 = vmatmul.msk.bf16.gmra.mxu0 %vm608_vm1, %v7214_v28  ;;  %5570 = vmatmul.msk.bf16.gmra.mxu1 %vm608_vm1, %v7214_v28 }
  0xd0   : > { %5582 = vmatmul.msk.bf16.gmra.mxu2 %vm608_vm1, %v7214_v28 }
  0xd1   : > { %5594 = vmatmul.msk.bf16.gmra.mxu3 %vm608_vm1, %v7214_v28 }
  0xd3   : > { %v8015_v31 = vpop.f32.mrf.mxu2 }
  0xd4   : > { %v8017_v32 = vpop.f32.mrf.mxu3  ;;  %v8019_v33 = vpop.f32.mrf.mxu0 }
  0xd5   : > { %v8021_v34 = vpop.f32.mrf.mxu1 }
  0xdb   : > { %v8023_v35 = vpop.f32.mrf.mxu2 }
  0xdc   : > { %v8026_v37 = vpop.f32.mrf.mxu3  ;;  %v8028_v38 = vpop.f32.mrf.mxu0 }
  0xdd   : > { %v8030_v39 = vpop.f32.mrf.mxu1 }
  0xdf   : > { %5559 = vmatmul.msk.bf16.gmra.mxu0 %vm608_vm1, %v7215_v36  ;;  %5571 = vmatmul.msk.bf16.gmra.mxu1 %vm608_vm1, %v7215_v36 }
  0xe0   : > { %5583 = vmatmul.msk.bf16.gmra.mxu2 %vm608_vm1, %v7215_v36 }
  0xe1   : > { %5595 = vmatmul.msk.bf16.gmra.mxu3 %vm608_vm1, %v7215_v36 }
  0xe3   : > { %v8036_v40 = vpop.f32.mrf.mxu2 }
  0xe4   : > { %v8038_v41 = vpop.f32.mrf.mxu3  ;;  %v8040_v42 = vpop.f32.mrf.mxu0 }
  0xe5   : > { %v8042_v43 = vpop.f32.mrf.mxu1 }
  0xeb   : > { %v8044_v44 = vpop.f32.mrf.mxu2 }
  0xec   : > { %v8047_v46 = vpop.f32.mrf.mxu3  ;;  %v8049_v47 = vpop.f32.mrf.mxu0 }
  0xed   : > { %v8051_v48 = vpop.f32.mrf.mxu1 }
  0xef   : > { %5560 = vmatmul.msk.bf16.gmra.mxu0 %vm608_vm1, %v7216_v45  ;;  %5572 = vmatmul.msk.bf16.gmra.mxu1 %vm608_vm1, %v7216_v45 }
  0xf0   : > { %5584 = vmatmul.msk.bf16.gmra.mxu2 %vm608_vm1, %v7216_v45 }
  0xf1   : > { %5596 = vmatmul.msk.bf16.gmra.mxu3 %vm608_vm1, %v7216_v45 }
  0xf3   : > { %v8069_v54 = vpop.f32.mrf.mxu2 }
  0xf4   : > { %v8071_v56 = vpop.f32.mrf.mxu3  ;;  %v8073_v57 = vpop.f32.mrf.mxu0 }
  0xf5   : > { %v8076_v59 = vpop.f32.mrf.mxu1 }
  0xfb   : > { %v8093_v5 = vpop.f32.mrf.mxu2 }
  0xfc   : > { %v8096_v7 = vpop.f32.mrf.mxu3  ;;  %v8098_v8 = vpop.f32.mrf.mxu0 }
  0xfd   : > { %v8100_v9 = vpop.f32.mrf.mxu1 }
  0xff   : > { %5561 = vmatmul.msk.bf16.gmra.mxu0 %vm608_vm1, %v7217_v6  ;;  %5573 = vmatmul.msk.bf16.gmra.mxu1 %vm608_vm1, %v7217_v6 }
 0x100   : > { %5585 = vmatmul.msk.bf16.gmra.mxu2 %vm608_vm1, %v7217_v6 }
 0x101   : > { %5597 = vmatmul.msk.bf16.gmra.mxu3 %vm608_vm1, %v7217_v6 }
 0x103   : > { %v8106_v10 = vpop.f32.mrf.mxu2 }
 0x104   : > { %v8108_v11 = vpop.f32.mrf.mxu3  ;;  %v8110_v12 = vpop.f32.mrf.mxu0 }
 0x105   : > { %9999 = vst [vmem:[#allocation10_spill] sm:$0xff] %v8108_v11  ;;  %v8112_v13 = vpop.f32.mrf.mxu1 }
 0x106   : > { %10000 = vst [vmem:[#allocation11_spill] sm:$0xff] %v8110_v12 }
 0x107   : > { %10001 = vst [vmem:[#allocation12_spill] sm:$0xff] %v8112_v13 }
 0x10b   : > { %v8114_v14 = vpop.f32.mrf.mxu2 }
 0x10c   : > { %10002 = vst [vmem:[#allocation13_spill] sm:$0xff] %v8114_v14  ;;  %v8117_v16 = vpop.f32.mrf.mxu3  ;;  %v8119_v17 = vpop.f32.mrf.mxu0 }
 0x10d   : > { %10003 = vst [vmem:[#allocation14_spill] sm:$0xff] %v8117_v16  ;;  %v8121_v18 = vpop.f32.mrf.mxu1 }
 0x10e   : > { %10004 = vst [vmem:[#allocation15_spill] sm:$0xff] %v8119_v17  ;;  %v7197_v17 = vld [vmem:[%s7856_s18 + $0x58] sm:$0xff] }
 0x10f   : > { %10005 = vst [vmem:[#allocation16_spill] sm:$0xff] %v8121_v18  ;;  %5678 = vmatmul.msk.bf16.vlgmr.msrb.gmra.mxu0 %vm608_vm1, %v7186_v15  ;;  %5690 = vmatmul.msk.bf16.vlgmr.msrb.gmra.mxu1 %vm608_vm1, %v7186_v15 }
 0x110   : > { %5702 = vmatmul.msk.bf16.vlgmr.msrb.gmra.mxu2 %vm608_vm1, %v7186_v15 }
 0x111   : > { %5714 = vmatmul.msk.bf16.vlgmr.msrb.gmra.mxu3 %vm608_vm1, %v7186_v15 }
 0x113   : > { %v8127_v19 = vpop.f32.mrf.mxu2 }
 0x114   : > { %10006 = vst [vmem:[#allocation17_spill] sm:$0xff] %v8127_v19  ;;  %v8129_v20 = vpop.f32.mrf.mxu3  ;;  %v8131_v21 = vpop.f32.mrf.mxu0 }
 0x115   : > { %10007 = vst [vmem:[#allocation18_spill] sm:$0xff] %v8129_v20  ;;  %v8133_v22 = vpop.f32.mrf.mxu1 }
 0x116   : > { %10008 = vst [vmem:[#allocation19_spill] sm:$0xff] %v8131_v21 }
 0x117   : > { %10009 = vst [vmem:[#allocation20_spill] sm:$0xff] %v8133_v22 }
 0x11b   : > { %v8135_v23 = vpop.f32.mrf.mxu2 }
 0x11c   : > { %10010 = vst [vmem:[#allocation21_spill] sm:$0xff] %v8135_v23  ;;  %v8138_v25 = vpop.f32.mrf.mxu3  ;;  %v8140_v26 = vpop.f32.mrf.mxu0 }
 0x11d   : > { %10011 = vst [vmem:[#allocation22_spill] sm:$0xff] %v8138_v25  ;;  %v8142_v27 = vpop.f32.mrf.mxu1 }
 0x11e   : > { %10012 = vst [vmem:[#allocation23_spill] sm:$0xff] %v8140_v26  ;;  %v5994_v26 = vld [vmem:[%s9988_s1 + $0xf8] sm:$0x30] }
 0x11f   : > { %10013 = vst [vmem:[#allocation24_spill] sm:$0xff] %v8142_v27  ;;  %5679 = vmatmul.msk.bf16.gmra.mxu0 %vm608_vm1, %v7187_v24  ;;  %5691 = vmatmul.msk.bf16.gmra.mxu1 %vm608_vm1, %v7187_v24 }
 0x120   : > { %5703 = vmatmul.msk.bf16.gmra.mxu2 %vm608_vm1, %v7187_v24 }
 0x121   : > { %5715 = vmatmul.msk.bf16.gmra.mxu3 %vm608_vm1, %v7187_v24 }
 0x123   : > { %v8148_v28 = vpop.f32.mrf.mxu2 }
 0x124   : > { %10014 = vst [vmem:[#allocation25_spill] sm:$0xff] %v8148_v28  ;;  %v8150_v36 = vpop.f32.mrf.mxu3  ;;  %v8152_v45 = vpop.f32.mrf.mxu0  ;;  %v7263_v28 = vld [vmem:[%s9988_s1 + $0xec] sm:$0xf] }
 0x125   : > { %10015 = vst [vmem:[#allocation26_spill] sm:$0xff] %v8150_v36  ;;  %v8154_v49 = vpop.f32.mrf.mxu1  ;;  %v7265_v36 = vld [vmem:[%s9988_s1 + $0xf4] sm:$0x30] }
 0x126   : > { %10016 = vst [vmem:[#allocation27_spill] sm:$0xff] %v8152_v45 }
 0x127   : > { %10017 = vst [vmem:[#allocation28_spill] sm:$0xff] %v8154_v49 }
 0x12b   : > { %v8156_v50 = vpop.f32.mrf.mxu2 }
 0x12c   : > { %10018 = vst [vmem:[#allocation29_spill] sm:$0xff] %v8156_v50  ;;  %v8159_v52 = vpop.f32.mrf.mxu3  ;;  %v8161_v53 = vpop.f32.mrf.mxu0 }
 0x12d   : > { %10019 = vst [vmem:[#allocation30_spill] sm:$0xff] %v8159_v52  ;;  %v8163_v55 = vpop.f32.mrf.mxu1  ;;  %v7196_v52 = vld [vmem:[%s7856_s18 + $0x50] sm:$0xff] }
 0x12e   : > { %10020 = vst [vmem:[#allocation31_spill] sm:$0xff] %v8161_v53 }
 0x12f   : > { %10021 = vst [vmem:[#allocation32_spill] sm:$0xff] %v8163_v55  ;;  %5680 = vmatmul.msk.bf16.gmra.mxu0 %vm608_vm1, %v7188_v51  ;;  %5692 = vmatmul.msk.bf16.gmra.mxu1 %vm608_vm1, %v7188_v51 }
 0x130   : > { %5704 = vmatmul.msk.bf16.gmra.mxu2 %vm608_vm1, %v7188_v51 }
 0x131   : > { %5716 = vmatmul.msk.bf16.gmra.mxu3 %vm608_vm1, %v7188_v51 }
 0x133   : > { %v8169_v58 = vpop.f32.mrf.mxu2 }
 0x134   : > { %10022 = vst [vmem:[#allocation33_spill] sm:$0xff] %v8169_v58  ;;  %v8171_v60 = vpop.f32.mrf.mxu3  ;;  %v8173_v61 = vpop.f32.mrf.mxu0 }
 0x135   : > { %10023 = vst [vmem:[#allocation34_spill] sm:$0xff] %v8171_v60  ;;  %v8175_v62 = vpop.f32.mrf.mxu1 }
 0x136   : > { %10024 = vst [vmem:[#allocation35_spill] sm:$0xff] %v8173_v61 }
 0x137   : > { %10025 = vst [vmem:[#allocation36_spill] sm:$0xff] %v8175_v62 }
 0x13b   : > { %v8177_v63 = vpop.f32.mrf.mxu2 }
 0x13c   : > { %10026 = vst [vmem:[#allocation37_spill] sm:$0xff] %v8177_v63  ;;  %v8180_v1 = vpop.f32.mrf.mxu3  ;;  %v8182_v2 = vpop.f32.mrf.mxu0 }
 0x13d   : > { %10027 = vst [vmem:[#allocation38_spill] sm:$0xff] %v8180_v1  ;;  %v8184_v3 = vpop.f32.mrf.mxu1 }
 0x13e   : > { %10028 = vst [vmem:[#allocation39_spill] sm:$0xff] %v8182_v2  ;;  %v7190_v2 = vld [vmem:[%s7856_s18 + $0x20] sm:$0xff] }
 0x13f   : > { %10029 = vst [vmem:[#allocation40_spill] sm:$0xff] %v8184_v3  ;;  %5681 = vmatmul.msk.bf16.gmra.mxu0 %vm608_vm1, %v7189_v0  ;;  %5693 = vmatmul.msk.bf16.gmra.mxu1 %vm608_vm1, %v7189_v0 }
 0x140   : > { %5705 = vmatmul.msk.bf16.gmra.mxu2 %vm608_vm1, %v7189_v0 }
 0x141   : > { %5717 = vmatmul.msk.bf16.gmra.mxu3 %vm608_vm1, %v7189_v0  ;;  %v5816_v0 = vld [vmem:[%s9988_s1 + $0x88] sm:$0xf] }
 0x143   : > { %v8190_v4 = vpop.f32.mrf.mxu2 }
 0x144   : > { %10030 = vst [vmem:[#allocation41_spill] sm:$0xff] %v8190_v4  ;;  %v8192_v6 = vpop.f32.mrf.mxu3  ;;  %v8194_v15 = vpop.f32.mrf.mxu0 }
 0x145   : > { %10031 = vst [vmem:[#allocation42_spill] sm:$0xff] %v8192_v6  ;;  %v8196_v24 = vpop.f32.mrf.mxu1 }
 0x146   : > { %10032 = vst [vmem:[#allocation43_spill] sm:$0xff] %v8194_v15 }
 0x147   : > { %10033 = vst [vmem:[#allocation44_spill] sm:$0xff] %v8196_v24 }
 0x14b   : > { %v8198_v51 = vpop.f32.mrf.mxu2 }
 0x14c   : > { %10034 = vst [vmem:[#allocation45_spill] sm:$0xff] %v8198_v51  ;;  %v8201_v3 = vpop.f32.mrf.mxu3  ;;  %v8203_v1 = vpop.f32.mrf.mxu0  ;;  %v5818_v51 = vld [vmem:[%s9988_s1 + $0x98] sm:$0xf0] }
 0x14d   : > { %10035 = vst [vmem:[#allocation46_spill] sm:$0xff] %v8201_v3  ;;  %v8205_v63 = vpop.f32.mrf.mxu1  ;;  %v7241_v3 = vld [vmem:[%s9988_s1 + $0x94] sm:$0xf0] }
 0x14e   : > { %10036 = vst [vmem:[#allocation47_spill] sm:$0xff] %v8203_v1  ;;  %v5817_v1 = vor.u32 %v7241_v3, %v5816_v0  ;;  %v5808_v3 = vld [vmem:[%s9988_s1 + $0x80] sm:$0xf]  ;;  %v7240_v0 = vld [vmem:[%s9988_s1 + $0x8c] sm:$0xf0] }
 0x14f   : > { %10037 = vst [vmem:[#allocation48_spill] sm:$0xff] %v8205_v63  ;;  %5682 = vmatmul.msk.bf16.gmra.mxu0 %vm608_vm1, %v7190_v2  ;;  %5694 = vmatmul.msk.bf16.gmra.mxu1 %vm608_vm1, %v7190_v2  ;;  %v7239_v63 = vld [vmem:[%s9988_s1 + $0x8c] sm:$0xf] }
 0x150   : > { %5706 = vmatmul.msk.bf16.gmra.mxu2 %vm608_vm1, %v7190_v2 }
 0x151   : > { %5718 = vmatmul.msk.bf16.gmra.mxu3 %vm608_vm1, %v7190_v2  ;;  %v5821_v2 = vor.u32 %v7239_v63, %v5818_v51  ;;  %1677 = vmatpush.bf16.msra.mxu2 %v5817_v1  ;;  %v7238_v63 = vld [vmem:[%s9988_s1 + $0x84] sm:$0xf]  ;;  %v5809_v51 = vor.u32 %v7240_v0, %v5808_v3  ;;  %v5810_v1 = vld [vmem:[%s9988_s1 + $0x90] sm:$0xf0] }
 0x153   : > { %v8223_v24 = vpop.f32.mrf.mxu2  ;;  %1746 = vmatpush.bf16.msra.mxu3 %v5821_v2  ;;  %1539 = vmatpush.bf16.msra.mxu0 %v5809_v51 }
 0x154   : > { %10038 = vst [vmem:[#allocation49_spill] sm:$0xff] %v8223_v24  ;;  %v8225_v15 = vpop.f32.mrf.mxu3  ;;  %v8227_v6 = vpop.f32.mrf.mxu0 }
 0x155   : > { %10039 = vst [vmem:[#allocation50_spill] sm:$0xff] %v8225_v15  ;;  %v8229_v4 = vpop.f32.mrf.mxu1 }
 0x156   : > { %10040 = vst [vmem:[#allocation51_spill] sm:$0xff] %v8227_v6  ;;  %v5813_v6 = vor.u32 %v7238_v63, %v5810_v1  ;;  %v7192_v1 = vld [vmem:[%s7856_s18 + $0x30] sm:$0xff] }
 0x157   : > { %10041 = vst [vmem:[#allocation52_spill] sm:$0xff] %v8229_v4  ;;  %v7191_v4 = vld [vmem:[%s7856_s18 + $0x28] sm:$0xff] }
 0x158   : > { %1608 = vmatpush.bf16.msra.mxu1 %v5813_v6 }
 0x15b   : > { %v8243_v2 = vpop.f32.mrf.mxu2 }
 0x15c   : > { %10042 = vst [vmem:[#allocation53_spill] sm:$0xff] %v8243_v2  ;;  %v8246_v15 = vpop.f32.mrf.mxu3  ;;  %v8248_v24 = vpop.f32.mrf.mxu0 }
 0x15d   : > { %10043 = vst [vmem:[#allocation54_spill] sm:$0xff] %v8246_v15  ;;  %v8250_v62 = vpop.f32.mrf.mxu1 }
 0x15e   : > { %10044 = vst [vmem:[#allocation55_spill] sm:$0xff] %v8248_v24 }
 0x15f   : > { %10045 = vst [vmem:[#allocation56_spill] sm:$0xff] %v8250_v62  ;;  %5683 = vmatmul.msk.bf16.gmra.mxu0 %vm608_vm1, %v7191_v4  ;;  %5695 = vmatmul.msk.bf16.gmra.mxu1 %vm608_vm1, %v7191_v4 }
 0x160   : > { %5707 = vmatmul.msk.bf16.gmra.mxu2 %vm608_vm1, %v7191_v4 }
 0x161   : > { %5719 = vmatmul.msk.bf16.gmra.mxu3 %vm608_vm1, %v7191_v4 }
 0x163   : > { %v8256_v3 = vpop.f32.mrf.mxu2 }
 0x164   : > { %10046 = vst [vmem:[#allocation57_spill] sm:$0xff] %v8256_v3  ;;  %v8258_v6 = vpop.f32.mrf.mxu3  ;;  %v8260_v0 = vpop.f32.mrf.mxu0 }
 0x165   : > { %10047 = vst [vmem:[#allocation58_spill] sm:$0xff] %v8258_v6  ;;  %v8262_v63 = vpop.f32.mrf.mxu1 }
 0x166   : > { %10048 = vst [vmem:[#allocation59_spill] sm:$0xff] %v8260_v0 }
 0x167   : > { %10049 = vst [vmem:[#allocation60_spill] sm:$0xff] %v8262_v63 }
 0x16b   : > { %v8264_v51 = vpop.f32.mrf.mxu2 }
 0x16c   : > { %10050 = vst [vmem:[#allocation61_spill] sm:$0xff] %v8264_v51  ;;  %v8267_v62 = vpop.f32.mrf.mxu3  ;;  %v8269_v24 = vpop.f32.mrf.mxu0 }
 0x16d   : > { %10051 = vst [vmem:[#allocation62_spill] sm:$0xff] %v8267_v62  ;;  %v8271_v15 = vpop.f32.mrf.mxu1 }
 0x16e   : > { %10052 = vst [vmem:[#allocation63_spill] sm:$0xff] %v8269_v24 }
 0x16f   : > { %10053 = vst [vmem:[#allocation64_spill] sm:$0xff] %v8271_v15  ;;  %5684 = vmatmul.msk.bf16.gmra.mxu0 %vm608_vm1, %v7192_v1  ;;  %5696 = vmatmul.msk.bf16.gmra.mxu1 %vm608_vm1, %v7192_v1  ;;  %v7193_v15 = vld [vmem:[%s7856_s18 + $0x38] sm:$0xff] }
 0x170   : > { %5708 = vmatmul.msk.bf16.gmra.mxu2 %vm608_vm1, %v7192_v1 }
 0x171   : > { %5720 = vmatmul.msk.bf16.gmra.mxu3 %vm608_vm1, %v7192_v1 }
 0x173   : > { %v8277_v4 = vpop.f32.mrf.mxu2 }
 0x174   : > { %10054 = vst [vmem:[#allocation65_spill] sm:$0xff] %v8277_v4  ;;  %v8279_v63 = vpop.f32.mrf.mxu3  ;;  %v8281_v51 = vpop.f32.mrf.mxu0 }
 0x175   : > { %10055 = vst [vmem:[#allocation66_spill] sm:$0xff] %v8279_v63  ;;  %v8283_v62 = vpop.f32.mrf.mxu1 }
 0x176   : > { %10056 = vst [vmem:[#allocation67_spill] sm:$0xff] %v8281_v51 }
 0x177   : > { %10057 = vst [vmem:[#allocation68_spill] sm:$0xff] %v8283_v62 }
 0x17b   : > { %v8285_v24 = vpop.f32.mrf.mxu2 }
 0x17c   : > { %10058 = vst [vmem:[#allocation69_spill] sm:$0xff] %v8285_v24  ;;  %v8288_v0 = vpop.f32.mrf.mxu3  ;;  %v8290_v6 = vpop.f32.mrf.mxu0 }
 0x17d   : > { %10059 = vst [vmem:[#allocation70_spill] sm:$0xff] %v8288_v0  ;;  %v8292_v3 = vpop.f32.mrf.mxu1 }
 0x17e   : > { %10060 = vst [vmem:[#allocation71_spill] sm:$0xff] %v8290_v6 }
 0x17f   : > { %10061 = vst [vmem:[#allocation72_spill] sm:$0xff] %v8292_v3  ;;  %5685 = vmatmul.msk.bf16.gmra.mxu0 %vm608_vm1, %v7193_v15  ;;  %5697 = vmatmul.msk.bf16.gmra.mxu1 %vm608_vm1, %v7193_v15  ;;  %v7194_v3 = vld [vmem:[%s7856_s18 + $0x40] sm:$0xff] }
 0x180   : > { %5709 = vmatmul.msk.bf16.gmra.mxu2 %vm608_vm1, %v7193_v15 }
 0x181   : > { %5721 = vmatmul.msk.bf16.gmra.mxu3 %vm608_vm1, %v7193_v15 }
 0x183   : > { %v8298_v1 = vpop.f32.mrf.mxu2 }
 0x184   : > { %10062 = vst [vmem:[#allocation73_spill] sm:$0xff] %v8298_v1  ;;  %v8300_v62 = vpop.f32.mrf.mxu3  ;;  %v8302_v24 = vpop.f32.mrf.mxu0 }
 0x185   : > { %10063 = vst [vmem:[#allocation74_spill] sm:$0xff] %v8300_v62  ;;  %v8304_v0 = vpop.f32.mrf.mxu1  ;;  %v7195_v62 = vld [vmem:[%s7856_s18 + $0x48] sm:$0xff] }
 0x186   : > { %10064 = vst [vmem:[#allocation75_spill] sm:$0xff] %v8302_v24 }
 0x187   : > { %10065 = vst [vmem:[#allocation76_spill] sm:$0xff] %v8304_v0 }
 0x18b   : > { %v8306_v6 = vpop.f32.mrf.mxu2 }
 0x18c   : > { %10066 = vst [vmem:[#allocation77_spill] sm:$0xff] %v8306_v6  ;;  %v8309_v51 = vpop.f32.mrf.mxu3  ;;  %v8311_v63 = vpop.f32.mrf.mxu0 }
 0x18d   : > { %10067 = vst [vmem:[#allocation78_spill] sm:$0xff] %v8309_v51  ;;  %v8313_v4 = vpop.f32.mrf.mxu1 }
 0x18f   : > { %5686 = vmatmul.msk.bf16.gmra.mxu0 %vm608_vm1, %v7194_v3  ;;  %5698 = vmatmul.msk.bf16.gmra.mxu1 %vm608_vm1, %v7194_v3 }
 0x190   : > { %5710 = vmatmul.msk.bf16.gmra.mxu2 %vm608_vm1, %v7194_v3 }
 0x191   : > { %5722 = vmatmul.msk.bf16.gmra.mxu3 %vm608_vm1, %v7194_v3 }
 0x193   : > { %v8319_v15 = vpop.f32.mrf.mxu2 }
 0x194   : > { %v8321_v0 = vpop.f32.mrf.mxu3  ;;  %v8323_v6 = vpop.f32.mrf.mxu0 }
 0x195   : > { %v8325_v51 = vpop.f32.mrf.mxu1 }
 0x19b   : > { %v8327_v24 = vpop.f32.mrf.mxu2 }
 0x19c   : > { %v8330_v1 = vpop.f32.mrf.mxu3  ;;  %v8332_v2 = vpop.f32.mrf.mxu0 }
 0x19d   : > { %v8334_v61 = vpop.f32.mrf.mxu1 }
 0x19f   : > { %5687 = vmatmul.msk.bf16.gmra.mxu0 %vm608_vm1, %v7195_v62  ;;  %5699 = vmatmul.msk.bf16.gmra.mxu1 %vm608_vm1, %v7195_v62 }
 0x1a0   : > { %5711 = vmatmul.msk.bf16.gmra.mxu2 %vm608_vm1, %v7195_v62 }
 0x1a1   : > { %5723 = vmatmul.msk.bf16.gmra.mxu3 %vm608_vm1, %v7195_v62  ;;  %v5992_v62 = vld [vmem:[%s9988_s1 + $0xe8] sm:$0xf] }
 0x1a2   : > { %v5993_v27 = vor.u32 %v7265_v36, %v5992_v62  ;;  %v5984_v36 = vld [vmem:[%s9988_s1 + $0xe0] sm:$0xf] }
 0x1a3   : > { %v8340_v3 = vpop.f32.mrf.mxu2 }
 0x1a4   : > { %v8342_v60 = vpop.f32.mrf.mxu3  ;;  %v8344_v58 = vpop.f32.mrf.mxu0  ;;  %v2077_v21 = vsel %vm645_vm0, %v5993_v27, 0 }
 0x1a5   : > { %v8346_v55 = vpop.f32.mrf.mxu1  ;;  %2226 = vmatpush.bf16.msrb.mxu2 %v2077_v21  ;;  %v5986_v21 = vld [vmem:[%s9988_s1 + $0xf0] sm:$0x30] }
 0x1ab   : > { %v8348_v53 = vpop.f32.mrf.mxu2 }
 0x1ac   : > { %v8351_v50 = vpop.f32.mrf.mxu3  ;;  %v8353_v49 = vpop.f32.mrf.mxu0 }
 0x1ad   : > { %v8355_v45 = vpop.f32.mrf.mxu1 }
 0x1af   : > { %5688 = vmatmul.msk.bf16.gmra.mxu0 %vm608_vm1, %v7196_v52  ;;  %5700 = vmatmul.msk.bf16.gmra.mxu1 %vm608_vm1, %v7196_v52 }
 0x1b0   : > { %5712 = vmatmul.msk.bf16.gmra.mxu2 %vm608_vm1, %v7196_v52 }
 0x1b1   : > { %5724 = vmatmul.msk.bf16.gmra.mxu3 %vm608_vm1, %v7196_v52  ;;  %v5997_v52 = vor.u32 %v7263_v28, %v5994_v26  ;;  %v7264_v26 = vld [vmem:[%s9988_s1 + $0xec] sm:$0x30]  ;;  %v7262_v28 = vld [vmem:[%s9988_s1 + $0xe4] sm:$0xf] }
 0x1b2   : > { %v5985_v62 = vor.u32 %v7264_v26, %v5984_v36  ;;  %v5989_v27 = vor.u32 %v7262_v28, %v5986_v21 }
 0x1b3   : > { %v8373_v25 = vpop.f32.mrf.mxu2  ;;  %v2080_v19 = vsel %vm645_vm0, %v5997_v52, 0 }
 0x1b4   : > { %v8375_v23 = vpop.f32.mrf.mxu3  ;;  %v8377_v22 = vpop.f32.mrf.mxu0  ;;  %2295 = vmatpush.bf16.msrb.mxu3 %v2080_v19  ;;  %v2071_v19 = vsel %vm645_vm0, %v5985_v62, 0  ;;  %v2074_v52 = vsel %vm645_vm0, %v5989_v27, 0 }
 0x1b5   : > { %v8380_v20 = vpop.f32.mrf.mxu1  ;;  %2088 = vmatpush.bf16.msrb.mxu0 %v2071_v19  ;;  %2157 = vmatpush.bf16.msrb.mxu1 %v2074_v52  ;;  %v7226_v19 = vld [vmem:[%s7856_s18 + $0x8] sm:$0xff] }
 0x1bb   : > { %v8397_v18 = vpop.f32.mrf.mxu2 }
 0x1bc   : > { %v8400_v16 = vpop.f32.mrf.mxu3  ;;  %v8402_v14 = vpop.f32.mrf.mxu0 }
 0x1bd   : > { %v8404_v36 = vpop.f32.mrf.mxu1 }
 0x1bf   : > { %5689 = vmatmul.msk.bf16.gmra.mxu0 %vm608_vm1, %v7197_v17  ;;  %5701 = vmatmul.msk.bf16.gmra.mxu1 %vm608_vm1, %v7197_v17 }
 0x1c0   : > { %5713 = vmatmul.msk.bf16.gmra.mxu2 %vm608_vm1, %v7197_v17 }
 0x1c1   : > { %5725 = vmatmul.msk.bf16.gmra.mxu3 %vm608_vm1, %v7197_v17 }
 0x1c3   : > { %v8410_v26 = vpop.f32.mrf.mxu2 }
 0x1c4   : > { %10068 = vst [vmem:[#allocation79_spill] sm:$0xff] %v8410_v26  ;;  %v8412_v28 = vpop.f32.mrf.mxu3  ;;  %v8414_v62 = vpop.f32.mrf.mxu0 }
 0x1c5   : > { %10069 = vst [vmem:[#allocation80_spill] sm:$0xff] %v8412_v28  ;;  %v8416_v21 = vpop.f32.mrf.mxu1 }
 0x1c6   : > { %10070 = vst [vmem:[#allocation81_spill] sm:$0xff] %v8414_v62 }
 0x1c7   : > { %10071 = vst [vmem:[#allocation82_spill] sm:$0xff] %v8416_v21 }
 0x1cb   : > { %v8418_v27 = vpop.f32.mrf.mxu2 }
 0x1cc   : > { %10072 = vst [vmem:[#allocation83_spill] sm:$0xff] %v8418_v27  ;;  %v8421_v52 = vpop.f32.mrf.mxu3  ;;  %v8423_v13 = vpop.f32.mrf.mxu0 }
 0x1cd   : > { %10073 = vst [vmem:[#allocation84_spill] sm:$0xff] %v8421_v52  ;;  %v8425_v12 = vpop.f32.mrf.mxu1 }
 0x1ce   : > { %10074 = vst [vmem:[#allocation85_spill] sm:$0xff] %v8423_v13 }
 0x1cf   : > { %10075 = vst [vmem:[#allocation86_spill] sm:$0xff] %v8425_v12  ;;  %5838 = vmatmul.msk.bf16.vlgmr.msra.gmra.mxu0 %vm608_vm1, %v7226_v19  ;;  %5850 = vmatmul.msk.bf16.vlgmr.msra.gmra.mxu1 %vm608_vm1, %v7226_v19  ;;  %v7227_v12 = vld [vmem:[%s7856_s18 + $0x10] sm:$0xff] }
 0x1d0   : > { %5862 = vmatmul.msk.bf16.vlgmr.msra.gmra.mxu2 %vm608_vm1, %v7226_v19 }
 0x1d1   : > { %5874 = vmatmul.msk.bf16.vlgmr.msra.gmra.mxu3 %vm608_vm1, %v7226_v19 }
 0x1d3   : > { %v8431_v17 = vpop.f32.mrf.mxu2 }
 0x1d4   : > { %10076 = vst [vmem:[#allocation87_spill] sm:$0xff] %v8431_v17  ;;  %v8433_v21 = vpop.f32.mrf.mxu3  ;;  %v8435_v27 = vpop.f32.mrf.mxu0 }
 0x1d5   : > { %10077 = vst [vmem:[#allocation88_spill] sm:$0xff] %v8433_v21  ;;  %v8437_v52 = vpop.f32.mrf.mxu1 }
 0x1d6   : > { %10078 = vst [vmem:[#allocation89_spill] sm:$0xff] %v8435_v27 }
 0x1d7   : > { %10079 = vst [vmem:[#allocation90_spill] sm:$0xff] %v8437_v52 }
 0x1db   : > { %v8439_v13 = vpop.f32.mrf.mxu2 }
 0x1dc   : > { %10080 = vst [vmem:[#allocation91_spill] sm:$0xff] %v8439_v13  ;;  %v8442_v62 = vpop.f32.mrf.mxu3  ;;  %v8444_v28 = vpop.f32.mrf.mxu0 }
 0x1dd   : > { %10081 = vst [vmem:[#allocation92_spill] sm:$0xff] %v8442_v62  ;;  %v8446_v11 = vpop.f32.mrf.mxu1 }
 0x1de   : > { %10082 = vst [vmem:[#allocation93_spill] sm:$0xff] %v8444_v28 }
 0x1df   : > { %10083 = vst [vmem:[#allocation94_spill] sm:$0xff] %v8446_v11  ;;  %5839 = vmatmul.msk.bf16.gmra.mxu0 %vm608_vm1, %v7227_v12  ;;  %5851 = vmatmul.msk.bf16.gmra.mxu1 %vm608_vm1, %v7227_v12  ;;  %v7228_v11 = vld [vmem:[%s7856_s18 + $0x18] sm:$0xff] }
 0x1e0   : > { %5863 = vmatmul.msk.bf16.gmra.mxu2 %vm608_vm1, %v7227_v12 }
 0x1e1   : > { %5875 = vmatmul.msk.bf16.gmra.mxu3 %vm608_vm1, %v7227_v12 }
 0x1e3   : > { %v8452_v19 = vpop.f32.mrf.mxu2 }
 0x1e4   : > { %10084 = vst [vmem:[#allocation95_spill] sm:$0xff] %v8452_v19  ;;  %v8454_v52 = vpop.f32.mrf.mxu3  ;;  %v8456_v13 = vpop.f32.mrf.mxu0 }
 0x1e5   : > { %10085 = vst [vmem:[#allocation96_spill] sm:$0xff] %v8454_v52  ;;  %v8458_v62 = vpop.f32.mrf.mxu1 }
 0x1e6   : > { %10086 = vst [vmem:[#allocation97_spill] sm:$0xff] %v8456_v13 }
 0x1e7   : > { %10087 = vst [vmem:[#allocation98_spill] sm:$0xff] %v8458_v62 }
 0x1eb   : > { %v8460_v28 = vpop.f32.mrf.mxu2 }
 0x1ec   : > { %10088 = vst [vmem:[#allocation99_spill] sm:$0xff] %v8460_v28  ;;  %v8463_v27 = vpop.f32.mrf.mxu3  ;;  %v8465_v21 = vpop.f32.mrf.mxu0 }
 0x1ed   : > { %10089 = vst [vmem:[#allocation100_spill] sm:$0xff] %v8463_v27  ;;  %v8467_v17 = vpop.f32.mrf.mxu1 }
 0x1ee   : > { %10090 = vst [vmem:[#allocation101_spill] sm:$0xff] %v8465_v21 }
 0x1ef   : > { %10091 = vst [vmem:[#allocation102_spill] sm:$0xff] %v8467_v17  ;;  %5840 = vmatmul.msk.bf16.gmra.mxu0 %vm608_vm1, %v7228_v11  ;;  %5852 = vmatmul.msk.bf16.gmra.mxu1 %vm608_vm1, %v7228_v11  ;;  %v7229_v17 = vld [vmem:[%s7856_s18 + $0x20] sm:$0xff] }
 0x1f0   : > { %5864 = vmatmul.msk.bf16.gmra.mxu2 %vm608_vm1, %v7228_v11 }
 0x1f1   : > { %5876 = vmatmul.msk.bf16.gmra.mxu3 %vm608_vm1, %v7228_v11 }
 0x1f3   : > { %v8473_v12 = vpop.f32.mrf.mxu2 }
 0x1f4   : > { %10092 = vst [vmem:[#allocation103_spill] sm:$0xff] %v8473_v12  ;;  %v8475_v62 = vpop.f32.mrf.mxu3  ;;  %v8477_v28 = vpop.f32.mrf.mxu0 }
 0x1f5   : > { %10093 = vst [vmem:[#allocation104_spill] sm:$0xff] %v8475_v62  ;;  %v8479_v27 = vpop.f32.mrf.mxu1 }
 0x1f6   : > { %10094 = vst [vmem:[#allocation105_spill] sm:$0xff] %v8477_v28 }
 0x1f7   : > { %10095 = vst [vmem:[#allocation106_spill] sm:$0xff] %v8479_v27 }
 0x1fb   : > { %v8481_v21 = vpop.f32.mrf.mxu2 }
 0x1fc   : > { %10096 = vst [vmem:[#allocation107_spill] sm:$0xff] %v8481_v21  ;;  %v8484_v13 = vpop.f32.mrf.mxu3  ;;  %v8486_v52 = vpop.f32.mrf.mxu0 }
 0x1fd   : > { %10097 = vst [vmem:[#allocation108_spill] sm:$0xff] %v8484_v13  ;;  %v8488_v19 = vpop.f32.mrf.mxu1 }
 0x1fe   : > { %10098 = vst [vmem:[#allocation109_spill] sm:$0xff] %v8486_v52  ;;  %v7230_v52 = vld [vmem:[%s7856_s18 + $0x28] sm:$0xff] }
 0x1ff   : > { %10099 = vst [vmem:[#allocation110_spill] sm:$0xff] %v8488_v19  ;;  %5841 = vmatmul.msk.bf16.gmra.mxu0 %vm608_vm1, %v7229_v17  ;;  %5853 = vmatmul.msk.bf16.gmra.mxu1 %vm608_vm1, %v7229_v17 }
 0x200   : > { %5865 = vmatmul.msk.bf16.gmra.mxu2 %vm608_vm1, %v7229_v17 }
 0x201   : > { %5877 = vmatmul.msk.bf16.gmra.mxu3 %vm608_vm1, %v7229_v17  ;;  %v5976_v17 = vld [vmem:[%s9988_s1 + $0xc8] sm:$0xf] }
 0x203   : > { %v8494_v11 = vpop.f32.mrf.mxu2 }
 0x204   : > { %10100 = vst [vmem:[#allocation111_spill] sm:$0xff] %v8494_v11  ;;  %v8496_v27 = vpop.f32.mrf.mxu3  ;;  %v8498_v21 = vpop.f32.mrf.mxu0 }
 0x205   : > { %10101 = vst [vmem:[#allocation112_spill] sm:$0xff] %v8496_v27  ;;  %v8500_v28 = vpop.f32.mrf.mxu1 }
 0x206   : > { %10102 = vst [vmem:[#allocation113_spill] sm:$0xff] %v8498_v21 }
 0x207   : > { %10103 = vst [vmem:[#allocation114_spill] sm:$0xff] %v8500_v28 }
 0x20b   : > { %v8502_v13 = vpop.f32.mrf.mxu2 }
 0x20c   : > { %10104 = vst [vmem:[#allocation115_spill] sm:$0xff] %v8502_v13  ;;  %v8505_v19 = vpop.f32.mrf.mxu3  ;;  %v8507_v62 = vpop.f32.mrf.mxu0  ;;  %v5978_v13 = vld [vmem:[%s9988_s1 + $0xd8] sm:$0xf0] }
 0x20d   : > { %10105 = vst [vmem:[#allocation116_spill] sm:$0xff] %v8505_v19  ;;  %v8509_v12 = vpop.f32.mrf.mxu1  ;;  %v7261_v19 = vld [vmem:[%s9988_s1 + $0xd4] sm:$0xf0] }
 0x20e   : > { %10106 = vst [vmem:[#allocation117_spill] sm:$0xff] %v8507_v62  ;;  %v5977_v62 = vor.u32 %v7261_v19, %v5976_v17  ;;  %v5968_v19 = vld [vmem:[%s9988_s1 + $0xc0] sm:$0xf]  ;;  %v7260_v17 = vld [vmem:[%s9988_s1 + $0xcc] sm:$0xf0] }
 0x20f   : > { %10107 = vst [vmem:[#allocation118_spill] sm:$0xff] %v8509_v12  ;;  %5842 = vmatmul.msk.bf16.gmra.mxu0 %vm608_vm1, %v7230_v52  ;;  %5854 = vmatmul.msk.bf16.gmra.mxu1 %vm608_vm1, %v7230_v52  ;;  %v7259_v12 = vld [vmem:[%s9988_s1 + $0xcc] sm:$0xf] }
 0x210   : > { %5866 = vmatmul.msk.bf16.gmra.mxu2 %vm608_vm1, %v7230_v52 }
 0x211   : > { %5878 = vmatmul.msk.bf16.gmra.mxu3 %vm608_vm1, %v7230_v52  ;;  %v5981_v52 = vor.u32 %v7259_v12, %v5978_v13  ;;  %2227 = vmatpush.bf16.msrb.mxu2 %v5977_v62  ;;  %v7258_v13 = vld [vmem:[%s9988_s1 + $0xc4] sm:$0xf]  ;;  %v5969_v12 = vor.u32 %v7260_v17, %v5968_v19  ;;  %v5970_v62 = vld [vmem:[%s9988_s1 + $0xd0] sm:$0xf0] }
 0x213   : > { %v8527_v28 = vpop.f32.mrf.mxu2  ;;  %2296 = vmatpush.bf16.msrb.mxu3 %v5981_v52  ;;  %2089 = vmatpush.bf16.msrb.mxu0 %v5969_v12 }
 0x214   : > { %10108 = vst [vmem:[#allocation119_spill] sm:$0xff] %v8527_v28  ;;  %v8529_v21 = vpop.f32.mrf.mxu3  ;;  %v8531_v27 = vpop.f32.mrf.mxu0 }
 0x215   : > { %10109 = vst [vmem:[#allocation120_spill] sm:$0xff] %v8529_v21  ;;  %v8533_v11 = vpop.f32.mrf.mxu1 }
 0x216   : > { %10110 = vst [vmem:[#allocation121_spill] sm:$0xff] %v8531_v27  ;;  %v5973_v27 = vor.u32 %v7258_v13, %v5970_v62  ;;  %v7232_v62 = vld [vmem:[%s7856_s18 + $0x38] sm:$0xff] }
 0x217   : > { %10111 = vst [vmem:[#allocation122_spill] sm:$0xff] %v8533_v11  ;;  %v7231_v11 = vld [vmem:[%s7856_s18 + $0x30] sm:$0xff] }
 0x218   : > { %2158 = vmatpush.bf16.msrb.mxu1 %v5973_v27 }
 0x21b   : > { %v8547_v52 = vpop.f32.mrf.mxu2 }
 0x21c   : > { %10112 = vst [vmem:[#allocation123_spill] sm:$0xff] %v8547_v52  ;;  %v8550_v21 = vpop.f32.mrf.mxu3  ;;  %v8552_v28 = vpop.f32.mrf.mxu0 }
 0x21d   : > { %10113 = vst [vmem:[#allocation124_spill] sm:$0xff] %v8550_v21  ;;  %v8554_v26 = vpop.f32.mrf.mxu1 }
 0x21e   : > { %10114 = vst [vmem:[#allocation125_spill] sm:$0xff] %v8552_v28 }
 0x21f   : > { %10115 = vst [vmem:[#allocation126_spill] sm:$0xff] %v8554_v26  ;;  %5843 = vmatmul.msk.bf16.gmra.mxu0 %vm608_vm1, %v7231_v11  ;;  %5855 = vmatmul.msk.bf16.gmra.mxu1 %vm608_vm1, %v7231_v11 }
 0x220   : > { %5867 = vmatmul.msk.bf16.gmra.mxu2 %vm608_vm1, %v7231_v11 }
 0x221   : > { %5879 = vmatmul.msk.bf16.gmra.mxu3 %vm608_vm1, %v7231_v11 }
 0x223   : > { %v8560_v19 = vpop.f32.mrf.mxu2 }
 0x224   : > { %10116 = vst [vmem:[#allocation127_spill] sm:$0xff] %v8560_v19  ;;  %v8562_v27 = vpop.f32.mrf.mxu3  ;;  %v8564_v17 = vpop.f32.mrf.mxu0 }
 0x225   : > { %10117 = vst [vmem:[#allocation128_spill] sm:$0xff] %v8562_v27  ;;  %v8566_v13 = vpop.f32.mrf.mxu1 }
 0x226   : > { %10118 = vst [vmem:[#allocation129_spill] sm:$0xff] %v8564_v17 }
 0x227   : > { %10119 = vst [vmem:[#allocation130_spill] sm:$0xff] %v8566_v13 }
 0x22b   : > { %v8568_v12 = vpop.f32.mrf.mxu2 }
 0x22c   : > { %10120 = vst [vmem:[#allocation131_spill] sm:$0xff] %v8568_v12  ;;  %v8571_v26 = vpop.f32.mrf.mxu3  ;;  %v8573_v28 = vpop.f32.mrf.mxu0 }
 0x22d   : > { %10121 = vst [vmem:[#allocation132_spill] sm:$0xff] %v8571_v26  ;;  %v8575_v21 = vpop.f32.mrf.mxu1 }
 0x22e   : > { %10122 = vst [vmem:[#allocation133_spill] sm:$0xff] %v8573_v28 }
 0x22f   : > { %10123 = vst [vmem:[#allocation134_spill] sm:$0xff] %v8575_v21  ;;  %5844 = vmatmul.msk.bf16.gmra.mxu0 %vm608_vm1, %v7232_v62  ;;  %5856 = vmatmul.msk.bf16.gmra.mxu1 %vm608_vm1, %v7232_v62  ;;  %v7233_v21 = vld [vmem:[%s7856_s18 + $0x40] sm:$0xff] }
 0x230   : > { %5868 = vmatmul.msk.bf16.gmra.mxu2 %vm608_vm1, %v7232_v62 }
 0x231   : > { %5880 = vmatmul.msk.bf16.gmra.mxu3 %vm608_vm1, %v7232_v62 }
 0x233   : > { %v8581_v11 = vpop.f32.mrf.mxu2 }
 0x234   : > { %10124 = vst [vmem:[#allocation135_spill] sm:$0xff] %v8581_v11  ;;  %v8583_v13 = vpop.f32.mrf.mxu3  ;;  %v8585_v12 = vpop.f32.mrf.mxu0 }
 0x235   : > { %10125 = vst [vmem:[#allocation136_spill] sm:$0xff] %v8583_v13  ;;  %v8587_v17 = vpop.f32.mrf.mxu1  ;;  %v1157_v13 = vadd.f32 %v8313_v4, %v8009_v30  ;;  %v1295_v30 = vadd.f32 %v8321_v0, %v8017_v32  ;;  %v1228_v32 = vadd.f32 %v8327_v24, %v8023_v35  ;;  %v7235_v0 = vld [vmem:[%s7856_s18 + $0x50] sm:$0xff] }
 0x236   : > { %10126 = vst [vmem:[#allocation137_spill] sm:$0xff] %v8585_v12 }
 0x237   : > { %10127 = vst [vmem:[#allocation138_spill] sm:$0xff] %v8587_v17 }
 0x23b   : > { %v8589_v28 = vpop.f32.mrf.mxu2 }
 0x23c   : > { %10128 = vst [vmem:[#allocation139_spill] sm:$0xff] %v8589_v28  ;;  %v8592_v26 = vpop.f32.mrf.mxu3  ;;  %v8594_v27 = vpop.f32.mrf.mxu0 }
 0x23d   : > { %10129 = vst [vmem:[#allocation140_spill] sm:$0xff] %v8592_v26  ;;  %v8596_v19 = vpop.f32.mrf.mxu1  ;;  %v7234_v26 = vld [vmem:[%s7856_s18 + $0x48] sm:$0xff] }
 0x23e   : > { %10130 = vst [vmem:[#allocation141_spill] sm:$0xff] %v8594_v27  ;;  %v1088_v27 = vadd.f32 %v8311_v63, %v8007_v29  ;;  %v1226_v29 = vadd.f32 %v8319_v15, %v8015_v31  ;;  %v1090_v63 = vadd.f32 %v8323_v6, %v8019_v33  ;;  %v1297_v33 = vadd.f32 %v8330_v1, %v8026_v37 }
 0x23f   : > { %10131 = vst [vmem:[#allocation142_spill] sm:$0xff] %v8596_v19  ;;  %5845 = vmatmul.msk.bf16.gmra.mxu0 %vm608_vm1, %v7233_v21  ;;  %5857 = vmatmul.msk.bf16.gmra.mxu1 %vm608_vm1, %v7233_v21  ;;  %v1231_v37 = vadd.f32 %v8340_v3, %v8036_v40 }
 0x240   : > { %5869 = vmatmul.msk.bf16.gmra.mxu2 %vm608_vm1, %v7233_v21 }
 0x241   : > { %5881 = vmatmul.msk.bf16.gmra.mxu3 %vm608_vm1, %v7233_v21 }
 0x243   : > { %v8602_v62 = vpop.f32.mrf.mxu2 }
 0x244   : > { %10132 = vst [vmem:[#allocation143_spill] sm:$0xff] %v8602_v62  ;;  %v8604_v17 = vpop.f32.mrf.mxu3  ;;  %v8606_v28 = vpop.f32.mrf.mxu0 }
 0x245   : > { %10133 = vst [vmem:[#allocation144_spill] sm:$0xff] %v8604_v17  ;;  %v8608_v12 = vpop.f32.mrf.mxu1 }
 0x24b   : > { %v8612_v19 = vpop.f32.mrf.mxu2 }
 0x24c   : > { %v8617_v11 = vpop.f32.mrf.mxu3  ;;  %v1541_v21 = vpop.f32.mrf.mxu0 }
 0x24d   : > { %v8619_v52 = vadd.f32 %v1541_v21, %v1088_v27  ;;  %v1610_v62 = vpop.f32.mrf.mxu1  ;;  %v1159_v27 = vadd.f32 %v8325_v51, %v8021_v34  ;;  %v1093_v34 = vadd.f32 %v8332_v2, %v8028_v38  ;;  %v1162_v51 = vadd.f32 %v8334_v61, %v8030_v39 }
 0x24e   : > { %v8621_v17 = vadd.f32 %v1610_v62, %v1157_v13  ;;  %v1300_v38 = vadd.f32 %v8342_v60, %v8038_v41  ;;  %v1095_v39 = vadd.f32 %v8344_v58, %v8040_v42  ;;  %v1164_v2 = vadd.f32 %v8346_v55, %v8042_v43  ;;  %v7236_v58 = vld [vmem:[%s7856_s18 + $0x58] sm:$0xff] }
 0x24f   : > { %5846 = vmatmul.msk.bf16.gmra.mxu0 %vm608_vm1, %v7234_v26  ;;  %5858 = vmatmul.msk.bf16.gmra.mxu1 %vm608_vm1, %v7234_v26  ;;  %v1233_v41 = vadd.f32 %v8348_v53, %v8044_v44  ;;  %v1302_v42 = vadd.f32 %v8351_v50, %v8047_v46  ;;  %v1098_v43 = vadd.f32 %v8353_v49, %v8049_v47  ;;  %v6152_v46 = vld [vmem:[%s9988_s1 + $0x128] sm:$0xf]  ;;  %v7285_v47 = vld [vmem:[%s9988_s1 + $0x134] sm:$0x30]  ;;  %v6154_v50 = vld [vmem:[%s9988_s1 + $0x138] sm:$0x30] }
 0x250   : > { %10134 = vst [vmem:[#allocation145_spill] sm:$0xff] %v8621_v17  ;;  %5870 = vmatmul.msk.bf16.gmra.mxu2 %vm608_vm1, %v7234_v26  ;;  %v1167_v60 = vadd.f32 %v8355_v45, %v8051_v48  ;;  %v7283_v48 = vld [vmem:[%s9988_s1 + $0x12c] sm:$0xf]  ;;  %v1236_v45 = vadd.f32 %v8373_v25, %v8069_v54  ;;  %v6153_v49 = vor.u32 %v7285_v47, %v6152_v46 }
 0x251   : > { %5882 = vmatmul.msk.bf16.gmra.mxu3 %vm608_vm1, %v7234_v26 }
 0x252   : > { %v2627_v25 = vsel %vm645_vm0, %v6153_v49, 0 }
 0x253   : > { %v1679_v4 = vpop.f32.mrf.mxu2  ;;  %2776 = vmatpush.bf16.msra.mxu2 %v2627_v25 }
 0x254   : > { %v8635_v13 = vadd.f32 %v1679_v4, %v1226_v29  ;;  %v1748_v62 = vpop.f32.mrf.mxu3  ;;  %v1543_v21 = vpop.f32.mrf.mxu0 }
 0x255   : > { %v8637_v17 = vadd.f32 %v1748_v62, %v1295_v30  ;;  %v8639_v26 = vadd.f32 %v1543_v21, %v1090_v63  ;;  %v1612_v31 = vpop.f32.mrf.mxu1 }
 0x256   : > { %v8641_v15 = vadd.f32 %v1612_v31, %v1159_v27 }
 0x25b   : > { %v1681_v6 = vpop.f32.mrf.mxu2 }
 0x25c   : > { %v8652_v29 = vadd.f32 %v1681_v6, %v1228_v32  ;;  %v1750_v30 = vpop.f32.mrf.mxu3  ;;  %v1546_v63 = vpop.f32.mrf.mxu0 }
 0x25d   : > { %v8654_v4 = vadd.f32 %v1750_v30, %v1297_v33  ;;  %v8656_v27 = vadd.f32 %v1546_v63, %v1093_v34  ;;  %v1615_v35 = vpop.f32.mrf.mxu1  ;;  %v1305_v30 = vadd.f32 %v8375_v23, %v8071_v56  ;;  %v1100_v63 = vadd.f32 %v8377_v22, %v8073_v57  ;;  %v7282_v22 = vld [vmem:[%s9988_s1 + $0x124] sm:$0xf] }
 0x25e   : > { %v8658_v24 = vadd.f32 %v1615_v35, %v1162_v51 }
 0x25f   : > { %5847 = vmatmul.msk.bf16.gmra.mxu0 %vm608_vm1, %v7235_v0  ;;  %5859 = vmatmul.msk.bf16.gmra.mxu1 %vm608_vm1, %v7235_v0 }
 0x260   : > { %5871 = vmatmul.msk.bf16.gmra.mxu2 %vm608_vm1, %v7235_v0 }
 0x261   : > { %5883 = vmatmul.msk.bf16.gmra.mxu3 %vm608_vm1, %v7235_v0 }
 0x263   : > { %v1684_v61 = vpop.f32.mrf.mxu2 }
 0x264   : > { %v8672_v1 = vadd.f32 %v1684_v61, %v1231_v37  ;;  %v1753_v62 = vpop.f32.mrf.mxu3  ;;  %v1548_v21 = vpop.f32.mrf.mxu0  ;;  %v6157_v37 = vor.u32 %v7283_v48, %v6154_v50  ;;  %v10139_v50 = vld [vmem:[#allocation81_spill] sm:$0xff] }
 0x265   : > { %v8674_v31 = vadd.f32 %v1753_v62, %v1300_v38  ;;  %v8676_v32 = vadd.f32 %v1548_v21, %v1095_v39  ;;  %v1617_v40 = vpop.f32.mrf.mxu1  ;;  %v1169_v38 = vadd.f32 %v8380_v20, %v8076_v59  ;;  %v6144_v59 = vld [vmem:[%s9988_s1 + $0x120] sm:$0xf]  ;;  %v7284_v20 = vld [vmem:[%s9988_s1 + $0x12c] sm:$0x30] }
 0x266   : > { %v8678_v3 = vadd.f32 %v1617_v40, %v1164_v2  ;;  %v2630_v56 = vsel %vm645_vm0, %v6157_v37, 0  ;;  %v6145_v23 = vor.u32 %v7284_v20, %v6144_v59  ;;  %v6146_v40 = vld [vmem:[%s9988_s1 + $0x130] sm:$0x30]  ;;  %v10142_v20 = vld [vmem:[#allocation13_spill] sm:$0xff] }
 0x267   : > { %2845 = vmatpush.bf16.msra.mxu3 %v2630_v56  ;;  %v10141_v37 = vld [vmem:[#allocation82_spill] sm:$0xff] }
 0x26b   : > { %v1686_v55 = vpop.f32.mrf.mxu2 }
 0x26c   : > { %v8689_v33 = vadd.f32 %v1686_v55, %v1233_v41  ;;  %v1755_v34 = vpop.f32.mrf.mxu3  ;;  %v1551_v6 = vpop.f32.mrf.mxu0  ;;  %v6149_v41 = vor.u32 %v7282_v22, %v6146_v40  ;;  %v10143_v22 = vld [vmem:[#allocation83_spill] sm:$0xff]  ;;  %v10144_v40 = vld [vmem:[#allocation14_spill] sm:$0xff] }
 0x26d   : > { %v8691_v0 = vadd.f32 %v1755_v34, %v1302_v42  ;;  %v8693_v51 = vadd.f32 %v1551_v6, %v1098_v43  ;;  %v1620_v44 = vpop.f32.mrf.mxu1  ;;  %v2621_v42 = vsel %vm645_vm0, %v6145_v23, 0  ;;  %v1238_v43 = vadd.f32 %v8397_v18, %v8093_v5  ;;  %v7237_v6 = vld [vmem:[%s7856_s18 + $0x60] sm:$0xff] }
 0x26e   : > { %v8695_v53 = vadd.f32 %v1620_v44, %v1167_v60  ;;  %2638 = vmatpush.bf16.msra.mxu0 %v2621_v42  ;;  %v2624_v55 = vsel %vm645_vm0, %v6149_v41, 0  ;;  %v1103_v60 = vadd.f32 %v8402_v14, %v8098_v8  ;;  %v1172_v44 = vadd.f32 %v8404_v36, %v8100_v9  ;;  %v10136_v9 = vld [vmem:[#allocation10_spill] sm:$0xff]  ;;  %v10137_v14 = vld [vmem:[#allocation80_spill] sm:$0xff]  ;;  %v10138_v36 = vld [vmem:[#allocation11_spill] sm:$0xff] }
 0x26f   : > { %5848 = vmatmul.msk.bf16.gmra.mxu0 %vm608_vm1, %v7236_v58  ;;  %5860 = vmatmul.msk.bf16.gmra.mxu1 %vm608_vm1, %v7236_v58  ;;  %v1243_v23 = vadd.f32 %v10143_v22, %v10142_v20  ;;  %v10145_v41 = vld [vmem:[#allocation84_spill] sm:$0xff]  ;;  %v10157_v22 = vld [vmem:[#allocation90_spill] sm:$0xff] }
 0x270   : > { %5872 = vmatmul.msk.bf16.gmra.mxu2 %vm608_vm1, %v7236_v58  ;;  %2707 = vmatpush.bf16.msra.mxu1 %v2624_v55  ;;  %v1312_v42 = vadd.f32 %v10145_v41, %v10144_v40  ;;  %v10147_v55 = vld [vmem:[#allocation85_spill] sm:$0xff]  ;;  %v10156_v20 = vld [vmem:[#allocation20_spill] sm:$0xff] }
 0x271   : > { %5884 = vmatmul.msk.bf16.gmra.mxu3 %vm608_vm1, %v7236_v58  ;;  %v1307_v58 = vadd.f32 %v8400_v16, %v8096_v7  ;;  %v10135_v7 = vld [vmem:[#allocation79_spill] sm:$0xff]  ;;  %v1310_v16 = vadd.f32 %v10137_v14, %v10136_v9 }
 0x272   : > { %v1241_v8 = vadd.f32 %v10135_v7, %v8106_v10 }
 0x273   : > { %v1689_v35 = vpop.f32.mrf.mxu2 }
 0x274   : > { %v8721_v39 = vadd.f32 %v1689_v35, %v1236_v45  ;;  %v1758_v61 = vpop.f32.mrf.mxu3  ;;  %v1553_v54 = vpop.f32.mrf.mxu0  ;;  %v10140_v35 = vld [vmem:[#allocation12_spill] sm:$0xff] }
 0x275   : > { %v8724_v2 = vadd.f32 %v1758_v61, %v1305_v30  ;;  %v8726_v62 = vadd.f32 %v1553_v54, %v1100_v63  ;;  %v1622_v21 = vpop.f32.mrf.mxu1  ;;  %v1105_v30 = vadd.f32 %v10139_v50, %v10138_v36  ;;  %v10150_v36 = vld [vmem:[#allocation17_spill] sm:$0xff]  ;;  %v10151_v50 = vld [vmem:[#allocation87_spill] sm:$0xff] }
 0x276   : > { %v8729_v57 = vadd.f32 %v1622_v21, %v1169_v38  ;;  %v1174_v38 = vadd.f32 %v10141_v37, %v10140_v35  ;;  %v10153_v35 = vld [vmem:[#allocation88_spill] sm:$0xff] }
 0x27b   : > { %v1691_v34 = vpop.f32.mrf.mxu2 }
 0x27c   : > { %v8754_v46 = vadd.f32 %v1691_v34, %v1238_v43  ;;  %v1760_v47 = vpop.f32.mrf.mxu3  ;;  %v1556_v48 = vpop.f32.mrf.mxu0  ;;  %v10146_v43 = vld [vmem:[#allocation15_spill] sm:$0xff] }
 0x27d   : > { %v8756_v5 = vadd.f32 %v1760_v47, %v1307_v58  ;;  %v8758_v18 = vadd.f32 %v1556_v48, %v1103_v60  ;;  %v1625_v45 = vpop.f32.mrf.mxu1  ;;  %v1108_v58 = vadd.f32 %v10147_v55, %v10146_v43  ;;  %v7246_v34 = vld [vmem:[%s7856_s18 + $0xc] sm:$0xff] }
 0x27e   : > { %v8760_v49 = vadd.f32 %v1625_v45, %v1172_v44  ;;  %v10149_v44 = vld [vmem:[#allocation86_spill] sm:$0xff] }
 0x27f   : > { %5849 = vmatmul.msk.bf16.gmra.mxu0 %vm608_vm1, %v7237_v6  ;;  %5861 = vmatmul.msk.bf16.gmra.mxu1 %vm608_vm1, %v7237_v6 }
 0x280   : > { %5873 = vmatmul.msk.bf16.gmra.mxu2 %vm608_vm1, %v7237_v6 }
 0x281   : > { %5885 = vmatmul.msk.bf16.gmra.mxu3 %vm608_vm1, %v7237_v6  ;;  %v10148_v6 = vld [vmem:[#allocation16_spill] sm:$0xff] }
 0x282   : > { %v1177_v47 = vadd.f32 %v10149_v44, %v10148_v6  ;;  %v10159_v6 = vld [vmem:[#allocation91_spill] sm:$0xff] }
 0x283   : > { %v1694_v63 = vpop.f32.mrf.mxu2 }
 0x284   : > { %v8774_v61 = vadd.f32 %v1694_v63, %v1241_v8  ;;  %v1763_v54 = vpop.f32.mrf.mxu3  ;;  %v1558_v25 = vpop.f32.mrf.mxu0  ;;  %v10152_v63 = vld [vmem:[#allocation18_spill] sm:$0xff] }
 0x285   : > { %v8776_v21 = vadd.f32 %v1763_v54, %v1310_v16  ;;  %v8778_v56 = vadd.f32 %v1558_v25, %v1105_v30  ;;  %v1627_v10 = vpop.f32.mrf.mxu1  ;;  %v1246_v30 = vadd.f32 %v10151_v50, %v10150_v36  ;;  %v1315_v37 = vadd.f32 %v10153_v35, %v10152_v63  ;;  %v10155_v54 = vld [vmem:[#allocation89_spill] sm:$0xff]  ;;  %v10164_v35 = vld [vmem:[#allocation24_spill] sm:$0xff] }
 0x286   : > { %v8780_v59 = vadd.f32 %v1627_v10, %v1174_v38  ;;  %v10154_v38 = vld [vmem:[#allocation19_spill] sm:$0xff]  ;;  %v10163_v36 = vld [vmem:[#allocation93_spill] sm:$0xff] }
 0x287   : > { %v1110_v25 = vadd.f32 %v10155_v54, %v10154_v38  ;;  %v7247_v63 = vld [vmem:[%s7856_s18 + $0x14] sm:$0xff] }
 0x288   : > { %v10165_v38 = vld [vmem:[#allocation94_spill] sm:$0xff] }
 0x28b   : > { %v1696_v60 = vpop.f32.mrf.mxu2 }
 0x28c   : > { %v8791_v48 = vadd.f32 %v1696_v60, %v1243_v23  ;;  %v1765_v45 = vpop.f32.mrf.mxu3  ;;  %v1561_v7 = vpop.f32.mrf.mxu0  ;;  %v1179_v23 = vadd.f32 %v10157_v22, %v10156_v20 }
 0x28d   : > { %v8793_v8 = vadd.f32 %v1765_v45, %v1312_v42  ;;  %v8795_v9 = vadd.f32 %v1561_v7, %v1108_v58  ;;  %v1630_v14 = vpop.f32.mrf.mxu1  ;;  %v10161_v45 = vld [vmem:[#allocation92_spill] sm:$0xff] }
 0x28e   : > { %v8797_v16 = vadd.f32 %v1630_v14, %v1177_v47  ;;  %v10160_v47 = vld [vmem:[#allocation22_spill] sm:$0xff]  ;;  %v10162_v14 = vld [vmem:[#allocation23_spill] sm:$0xff] }
 0x28f   : > { %5998 = vmatmul.msk.bf16.vlgmr.msrb.gmra.mxu0 %vm608_vm1, %v7246_v34  ;;  %6010 = vmatmul.msk.bf16.vlgmr.msrb.gmra.mxu1 %vm608_vm1, %v7246_v34  ;;  %v1317_v7 = vadd.f32 %v10161_v45, %v10160_v47  ;;  %v1113_v50 = vadd.f32 %v10163_v36, %v10162_v14  ;;  %v10173_v45 = vld [vmem:[#allocation27_spill] sm:$0xff] }
 0x290   : > { %6022 = vmatmul.msk.bf16.vlgmr.msrb.gmra.mxu2 %vm608_vm1, %v7246_v34 }
 0x291   : > { %6034 = vmatmul.msk.bf16.vlgmr.msrb.gmra.mxu3 %vm608_vm1, %v7246_v34  ;;  %v10158_v34 = vld [vmem:[#allocation21_spill] sm:$0xff] }
 0x292   : > { %v1248_v44 = vadd.f32 %v10159_v6, %v10158_v34  ;;  %v10171_v6 = vld [vmem:[#allocation26_spill] sm:$0xff] }
 0x293   : > { %v1699_v10 = vpop.f32.mrf.mxu2 }
 0x294   : > { %v8811_v40 = vadd.f32 %v1699_v10, %v1246_v30  ;;  %v1768_v41 = vpop.f32.mrf.mxu3  ;;  %v1563_v42 = vpop.f32.mrf.mxu0 }
 0x295   : > { %v8813_v43 = vadd.f32 %v1768_v41, %v1315_v37  ;;  %v8815_v55 = vadd.f32 %v1563_v42, %v1110_v25  ;;  %v1632_v58 = vpop.f32.mrf.mxu1  ;;  %v1182_v37 = vadd.f32 %v10165_v38, %v10164_v35  ;;  %v10169_v42 = vld [vmem:[#allocation25_spill] sm:$0xff] }
 0x296   : > { %v8817_v60 = vadd.f32 %v1632_v58, %v1179_v23  ;;  %v10170_v58 = vld [vmem:[#allocation95_spill] sm:$0xff] }
 0x297   : > { %v1251_v34 = vadd.f32 %v10170_v58, %v10169_v42  ;;  %v10181_v58 = vld [vmem:[#allocation29_spill] sm:$0xff] }
 0x29b   : > { %v1701_v30 = vpop.f32.mrf.mxu2 }
 0x29c   : > { %v8828_v54 = vadd.f32 %v1701_v30, %v1248_v44  ;;  %v1770_v25 = vpop.f32.mrf.mxu3  ;;  %v1566_v10 = vpop.f32.mrf.mxu0  ;;  %v10172_v44 = vld [vmem:[#allocation96_spill] sm:$0xff]  ;;  %v10176_v30 = vld [vmem:[#allocation98_spill] sm:$0xff] }
 0x29d   : > { %v8830_v20 = vadd.f32 %v1770_v25, %v1317_v7  ;;  %v8832_v22 = vadd.f32 %v1566_v10, %v1113_v50  ;;  %v1635_v23 = vpop.f32.mrf.mxu1  ;;  %v1320_v47 = vadd.f32 %v10172_v44, %v10171_v6  ;;  %v10174_v7 = vld [vmem:[#allocation97_spill] sm:$0xff]  ;;  %v10175_v50 = vld [vmem:[#allocation28_spill] sm:$0xff]  ;;  %v10182_v6 = vld [vmem:[#allocation99_spill] sm:$0xff] }
 0x29e   : > { %v8834_v41 = vadd.f32 %v1635_v23, %v1182_v37  ;;  %v1115_v14 = vadd.f32 %v10174_v7, %v10173_v45  ;;  %v1184_v35 = vadd.f32 %v10176_v30, %v10175_v50  ;;  %v1253_v44 = vadd.f32 %v10182_v6, %v10181_v58  ;;  %v10184_v45 = vld [vmem:[#allocation100_spill] sm:$0xff] }
 0x29f   : > { %10166 = vst [vmem:[#allocation79_spill] sm:$0xff] %v8830_v20  ;;  %5999 = vmatmul.msk.bf16.gmra.mxu0 %vm608_vm1, %v7247_v63  ;;  %6011 = vmatmul.msk.bf16.gmra.mxu1 %vm608_vm1, %v7247_v63  ;;  %v10186_v20 = vld [vmem:[#allocation101_spill] sm:$0xff]  ;;  %v10187_v30 = vld [vmem:[#allocation32_spill] sm:$0xff] }
 0x2a0   : > { %10167 = vst [vmem:[#allocation10_spill] sm:$0xff] %v8832_v22  ;;  %6023 = vmatmul.msk.bf16.gmra.mxu2 %vm608_vm1, %v7247_v63  ;;  %v10185_v22 = vld [vmem:[#allocation31_spill] sm:$0xff] }
 0x2a1   : > { %10168 = vst [vmem:[#allocation80_spill] sm:$0xff] %v8834_v41  ;;  %6035 = vmatmul.msk.bf16.gmra.mxu3 %vm608_vm1, %v7247_v63  ;;  %v10183_v41 = vld [vmem:[#allocation30_spill] sm:$0xff]  ;;  %v1118_v50 = vadd.f32 %v10186_v20, %v10185_v22  ;;  %v10193_v20 = vld [vmem:[#allocation33_spill] sm:$0xff]  ;;  %v10194_v22 = vld [vmem:[#allocation103_spill] sm:$0xff] }
 0x2a2   : > { %v1322_v7 = vadd.f32 %v10184_v45, %v10183_v41  ;;  %v1256_v41 = vadd.f32 %v10194_v22, %v10193_v20 }
 0x2a3   : > { %v1704_v36 = vpop.f32.mrf.mxu2 }
 0x2a4   : > { %v8848_v38 = vadd.f32 %v1704_v36, %v1251_v34  ;;  %v1773_v37 = vpop.f32.mrf.mxu3  ;;  %v1568_v25 = vpop.f32.mrf.mxu0  ;;  %v7248_v36 = vld [vmem:[%s7856_s18 + $0x1c] sm:$0xff] }
 0x2a5   : > { %v8850_v10 = vadd.f32 %v1773_v37, %v1320_v47  ;;  %v8852_v63 = vadd.f32 %v1568_v25, %v1115_v14  ;;  %v1637_v23 = vpop.f32.mrf.mxu1 }
 0x2a6   : > { %10177 = vst [vmem:[#allocation11_spill] sm:$0xff] %v8848_v38  ;;  %v8854_v42 = vadd.f32 %v1637_v23, %v1184_v35  ;;  %v10188_v38 = vld [vmem:[#allocation102_spill] sm:$0xff] }
 0x2a7   : > { %10178 = vst [vmem:[#allocation81_spill] sm:$0xff] %v8850_v10  ;;  %v1187_v47 = vadd.f32 %v10188_v38, %v10187_v30  ;;  %v10195_v38 = vld [vmem:[#allocation34_spill] sm:$0xff]  ;;  %v10210_v10 = vld [vmem:[#allocation109_spill] sm:$0xff] }
 0x2a8   : > { %10179 = vst [vmem:[#allocation12_spill] sm:$0xff] %v8852_v63  ;;  %v10209_v63 = vld [vmem:[#allocation39_spill] sm:$0xff] }
 0x2a9   : > { %10180 = vst [vmem:[#allocation82_spill] sm:$0xff] %v8854_v42  ;;  %v10207_v42 = vld [vmem:[#allocation38_spill] sm:$0xff] }
 0x2ab   : > { %v1706_v34 = vpop.f32.mrf.mxu2 }
 0x2ac   : > { %v8865_v37 = vadd.f32 %v1706_v34, %v1253_v44  ;;  %v1775_v14 = vpop.f32.mrf.mxu3  ;;  %v1571_v25 = vpop.f32.mrf.mxu0  ;;  %v10196_v44 = vld [vmem:[#allocation104_spill] sm:$0xff] }
 0x2ad   : > { %v8867_v35 = vadd.f32 %v1775_v14, %v1322_v7  ;;  %v8869_v23 = vadd.f32 %v1571_v25, %v1118_v50  ;;  %v1640_v58 = vpop.f32.mrf.mxu1  ;;  %v1325_v45 = vadd.f32 %v10196_v44, %v10195_v38  ;;  %v10197_v7 = vld [vmem:[#allocation35_spill] sm:$0xff]  ;;  %v10198_v50 = vld [vmem:[#allocation105_spill] sm:$0xff]  ;;  %v10200_v14 = vld [vmem:[#allocation106_spill] sm:$0xff] }
 0x2ae   : > { %10189 = vst [vmem:[#allocation13_spill] sm:$0xff] %v8865_v37  ;;  %v8871_v6 = vadd.f32 %v1640_v58, %v1187_v47  ;;  %v1120_v34 = vadd.f32 %v10198_v50, %v10197_v7  ;;  %v10199_v47 = vld [vmem:[#allocation36_spill] sm:$0xff]  ;;  %v10205_v37 = vld [vmem:[#allocation37_spill] sm:$0xff]  ;;  %v10206_v38 = vld [vmem:[#allocation107_spill] sm:$0xff] }
 0x2af   : > { %10190 = vst [vmem:[#allocation83_spill] sm:$0xff] %v8867_v35  ;;  %6000 = vmatmul.msk.bf16.gmra.mxu0 %vm608_vm1, %v7248_v36  ;;  %6012 = vmatmul.msk.bf16.gmra.mxu1 %vm608_vm1, %v7248_v36  ;;  %v1189_v25 = vadd.f32 %v10200_v14, %v10199_v47  ;;  %v1258_v44 = vadd.f32 %v10206_v38, %v10205_v37  ;;  %v10208_v7 = vld [vmem:[#allocation108_spill] sm:$0xff] }
 0x2b0   : > { %10191 = vst [vmem:[#allocation14_spill] sm:$0xff] %v8869_v23  ;;  %6024 = vmatmul.msk.bf16.gmra.mxu2 %vm608_vm1, %v7248_v36  ;;  %v1327_v50 = vadd.f32 %v10208_v7, %v10207_v42  ;;  %v1123_v47 = vadd.f32 %v10210_v10, %v10209_v63  ;;  %v10211_v14 = vld [vmem:[#allocation40_spill] sm:$0xff]  ;;  %v10217_v10 = vld [vmem:[#allocation41_spill] sm:$0xff]  ;;  %v10218_v63 = vld [vmem:[#allocation111_spill] sm:$0xff] }
 0x2b1   : > { %10192 = vst [vmem:[#allocation84_spill] sm:$0xff] %v8871_v6  ;;  %6036 = vmatmul.msk.bf16.gmra.mxu3 %vm608_vm1, %v7248_v36  ;;  %v1261_v42 = vadd.f32 %v10218_v63, %v10217_v10 }
 0x2b3   : > { %v1709_v30 = vpop.f32.mrf.mxu2 }
 0x2b4   : > { %v8885_v58 = vadd.f32 %v1709_v30, %v1256_v41  ;;  %v1778_v6 = vpop.f32.mrf.mxu3  ;;  %v1573_v23 = vpop.f32.mrf.mxu0  ;;  %v7249_v30 = vld [vmem:[%s7856_s18 + $0x24] sm:$0xff] }
 0x2b5   : > { %v8887_v35 = vadd.f32 %v1778_v6, %v1325_v45  ;;  %v8889_v36 = vadd.f32 %v1573_v23, %v1120_v34  ;;  %v1642_v20 = vpop.f32.mrf.mxu1 }
 0x2b6   : > { %10201 = vst [vmem:[#allocation15_spill] sm:$0xff] %v8885_v58  ;;  %v8891_v22 = vadd.f32 %v1642_v20, %v1189_v25  ;;  %v10212_v58 = vld [vmem:[#allocation110_spill] sm:$0xff] }
 0x2b7   : > { %10202 = vst [vmem:[#allocation85_spill] sm:$0xff] %v8887_v35  ;;  %v1192_v6 = vadd.f32 %v10212_v58, %v10211_v14  ;;  %v10219_v58 = vld [vmem:[#allocation42_spill] sm:$0xff]  ;;  %v10234_v35 = vld [vmem:[#allocation117_spill] sm:$0xff] }
 0x2b8   : > { %10203 = vst [vmem:[#allocation16_spill] sm:$0xff] %v8889_v36  ;;  %v10233_v36 = vld [vmem:[#allocation47_spill] sm:$0xff] }
 0x2b9   : > { %10204 = vst [vmem:[#allocation86_spill] sm:$0xff] %v8891_v22  ;;  %v10231_v22 = vld [vmem:[#allocation46_spill] sm:$0xff] }
 0x2bb   : > { %v1711_v41 = vpop.f32.mrf.mxu2 }
 0x2bc   : > { %v8902_v45 = vadd.f32 %v1711_v41, %v1258_v44  ;;  %v1780_v23 = vpop.f32.mrf.mxu3  ;;  %v1576_v34 = vpop.f32.mrf.mxu0  ;;  %v10220_v44 = vld [vmem:[#allocation112_spill] sm:$0xff] }
 0x2bd   : > { %v8904_v25 = vadd.f32 %v1780_v23, %v1327_v50  ;;  %v8906_v20 = vadd.f32 %v1576_v34, %v1123_v47  ;;  %v1645_v37 = vpop.f32.mrf.mxu1  ;;  %v1330_v7 = vadd.f32 %v10220_v44, %v10219_v58  ;;  %v10221_v50 = vld [vmem:[#allocation43_spill] sm:$0xff]  ;;  %v10222_v47 = vld [vmem:[#allocation113_spill] sm:$0xff]  ;;  %v10224_v23 = vld [vmem:[#allocation114_spill] sm:$0xff] }
 0x2be   : > { %10213 = vst [vmem:[#allocation17_spill] sm:$0xff] %v8902_v45  ;;  %v8908_v38 = vadd.f32 %v1645_v37, %v1192_v6  ;;  %v1125_v41 = vadd.f32 %v10222_v47, %v10221_v50  ;;  %v10223_v6 = vld [vmem:[#allocation44_spill] sm:$0xff]  ;;  %v10229_v45 = vld [vmem:[#allocation45_spill] sm:$0xff]  ;;  %v10230_v58 = vld [vmem:[#allocation115_spill] sm:$0xff] }
 0x2bf   : > { %10214 = vst [vmem:[#allocation87_spill] sm:$0xff] %v8904_v25  ;;  %6001 = vmatmul.msk.bf16.gmra.mxu0 %vm608_vm1, %v7249_v30  ;;  %6013 = vmatmul.msk.bf16.gmra.mxu1 %vm608_vm1, %v7249_v30  ;;  %v1194_v34 = vadd.f32 %v10224_v23, %v10223_v6  ;;  %v1263_v44 = vadd.f32 %v10230_v58, %v10229_v45  ;;  %v10232_v50 = vld [vmem:[#allocation116_spill] sm:$0xff] }
 0x2c0   : > { %10215 = vst [vmem:[#allocation18_spill] sm:$0xff] %v8906_v20  ;;  %6025 = vmatmul.msk.bf16.gmra.mxu2 %vm608_vm1, %v7249_v30  ;;  %v1332_v47 = vadd.f32 %v10232_v50, %v10231_v22  ;;  %v1128_v6 = vadd.f32 %v10234_v35, %v10233_v36  ;;  %v10235_v23 = vld [vmem:[#allocation48_spill] sm:$0xff]  ;;  %v6136_v35 = vld [vmem:[%s9988_s1 + $0x108] sm:$0xf]  ;;  %v7281_v36 = vld [vmem:[%s9988_s1 + $0x114] sm:$0xf0] }
 0x2c1   : > { %10216 = vst [vmem:[#allocation88_spill] sm:$0xff] %v8908_v38  ;;  %6037 = vmatmul.msk.bf16.gmra.mxu3 %vm608_vm1, %v7249_v30  ;;  %v7279_v22 = vld [vmem:[%s9988_s1 + $0x10c] sm:$0xf] }
 0x2c3   : > { %v1714_v14 = vpop.f32.mrf.mxu2 }
 0x2c4   : > { %v8922_v37 = vadd.f32 %v1714_v14, %v1261_v42  ;;  %v1783_v38 = vpop.f32.mrf.mxu3  ;;  %v1578_v20 = vpop.f32.mrf.mxu0  ;;  %v7250_v14 = vld [vmem:[%s7856_s18 + $0x2c] sm:$0xff] }
 0x2c5   : > { %v8924_v25 = vadd.f32 %v1783_v38, %v1330_v7  ;;  %v8926_v30 = vadd.f32 %v1578_v20, %v1125_v41  ;;  %v1647_v10 = vpop.f32.mrf.mxu1 }
 0x2c6   : > { %10225 = vst [vmem:[#allocation19_spill] sm:$0xff] %v8922_v37  ;;  %v8928_v63 = vadd.f32 %v1647_v10, %v1194_v34  ;;  %v10236_v37 = vld [vmem:[#allocation118_spill] sm:$0xff] }
 0x2c7   : > { %10226 = vst [vmem:[#allocation89_spill] sm:$0xff] %v8924_v25  ;;  %v1197_v38 = vadd.f32 %v10236_v37, %v10235_v23  ;;  %v10241_v37 = vld [vmem:[#allocation49_spill] sm:$0xff] }
 0x2c8   : > { %10227 = vst [vmem:[#allocation20_spill] sm:$0xff] %v8926_v30  ;;  %v10282_v25 = vld [vmem:[#allocation133_spill] sm:$0xff] }
 0x2c9   : > { %10228 = vst [vmem:[#allocation90_spill] sm:$0xff] %v8928_v63 }
 0x2cb   : > { %v1716_v42 = vpop.f32.mrf.mxu2 }
 0x2cc   : > { %v8939_v7 = vadd.f32 %v1716_v42, %v1263_v44  ;;  %v1785_v20 = vpop.f32.mrf.mxu3  ;;  %v1581_v41 = vpop.f32.mrf.mxu0  ;;  %v10242_v44 = vld [vmem:[#allocation119_spill] sm:$0xff]  ;;  %v10243_v42 = vld [vmem:[#allocation50_spill] sm:$0xff] }
 0x2cd   : > { %v8941_v34 = vadd.f32 %v1785_v20, %v1332_v47  ;;  %v8943_v10 = vadd.f32 %v1581_v41, %v1128_v6  ;;  %v1650_v45 = vpop.f32.mrf.mxu1  ;;  %v1266_v50 = vadd.f32 %v10242_v44, %v10241_v37  ;;  %v6137_v47 = vor.u32 %v7281_v36, %v6136_v35  ;;  %v6138_v6 = vld [vmem:[%s9988_s1 + $0x118] sm:$0xf0]  ;;  %v10246_v20 = vld [vmem:[#allocation121_spill] sm:$0xff] }
 0x2ce   : > { %10237 = vst [vmem:[#allocation21_spill] sm:$0xff] %v8939_v7  ;;  %v8945_v58 = vadd.f32 %v1650_v45, %v1197_v38  ;;  %v10245_v38 = vld [vmem:[#allocation51_spill] sm:$0xff] }
 0x2cf   : > { %10238 = vst [vmem:[#allocation91_spill] sm:$0xff] %v8941_v34  ;;  %6002 = vmatmul.msk.bf16.gmra.mxu0 %vm608_vm1, %v7250_v14  ;;  %6014 = vmatmul.msk.bf16.gmra.mxu1 %vm608_vm1, %v7250_v14  ;;  %v1130_v41 = vadd.f32 %v10246_v20, %v10245_v38  ;;  %v10248_v34 = vld [vmem:[#allocation122_spill] sm:$0xff]  ;;  %v10257_v20 = vld [vmem:[#allocation55_spill] sm:$0xff] }
 0x2d0   : > { %10239 = vst [vmem:[#allocation22_spill] sm:$0xff] %v8943_v10  ;;  %6026 = vmatmul.msk.bf16.gmra.mxu2 %vm608_vm1, %v7250_v14  ;;  %v10247_v10 = vld [vmem:[#allocation52_spill] sm:$0xff] }
 0x2d1   : > { %10240 = vst [vmem:[#allocation92_spill] sm:$0xff] %v8945_v58  ;;  %6038 = vmatmul.msk.bf16.gmra.mxu3 %vm608_vm1, %v7250_v14  ;;  %v10244_v14 = vld [vmem:[#allocation120_spill] sm:$0xff]  ;;  %v6141_v58 = vor.u32 %v7279_v22, %v6138_v6  ;;  %v1199_v7 = vadd.f32 %v10248_v34, %v10247_v10  ;;  %2777 = vmatpush.bf16.msra.mxu2 %v6137_v47  ;;  %v7280_v34 = vld [vmem:[%s9988_s1 + $0x10c] sm:$0xf0]  ;;  %v10254_v47 = vld [vmem:[#allocation123_spill] sm:$0xff] }
 0x2d2   : > { %v1335_v23 = vadd.f32 %v10244_v14, %v10243_v42  ;;  %v6128_v22 = vld [vmem:[%s9988_s1 + $0x100] sm:$0xf]  ;;  %v10255_v14 = vld [vmem:[#allocation54_spill] sm:$0xff] }
 0x2d3   : > { %v1719_v45 = vpop.f32.mrf.mxu2  ;;  %2846 = vmatpush.bf16.msra.mxu3 %v6141_v58  ;;  %v6129_v10 = vor.u32 %v7280_v34, %v6128_v22  ;;  %v10260_v22 = vld [vmem:[#allocation126_spill] sm:$0xff] }
 0x2d4   : > { %v8971_v63 = vadd.f32 %v1719_v45, %v1266_v50  ;;  %v1788_v30 = vpop.f32.mrf.mxu3  ;;  %v1583_v37 = vpop.f32.mrf.mxu0  ;;  %v6130_v50 = vld [vmem:[%s9988_s1 + $0x110] sm:$0xf0] }
 0x2d5   : > { %v8973_v35 = vadd.f32 %v1788_v30, %v1335_v23  ;;  %v8975_v36 = vadd.f32 %v1583_v37, %v1130_v41  ;;  %v1652_v44 = vpop.f32.mrf.mxu1  ;;  %v7278_v30 = vld [vmem:[%s9988_s1 + $0x104] sm:$0xf]  ;;  %2639 = vmatpush.bf16.msra.mxu0 %v6129_v10  ;;  %v10258_v41 = vld [vmem:[#allocation125_spill] sm:$0xff] }
 0x2d6   : > { %10249 = vst [vmem:[#allocation23_spill] sm:$0xff] %v8971_v63  ;;  %v8977_v42 = vadd.f32 %v1652_v44, %v1199_v7  ;;  %v6133_v58 = vor.u32 %v7278_v30, %v6130_v50  ;;  %v10253_v7 = vld [vmem:[#allocation53_spill] sm:$0xff]  ;;  %v10256_v23 = vld [vmem:[#allocation124_spill] sm:$0xff]  ;;  %v1133_v45 = vadd.f32 %v10258_v41, %v10257_v20  ;;  %v10281_v63 = vld [vmem:[#allocation63_spill] sm:$0xff] }
 0x2d7   : > { %10250 = vst [vmem:[#allocation93_spill] sm:$0xff] %v8973_v35  ;;  %v1268_v6 = vadd.f32 %v10254_v47, %v10253_v7  ;;  %v1337_v38 = vadd.f32 %v10256_v23, %v10255_v14  ;;  %v7251_v44 = vld [vmem:[%s7856_s18 + $0x34] sm:$0xff] }
 0x2d8   : > { %10251 = vst [vmem:[#allocation24_spill] sm:$0xff] %v8975_v36  ;;  %2708 = vmatpush.bf16.msra.mxu1 %v6133_v58  ;;  %v10266_v47 = vld [vmem:[#allocation127_spill] sm:$0xff]  ;;  %v10267_v14 = vld [vmem:[#allocation58_spill] sm:$0xff]  ;;  %v10268_v23 = vld [vmem:[#allocation128_spill] sm:$0xff] }
 0x2d9   : > { %10252 = vst [vmem:[#allocation94_spill] sm:$0xff] %v8977_v42  ;;  %v10259_v42 = vld [vmem:[#allocation56_spill] sm:$0xff]  ;;  %v10270_v20 = vld [vmem:[#allocation129_spill] sm:$0xff] }
 0x2da   : > { %v1202_v34 = vadd.f32 %v10260_v22, %v10259_v42  ;;  %v10265_v42 = vld [vmem:[#allocation57_spill] sm:$0xff]  ;;  %v10272_v22 = vld [vmem:[#allocation130_spill] sm:$0xff] }
 0x2db   : > { %v1721_v37 = vpop.f32.mrf.mxu2 }
 0x2dc   : > { %v9000_v36 = vadd.f32 %v1721_v37, %v1268_v6  ;;  %v1790_v35 = vpop.f32.mrf.mxu3  ;;  %v1586_v30 = vpop.f32.mrf.mxu0  ;;  %v1271_v6 = vadd.f32 %v10266_v47, %v10265_v42  ;;  %v10271_v37 = vld [vmem:[#allocation60_spill] sm:$0xff] }
 0x2dd   : > { %v9002_v10 = vadd.f32 %v1790_v35, %v1337_v38  ;;  %v9004_v50 = vadd.f32 %v1586_v30, %v1133_v45  ;;  %v1655_v58 = vpop.f32.mrf.mxu1  ;;  %v1340_v35 = vadd.f32 %v10268_v23, %v10267_v14  ;;  %v10269_v38 = vld [vmem:[#allocation59_spill] sm:$0xff] }
 0x2de   : > { %10261 = vst [vmem:[#allocation25_spill] sm:$0xff] %v9000_v36  ;;  %v9006_v7 = vadd.f32 %v1655_v58, %v1202_v34  ;;  %v1135_v41 = vadd.f32 %v10270_v20, %v10269_v38  ;;  %v1204_v34 = vadd.f32 %v10272_v22, %v10271_v37  ;;  %v10278_v14 = vld [vmem:[#allocation131_spill] sm:$0xff]  ;;  %v10279_v36 = vld [vmem:[#allocation62_spill] sm:$0xff]  ;;  %v10280_v38 = vld [vmem:[#allocation132_spill] sm:$0xff]  ;;  %v1138_v37 = vadd.f32 %v10282_v25, %v10281_v63 }
 0x2df   : > { %10262 = vst [vmem:[#allocation95_spill] sm:$0xff] %v9002_v10  ;;  %6003 = vmatmul.msk.bf16.gmra.mxu0 %vm608_vm1, %v7251_v44  ;;  %6015 = vmatmul.msk.bf16.gmra.mxu1 %vm608_vm1, %v7251_v44  ;;  %v10277_v10 = vld [vmem:[#allocation61_spill] sm:$0xff]  ;;  %v1342_v20 = vadd.f32 %v10280_v38, %v10279_v36  ;;  %v10283_v22 = vld [vmem:[#allocation64_spill] sm:$0xff]  ;;  %v10290_v63 = vld [vmem:[#allocation135_spill] sm:$0xff] }
 0x2e0   : > { %10263 = vst [vmem:[#allocation26_spill] sm:$0xff] %v9004_v50  ;;  %6027 = vmatmul.msk.bf16.gmra.mxu2 %vm608_vm1, %v7251_v44  ;;  %v1273_v23 = vadd.f32 %v10278_v14, %v10277_v10  ;;  %v10289_v25 = vld [vmem:[#allocation65_spill] sm:$0xff] }
 0x2e1   : > { %10264 = vst [vmem:[#allocation96_spill] sm:$0xff] %v9006_v7  ;;  %6039 = vmatmul.msk.bf16.gmra.mxu3 %vm608_vm1, %v7251_v44  ;;  %v1276_v36 = vadd.f32 %v10290_v63, %v10289_v25 }
 0x2e3   : > { %v1724_v45 = vpop.f32.mrf.mxu2 }
 0x2e4   : > { %v9020_v30 = vadd.f32 %v1724_v45, %v1271_v6  ;;  %v1793_v58 = vpop.f32.mrf.mxu3  ;;  %v1588_v7 = vpop.f32.mrf.mxu0  ;;  %v7252_v45 = vld [vmem:[%s7856_s18 + $0x3c] sm:$0xff] }
 0x2e5   : > { %v9022_v50 = vadd.f32 %v1793_v58, %v1340_v35  ;;  %v9024_v44 = vadd.f32 %v1588_v7, %v1135_v41  ;;  %v1657_v42 = vpop.f32.mrf.mxu1 }
 0x2e6   : > { %10273 = vst [vmem:[#allocation27_spill] sm:$0xff] %v9020_v30  ;;  %v9026_v47 = vadd.f32 %v1657_v42, %v1204_v34  ;;  %v10284_v30 = vld [vmem:[#allocation134_spill] sm:$0xff] }
 0x2e7   : > { %10274 = vst [vmem:[#allocation97_spill] sm:$0xff] %v9022_v50  ;;  %v1207_v35 = vadd.f32 %v10284_v30, %v10283_v22  ;;  %v10291_v30 = vld [vmem:[#allocation66_spill] sm:$0xff]  ;;  %v10303_v50 = vld [vmem:[#allocation141_spill] sm:$0xff] }
 0x2e8   : > { %10275 = vst [vmem:[#allocation28_spill] sm:$0xff] %v9024_v44  ;;  %v10302_v44 = vld [vmem:[#allocation71_spill] sm:$0xff] }
 0x2e9   : > { %10276 = vst [vmem:[#allocation98_spill] sm:$0xff] %v9026_v47  ;;  %v10300_v47 = vld [vmem:[#allocation70_spill] sm:$0xff] }
 0x2eb   : > { %v1726_v6 = vpop.f32.mrf.mxu2 }
 0x2ec   : > { %v9037_v58 = vadd.f32 %v1726_v6, %v1273_v23  ;;  %v1795_v7 = vpop.f32.mrf.mxu3  ;;  %v1591_v41 = vpop.f32.mrf.mxu0  ;;  %v10292_v23 = vld [vmem:[#allocation136_spill] sm:$0xff] }
 0x2ed   : > { %v9039_v34 = vadd.f32 %v1795_v7, %v1342_v20  ;;  %v9041_v42 = vadd.f32 %v1591_v41, %v1138_v37  ;;  %v1660_v10 = vpop.f32.mrf.mxu1  ;;  %v1345_v38 = vadd.f32 %v10292_v23, %v10291_v30  ;;  %v10293_v20 = vld [vmem:[#allocation67_spill] sm:$0xff]  ;;  %v10294_v37 = vld [vmem:[#allocation137_spill] sm:$0xff]  ;;  %v10296_v7 = vld [vmem:[#allocation138_spill] sm:$0xff] }
 0x2ee   : > { %10285 = vst [vmem:[#allocation29_spill] sm:$0xff] %v9037_v58  ;;  %v9043_v14 = vadd.f32 %v1660_v10, %v1207_v35  ;;  %v1140_v6 = vadd.f32 %v10294_v37, %v10293_v20  ;;  %v10295_v35 = vld [vmem:[#allocation68_spill] sm:$0xff]  ;;  %v10298_v58 = vld [vmem:[#allocation69_spill] sm:$0xff]  ;;  %v10299_v30 = vld [vmem:[#allocation139_spill] sm:$0xff] }
 0x2ef   : > { %10286 = vst [vmem:[#allocation99_spill] sm:$0xff] %v9039_v34  ;;  %6004 = vmatmul.msk.bf16.gmra.mxu0 %vm608_vm1, %v7252_v45  ;;  %6016 = vmatmul.msk.bf16.gmra.mxu1 %vm608_vm1, %v7252_v45  ;;  %v1209_v41 = vadd.f32 %v10296_v7, %v10295_v35  ;;  %v1278_v23 = vadd.f32 %v10299_v30, %v10298_v58  ;;  %v10301_v20 = vld [vmem:[#allocation140_spill] sm:$0xff] }
 0x2f0   : > { %10287 = vst [vmem:[#allocation30_spill] sm:$0xff] %v9041_v42  ;;  %6028 = vmatmul.msk.bf16.gmra.mxu2 %vm608_vm1, %v7252_v45  ;;  %v1347_v37 = vadd.f32 %v10301_v20, %v10300_v47  ;;  %v1143_v35 = vadd.f32 %v10303_v50, %v10302_v44  ;;  %v10304_v7 = vld [vmem:[#allocation72_spill] sm:$0xff]  ;;  %v10309_v50 = vld [vmem:[#allocation73_spill] sm:$0xff]  ;;  %v10310_v44 = vld [vmem:[#allocation143_spill] sm:$0xff] }
 0x2f1   : > { %10288 = vst [vmem:[#allocation100_spill] sm:$0xff] %v9043_v14  ;;  %6040 = vmatmul.msk.bf16.gmra.mxu3 %vm608_vm1, %v7252_v45  ;;  %v1281_v47 = vadd.f32 %v10310_v44, %v10309_v50  ;;  %v10315_v44 = vld [vmem:[#allocation77_spill] sm:$0xff] }
 0x2f3   : > { %v1729_v22 = vpop.f32.mrf.mxu2 }
 0x2f4   : > { %v9057_v10 = vadd.f32 %v1729_v22, %v1276_v36  ;;  %v1798_v14 = vpop.f32.mrf.mxu3  ;;  %v1593_v42 = vpop.f32.mrf.mxu0  ;;  %v7253_v22 = vld [vmem:[%s7856_s18 + $0x44] sm:$0xff] }
 0x2f5   : > { %v9059_v34 = vadd.f32 %v1798_v14, %v1345_v38  ;;  %v9061_v45 = vadd.f32 %v1593_v42, %v1140_v6  ;;  %v1662_v25 = vpop.f32.mrf.mxu1 }
 0x2f6   : > { %10297 = vst [vmem:[#allocation31_spill] sm:$0xff] %v9057_v10  ;;  %v9063_v63 = vadd.f32 %v1662_v25, %v1209_v41  ;;  %v10305_v10 = vld [vmem:[#allocation142_spill] sm:$0xff] }
 0x2f7   : > { %v1212_v14 = vadd.f32 %v10305_v10, %v10304_v7  ;;  %v10311_v10 = vld [vmem:[#allocation74_spill] sm:$0xff]  ;;  %v10314_v7 = vld [vmem:[#allocation76_spill] sm:$0xff] }
 0x2fb   : > { %v1731_v36 = vpop.f32.mrf.mxu2 }
 0x2fc   : > { %v9074_v38 = vadd.f32 %v1731_v36, %v1278_v23  ;;  %v1800_v42 = vpop.f32.mrf.mxu3  ;;  %v1596_v6 = vpop.f32.mrf.mxu0  ;;  %v10312_v23 = vld [vmem:[#allocation144_spill] sm:$0xff] }
 0x2fd   : > { %v9076_v41 = vadd.f32 %v1800_v42, %v1347_v37  ;;  %v9078_v25 = vadd.f32 %v1596_v6, %v1143_v35  ;;  %v1665_v58 = vpop.f32.mrf.mxu1  ;;  %v1350_v20 = vadd.f32 %v10312_v23, %v10311_v10  ;;  %v10313_v37 = vld [vmem:[#allocation75_spill] sm:$0xff]  ;;  %v1283_v10 = vadd.f32 %v8612_v19, %v10315_v44  ;;  %v10316_v23 = vld [vmem:[#allocation78_spill] sm:$0xff] }
 0x2fe   : > { %v9080_v30 = vadd.f32 %v1665_v58, %v1212_v14  ;;  %v1145_v35 = vadd.f32 %v8606_v28, %v10313_v37  ;;  %v1214_v14 = vadd.f32 %v8608_v12, %v10314_v7  ;;  %v1352_v28 = vadd.f32 %v8617_v11, %v10316_v23 }
 0x2ff   : > { %10306 = vst [vmem:[#allocation101_spill] sm:$0xff] %v9076_v41  ;;  %6005 = vmatmul.msk.bf16.gmra.mxu0 %vm608_vm1, %v7253_v22  ;;  %6017 = vmatmul.msk.bf16.gmra.mxu1 %vm608_vm1, %v7253_v22  ;;  %v7254_v41 = vld [vmem:[%s7856_s18 + $0x4c] sm:$0xff] }
 0x300   : > { %10307 = vst [vmem:[#allocation32_spill] sm:$0xff] %v9078_v25  ;;  %6029 = vmatmul.msk.bf16.gmra.mxu2 %vm608_vm1, %v7253_v22 }
 0x301   : > { %10308 = vst [vmem:[#allocation102_spill] sm:$0xff] %v9080_v30  ;;  %6041 = vmatmul.msk.bf16.gmra.mxu3 %vm608_vm1, %v7253_v22 }
 0x303   : > { %v1734_v36 = vpop.f32.mrf.mxu2 }
 0x304   : > { %v9094_v42 = vadd.f32 %v1734_v36, %v1281_v47  ;;  %v1803_v6 = vpop.f32.mrf.mxu3  ;;  %v1598_v58 = vpop.f32.mrf.mxu0 }
 0x305   : > { %v9096_v30 = vadd.f32 %v1803_v6, %v1350_v20  ;;  %v9098_v22 = vadd.f32 %v1598_v58, %v1145_v35  ;;  %v1667_v25 = vpop.f32.mrf.mxu1  ;;  %v10317_v35 = vld [vmem:[#allocation145_spill] sm:$0xff] }
 0x306   : > { %v9100_v50 = vadd.f32 %v1667_v25, %v1214_v14 }
 0x30b   : > { %v1736_v37 = vpop.f32.mrf.mxu2 }
 0x30c   : > { %v9107_v12 = vadd.f32 %v1736_v37, %v1283_v10  ;;  %v1805_v47 = vpop.f32.mrf.mxu3  ;;  %v2091_v36 = vpop.f32.mrf.mxu0  ;;  %v7255_v37 = vld [vmem:[%s7856_s18 + $0x54] sm:$0xff] }
 0x30d   : > { %v9109_v7 = vadd.f32 %v1805_v47, %v1352_v28  ;;  %v9112_v20 = vadd.f32 %v2091_v36, %v8619_v52  ;;  %v2160_v25 = vpop.f32.mrf.mxu1 }
 0x30e   : > { %v9115_v14 = vadd.f32 %v2160_v25, %v10317_v35 }
 0x30f   : > { %6006 = vmatmul.msk.bf16.gmra.mxu0 %vm608_vm1, %v7254_v41  ;;  %6018 = vmatmul.msk.bf16.gmra.mxu1 %vm608_vm1, %v7254_v41 }
 0x310   : > { %6030 = vmatmul.msk.bf16.gmra.mxu2 %vm608_vm1, %v7254_v41 }
 0x311   : > { %6042 = vmatmul.msk.bf16.gmra.mxu3 %vm608_vm1, %v7254_v41 }
 0x313   : > { %v2229_v19 = vpop.f32.mrf.mxu2 }
 0x314   : > { %v9122_v11 = vadd.f32 %v2229_v19, %v8635_v13  ;;  %v2298_v6 = vpop.f32.mrf.mxu3  ;;  %v2093_v52 = vpop.f32.mrf.mxu0 }
 0x315   : > { %v9125_v58 = vadd.f32 %v2298_v6, %v8637_v17  ;;  %v9128_v44 = vadd.f32 %v2093_v52, %v8639_v26  ;;  %v2162_v10 = vpop.f32.mrf.mxu1 }
 0x316   : > { %v9131_v23 = vadd.f32 %v2162_v10, %v8641_v15  ;;  %v7256_v10 = vld [vmem:[%s7856_s18 + $0x5c] sm:$0xff] }
 0x31b   : > { %v2231_v28 = vpop.f32.mrf.mxu2 }
 0x31c   : > { %v9135_v41 = vadd.f32 %v2231_v28, %v8652_v29  ;;  %v2300_v47 = vpop.f32.mrf.mxu3  ;;  %v2096_v13 = vpop.f32.mrf.mxu0 }
 0x31d   : > { %v9138_v36 = vadd.f32 %v2300_v47, %v8654_v4  ;;  %v9141_v17 = vadd.f32 %v2096_v13, %v8656_v27  ;;  %v2165_v26 = vpop.f32.mrf.mxu1 }
 0x31e   : > { %v9144_v25 = vadd.f32 %v2165_v26, %v8658_v24 }
 0x31f   : > { %6007 = vmatmul.msk.bf16.gmra.mxu0 %vm608_vm1, %v7255_v37  ;;  %6019 = vmatmul.msk.bf16.gmra.mxu1 %vm608_vm1, %v7255_v37 }
 0x320   : > { %6031 = vmatmul.msk.bf16.gmra.mxu2 %vm608_vm1, %v7255_v37 }
 0x321   : > { %6043 = vmatmul.msk.bf16.gmra.mxu3 %vm608_vm1, %v7255_v37 }
 0x323   : > { %v2234_v15 = vpop.f32.mrf.mxu2 }
 0x324   : > { %v9151_v29 = vadd.f32 %v2234_v15, %v8672_v1  ;;  %v2303_v4 = vpop.f32.mrf.mxu3  ;;  %v2098_v27 = vpop.f32.mrf.mxu0 }
 0x325   : > { %v9154_v35 = vadd.f32 %v2303_v4, %v8674_v31  ;;  %v9157_v24 = vadd.f32 %v2098_v27, %v8676_v32  ;;  %v2167_v19 = vpop.f32.mrf.mxu1 }
 0x326   : > { %v9160_v6 = vadd.f32 %v2167_v19, %v8678_v3  ;;  %v7257_v19 = vld [vmem:[%s7856_s18 + $0x64] sm:$0xff] }
 0x32b   : > { %v2236_v52 = vpop.f32.mrf.mxu2 }
 0x32c   : > { %v9164_v28 = vadd.f32 %v2236_v52, %v8689_v33  ;;  %v2305_v37 = vpop.f32.mrf.mxu3  ;;  %v2101_v1 = vpop.f32.mrf.mxu0 }
 0x32d   : > { %v9167_v47 = vadd.f32 %v2305_v37, %v8691_v0  ;;  %v9170_v31 = vadd.f32 %v2101_v1, %v8693_v51  ;;  %v2170_v32 = vpop.f32.mrf.mxu1 }
 0x32e   : > { %v9173_v13 = vadd.f32 %v2170_v32, %v8695_v53 }
 0x32f   : > { %6008 = vmatmul.msk.bf16.gmra.mxu0 %vm608_vm1, %v7256_v10  ;;  %6020 = vmatmul.msk.bf16.gmra.mxu1 %vm608_vm1, %v7256_v10 }
 0x330   : > { %6032 = vmatmul.msk.bf16.gmra.mxu2 %vm608_vm1, %v7256_v10 }
 0x331   : > { %6044 = vmatmul.msk.bf16.gmra.mxu3 %vm608_vm1, %v7256_v10 }
 0x333   : > { %v2239_v3 = vpop.f32.mrf.mxu2 }
 0x334   : > { %v9180_v33 = vadd.f32 %v2239_v3, %v8721_v39  ;;  %v2308_v0 = vpop.f32.mrf.mxu3  ;;  %v2103_v51 = vpop.f32.mrf.mxu0 }
 0x335   : > { %v9183_v26 = vadd.f32 %v2308_v0, %v8724_v2  ;;  %v9186_v53 = vadd.f32 %v2103_v51, %v8726_v62  ;;  %v2172_v15 = vpop.f32.mrf.mxu1 }
 0x336   : > { %v9189_v4 = vadd.f32 %v2172_v15, %v8729_v57  ;;  %v7266_v15 = vld [vmem:[%s7856_s18 + $0x10] sm:$0xff] }
 0x33b   : > { %v2241_v27 = vpop.f32.mrf.mxu2 }
 0x33c   : > { %v9193_v52 = vadd.f32 %v2241_v27, %v8754_v46  ;;  %v2310_v10 = vpop.f32.mrf.mxu3  ;;  %v2106_v39 = vpop.f32.mrf.mxu0 }
 0x33d   : > { %v9196_v37 = vadd.f32 %v2310_v10, %v8756_v5  ;;  %v9199_v2 = vadd.f32 %v2106_v39, %v8758_v18  ;;  %v2175_v62 = vpop.f32.mrf.mxu1 }
 0x33e   : > { %v9202_v1 = vadd.f32 %v2175_v62, %v8760_v49 }
 0x33f   : > { %6009 = vmatmul.msk.bf16.gmra.mxu0 %vm608_vm1, %v7257_v19  ;;  %6021 = vmatmul.msk.bf16.gmra.mxu1 %vm608_vm1, %v7257_v19 }
 0x340   : > { %6033 = vmatmul.msk.bf16.gmra.mxu2 %vm608_vm1, %v7257_v19 }
 0x341   : > { %6045 = vmatmul.msk.bf16.gmra.mxu3 %vm608_vm1, %v7257_v19 }
 0x343   : > { %v2244_v57 = vpop.f32.mrf.mxu2 }
 0x344   : > { %v9209_v46 = vadd.f32 %v2244_v57, %v8774_v61  ;;  %v2313_v5 = vpop.f32.mrf.mxu3  ;;  %v2108_v18 = vpop.f32.mrf.mxu0 }
 0x345   : > { %v9212_v32 = vadd.f32 %v2313_v5, %v8776_v21  ;;  %v9215_v49 = vadd.f32 %v2108_v18, %v8778_v56  ;;  %v2177_v3 = vpop.f32.mrf.mxu1 }
 0x346   : > { %v9218_v0 = vadd.f32 %v2177_v3, %v8780_v59  ;;  %v7267_v3 = vld [vmem:[%s7856_s18 + $0x18] sm:$0xff] }
 0x34b   : > { %v2246_v51 = vpop.f32.mrf.mxu2 }
 0x34c   : > { %v9222_v27 = vadd.f32 %v2246_v51, %v8791_v48  ;;  %v2315_v19 = vpop.f32.mrf.mxu3  ;;  %v2111_v61 = vpop.f32.mrf.mxu0 }
 0x34d   : > { %v9225_v10 = vadd.f32 %v2315_v19, %v8793_v8  ;;  %v9228_v21 = vadd.f32 %v2111_v61, %v8795_v9  ;;  %v2180_v56 = vpop.f32.mrf.mxu1  ;;  %v10321_v19 = vld [vmem:[#allocation79_spill] sm:$0xff] }
 0x34e   : > { %v9231_v39 = vadd.f32 %v2180_v56, %v8797_v16  ;;  %v10323_v56 = vld [vmem:[#allocation10_spill] sm:$0xff] }
 0x34f   : > { %6158 = vmatmul.msk.bf16.vlgmr.msra.gmra.mxu0 %vm608_vm1, %v7266_v15  ;;  %6170 = vmatmul.msk.bf16.vlgmr.msra.gmra.mxu1 %vm608_vm1, %v7266_v15 }
 0x350   : > { %6182 = vmatmul.msk.bf16.vlgmr.msra.gmra.mxu2 %vm608_vm1, %v7266_v15 }
 0x351   : > { %6194 = vmatmul.msk.bf16.vlgmr.msra.gmra.mxu3 %vm608_vm1, %v7266_v15 }
 0x353   : > { %v2249_v59 = vpop.f32.mrf.mxu2 }
 0x354   : > { %v9238_v48 = vadd.f32 %v2249_v59, %v8811_v40  ;;  %v2318_v8 = vpop.f32.mrf.mxu3  ;;  %v2113_v9 = vpop.f32.mrf.mxu0 }
 0x355   : > { %v9241_v62 = vadd.f32 %v2318_v8, %v8813_v43  ;;  %v9244_v16 = vadd.f32 %v2113_v9, %v8815_v55  ;;  %v2182_v57 = vpop.f32.mrf.mxu1  ;;  %v10325_v55 = vld [vmem:[#allocation80_spill] sm:$0xff]  ;;  %v7364_v9 = vld [vmem:[#allocation4 + $0x1f4] sm:$0xf] }
 0x356   : > { %10318 = vst [vmem:[#allocation33_spill] sm:$0xff] %v9238_v48  ;;  %v9247_v5 = vadd.f32 %v2182_v57, %v8817_v60  ;;  %v7348_v60 = vld [vmem:[#allocation4 + $0x174] sm:$0xf] }
 0x357   : > { %10319 = vst [vmem:[#allocation103_spill] sm:$0xff] %v9241_v62  ;;  %v7268_v48 = vld [vmem:[%s7856_s18 + $0x20] sm:$0xff] }
 0x35b   : > { %v2251_v18 = vpop.f32.mrf.mxu2 }
 0x35c   : > { %v9251_v51 = vadd.f32 %v2251_v18, %v8828_v54  ;;  %v2320_v15 = vpop.f32.mrf.mxu3  ;;  %v2116_v40 = vpop.f32.mrf.mxu0  ;;  %v6298_v54 = vld [vmem:[#allocation4 + $0x178] sm:$0xf0] }
 0x35d   : > { %v9254_v61 = vadd.f32 %v2320_v15, %v10321_v19  ;;  %v9257_v43 = vadd.f32 %v2116_v40, %v10323_v56  ;;  %v2185_v59 = vpop.f32.mrf.mxu1  ;;  %v6301_v57 = vor.u32 %v7348_v60, %v6298_v54  ;;  %v6362_v18 = vld [vmem:[#allocation4 + $0x1f8] sm:$0xf0]  ;;  %v6296_v54 = vld [vmem:[#allocation4 + $0x170] sm:$0xf] }
 0x35e   : > { %10320 = vst [vmem:[#allocation34_spill] sm:$0xff] %v9251_v51  ;;  %v9260_v8 = vadd.f32 %v2185_v59, %v10325_v55  ;;  %v6365_v40 = vor.u32 %v7364_v9, %v6362_v18  ;;  %v10327_v19 = vld [vmem:[#allocation11_spill] sm:$0xff]  ;;  %v10333_v51 = vld [vmem:[#allocation82_spill] sm:$0xff] }
 0x35f   : > { %10322 = vst [vmem:[#allocation104_spill] sm:$0xff] %v9254_v61  ;;  %6159 = vmatmul.msk.bf16.gmra.mxu0 %vm608_vm1, %v7267_v3  ;;  %6171 = vmatmul.msk.bf16.gmra.mxu1 %vm608_vm1, %v7267_v3  ;;  %v10331_v61 = vld [vmem:[#allocation12_spill] sm:$0xff]  ;;  %v7349_v9 = vld [vmem:[#allocation4 + $0x174] sm:$0xf0]  ;;  %v6360_v18 = vld [vmem:[#allocation4 + $0x1f0] sm:$0xf] }
 0x360   : > { %10324 = vst [vmem:[#allocation35_spill] sm:$0xff] %v9257_v43  ;;  %6183 = vmatmul.msk.bf16.gmra.mxu2 %vm608_vm1, %v7267_v3  ;;  %3523 = vmatpush.bf16.msrb.mxu3 %v6365_v40 }
 0x361   : > { %10326 = vst [vmem:[#allocation105_spill] sm:$0xff] %v9260_v8  ;;  %6195 = vmatmul.msk.bf16.gmra.mxu3 %vm608_vm1, %v7267_v3  ;;  %3494 = vmatpush.bf16.msrb.mxu2 %v6301_v57  ;;  %v10329_v8 = vld [vmem:[#allocation81_spill] sm:$0xff] }
 0x363   : > { %v2254_v15 = vpop.f32.mrf.mxu2 }
 0x364   : > { %v9267_v56 = vadd.f32 %v2254_v15, %v10327_v19  ;;  %v2323_v59 = vpop.f32.mrf.mxu3  ;;  %v2118_v55 = vpop.f32.mrf.mxu0  ;;  %v6297_v15 = vor.u32 %v7349_v9, %v6296_v54  ;;  %v7365_v19 = vld [vmem:[#allocation4 + $0x1f4] sm:$0xf0] }
 0x365   : > { %v9270_v43 = vadd.f32 %v2323_v59, %v10329_v8  ;;  %v9273_v62 = vadd.f32 %v2118_v55, %v10331_v61  ;;  %v2187_v3 = vpop.f32.mrf.mxu1  ;;  %v10335_v8 = vld [vmem:[#allocation13_spill] sm:$0xff]  ;;  %v10343_v9 = vld [vmem:[#allocation15_spill] sm:$0xff] }
 0x366   : > { %10328 = vst [vmem:[#allocation36_spill] sm:$0xff] %v9267_v56  ;;  %v9276_v60 = vadd.f32 %v2187_v3, %v10333_v51  ;;  %v6361_v56 = vor.u32 %v7365_v19, %v6360_v18  ;;  %3436 = vmatpush.bf16.msrb.mxu0 %v6297_v15  ;;  %v10339_v51 = vld [vmem:[#allocation14_spill] sm:$0xff]  ;;  %v10345_v19 = vld [vmem:[#allocation85_spill] sm:$0xff] }
 0x367   : > { %10330 = vst [vmem:[#allocation106_spill] sm:$0xff] %v9270_v43  ;;  %v10337_v43 = vld [vmem:[#allocation83_spill] sm:$0xff] }
 0x368   : > { %10332 = vst [vmem:[#allocation37_spill] sm:$0xff] %v9273_v62  ;;  %3465 = vmatpush.bf16.msrb.mxu1 %v6361_v56  ;;  %v10341_v62 = vld [vmem:[#allocation84_spill] sm:$0xff] }
 0x369   : > { %10334 = vst [vmem:[#allocation107_spill] sm:$0xff] %v9276_v60 }
 0x36b   : > { %v2256_v57 = vpop.f32.mrf.mxu2 }
 0x36c   : > { %v9280_v59 = vadd.f32 %v2256_v57, %v10335_v8  ;;  %v2325_v61 = vpop.f32.mrf.mxu3  ;;  %v2121_v55 = vpop.f32.mrf.mxu0 }
 0x36d   : > { %v9283_v40 = vadd.f32 %v2325_v61, %v10337_v43  ;;  %v9286_v3 = vadd.f32 %v2121_v55, %v10339_v51  ;;  %v2190_v60 = vpop.f32.mrf.mxu1  ;;  %v10349_v61 = vld [vmem:[#allocation86_spill] sm:$0xff]  ;;  %v7346_v51 = vld [vmem:[#allocation4 + $0x164] sm:$0xf] }
 0x36e   : > { %10336 = vst [vmem:[#allocation38_spill] sm:$0xff] %v9280_v59  ;;  %v9289_v54 = vadd.f32 %v2190_v60, %v10341_v62  ;;  %v10347_v62 = vld [vmem:[#allocation16_spill] sm:$0xff]  ;;  %v10351_v59 = vld [vmem:[#allocation17_spill] sm:$0xff] }
 0x36f   : > { %10338 = vst [vmem:[#allocation108_spill] sm:$0xff] %v9283_v40  ;;  %6160 = vmatmul.msk.bf16.gmra.mxu0 %vm608_vm1, %v7268_v48  ;;  %6172 = vmatmul.msk.bf16.gmra.mxu1 %vm608_vm1, %v7268_v48  ;;  %v6354_v40 = vld [vmem:[#allocation4 + $0x1e8] sm:$0xf0] }
 0x370   : > { %10340 = vst [vmem:[#allocation39_spill] sm:$0xff] %v9286_v3  ;;  %6184 = vmatmul.msk.bf16.gmra.mxu2 %vm608_vm1, %v7268_v48 }
 0x371   : > { %10342 = vst [vmem:[#allocation109_spill] sm:$0xff] %v9289_v54  ;;  %6196 = vmatmul.msk.bf16.gmra.mxu3 %vm608_vm1, %v7268_v48  ;;  %v6290_v54 = vld [vmem:[#allocation4 + $0x168] sm:$0xf0]  ;;  %v7362_v48 = vld [vmem:[#allocation4 + $0x1e4] sm:$0xf] }
 0x372   : > { %v6293_v3 = vor.u32 %v7346_v51, %v6290_v54 }
 0x373   : > { %v2259_v56 = vpop.f32.mrf.mxu2 }
 0x374   : > { %v9296_v18 = vadd.f32 %v2259_v56, %v10343_v9  ;;  %v2328_v43 = vpop.f32.mrf.mxu3  ;;  %v2123_v15 = vpop.f32.mrf.mxu0  ;;  %v6357_v56 = vor.u32 %v7362_v48, %v6354_v40  ;;  %3495 = vmatpush.bf16.msrb.mxu2 %v6293_v3  ;;  %v7347_v40 = vld [vmem:[#allocation4 + $0x164] sm:$0xf0]  ;;  %v6352_v3 = vld [vmem:[#allocation4 + $0x1e0] sm:$0xf] }
 0x375   : > { %v9299_v57 = vadd.f32 %v2328_v43, %v10345_v19  ;;  %v9302_v60 = vadd.f32 %v2123_v15, %v10347_v62  ;;  %v2192_v8 = vpop.f32.mrf.mxu1  ;;  %v10353_v62 = vld [vmem:[#allocation87_spill] sm:$0xff]  ;;  %v7363_v48 = vld [vmem:[#allocation4 + $0x1e4] sm:$0xf0] }
 0x376   : > { %10344 = vst [vmem:[#allocation40_spill] sm:$0xff] %v9296_v18  ;;  %v9305_v55 = vadd.f32 %v2192_v8, %v10349_v61  ;;  %3524 = vmatpush.bf16.msrb.mxu3 %v6357_v56  ;;  %v7269_v18 = vld [vmem:[%s7856_s18 + $0x28] sm:$0xff]  ;;  %v10355_v8 = vld [vmem:[#allocation18_spill] sm:$0xff] }
 0x377   : > { %10346 = vst [vmem:[#allocation110_spill] sm:$0xff] %v9299_v57 }
 0x378   : > { %10348 = vst [vmem:[#allocation41_spill] sm:$0xff] %v9302_v60  ;;  %v10357_v60 = vld [vmem:[#allocation88_spill] sm:$0xff] }
 0x379   : > { %10350 = vst [vmem:[#allocation111_spill] sm:$0xff] %v9305_v55 }
 0x37b   : > { %v2261_v9 = vpop.f32.mrf.mxu2 }
 0x37c   : > { %v9309_v43 = vadd.f32 %v2261_v9, %v10351_v59  ;;  %v2330_v19 = vpop.f32.mrf.mxu3  ;;  %v2126_v15 = vpop.f32.mrf.mxu0  ;;  %v6288_v59 = vld [vmem:[#allocation4 + $0x160] sm:$0xf]  ;;  %v6353_v9 = vor.u32 %v7363_v48, %v6352_v3  ;;  %v10367_v3 = vld [vmem:[#allocation21_spill] sm:$0xff] }
 0x37d   : > { %v9312_v57 = vadd.f32 %v2330_v19, %v10353_v62  ;;  %v9315_v61 = vadd.f32 %v2126_v15, %v10355_v8  ;;  %v2195_v55 = vpop.f32.mrf.mxu1  ;;  %v6289_v51 = vor.u32 %v7347_v40, %v6288_v59  ;;  %v10359_v19 = vld [vmem:[#allocation19_spill] sm:$0xff]  ;;  %v10361_v62 = vld [vmem:[#allocation89_spill] sm:$0xff]  ;;  %v7270_v40 = vld [vmem:[%s7856_s18 + $0x30] sm:$0xff] }
 0x37e   : > { %10352 = vst [vmem:[#allocation42_spill] sm:$0xff] %v9309_v43  ;;  %v9318_v54 = vadd.f32 %v2195_v55, %v10357_v60  ;;  %3466 = vmatpush.bf16.msrb.mxu1 %v6353_v9  ;;  %v6282_v9 = vld [vmem:[#allocation4 + $0x158] sm:$0xf0] }
 0x37f   : > { %10354 = vst [vmem:[#allocation112_spill] sm:$0xff] %v9312_v57  ;;  %6161 = vmatmul.msk.bf16.gmra.mxu0 %vm608_vm1, %v7269_v18  ;;  %6173 = vmatmul.msk.bf16.gmra.mxu1 %vm608_vm1, %v7269_v18  ;;  %v10365_v57 = vld [vmem:[#allocation90_spill] sm:$0xff] }
 0x380   : > { %10356 = vst [vmem:[#allocation43_spill] sm:$0xff] %v9315_v61  ;;  %6185 = vmatmul.msk.bf16.gmra.mxu2 %vm608_vm1, %v7269_v18  ;;  %3437 = vmatpush.bf16.msrb.mxu0 %v6289_v51 }
 0x381   : > { %10358 = vst [vmem:[#allocation113_spill] sm:$0xff] %v9318_v54  ;;  %6197 = vmatmul.msk.bf16.gmra.mxu3 %vm608_vm1, %v7269_v18  ;;  %v10363_v54 = vld [vmem:[#allocation20_spill] sm:$0xff] }
 0x383   : > { %v2264_v56 = vpop.f32.mrf.mxu2 }
 0x384   : > { %v9325_v15 = vadd.f32 %v2264_v56, %v10359_v19  ;;  %v2333_v60 = vpop.f32.mrf.mxu3  ;;  %v2128_v55 = vpop.f32.mrf.mxu0 }
 0x385   : > { %v9328_v8 = vadd.f32 %v2333_v60, %v10361_v62  ;;  %v9331_v61 = vadd.f32 %v2128_v55, %v10363_v54  ;;  %v2197_v18 = vpop.f32.mrf.mxu1  ;;  %v10371_v60 = vld [vmem:[#allocation22_spill] sm:$0xff]  ;;  %v10373_v55 = vld [vmem:[#allocation92_spill] sm:$0xff] }
 0x386   : > { %10360 = vst [vmem:[#allocation44_spill] sm:$0xff] %v9325_v15  ;;  %v9334_v43 = vadd.f32 %v2197_v18, %v10365_v57  ;;  %v10369_v15 = vld [vmem:[#allocation91_spill] sm:$0xff]  ;;  %v7344_v57 = vld [vmem:[#allocation4 + $0x154] sm:$0xf] }
 0x387   : > { %10362 = vst [vmem:[#allocation114_spill] sm:$0xff] %v9328_v8  ;;  %v7360_v18 = vld [vmem:[#allocation4 + $0x1d4] sm:$0xf] }
 0x388   : > { %10364 = vst [vmem:[#allocation45_spill] sm:$0xff] %v9331_v61  ;;  %v7271_v61 = vld [vmem:[%s7856_s18 + $0x38] sm:$0xff] }
 0x389   : > { %10366 = vst [vmem:[#allocation115_spill] sm:$0xff] %v9334_v43  ;;  %v10381_v43 = vld [vmem:[#allocation94_spill] sm:$0xff] }
 0x38b   : > { %v2266_v59 = vpop.f32.mrf.mxu2 }
 0x38c   : > { %v9338_v48 = vadd.f32 %v2266_v59, %v10367_v3  ;;  %v2335_v56 = vpop.f32.mrf.mxu3  ;;  %v2131_v19 = vpop.f32.mrf.mxu0  ;;  %v6346_v59 = vld [vmem:[#allocation4 + $0x1d8] sm:$0xf0] }
 0x38d   : > { %v9341_v51 = vadd.f32 %v2335_v56, %v10369_v15  ;;  %v9344_v62 = vadd.f32 %v2131_v19, %v10371_v60  ;;  %v2200_v54 = vpop.f32.mrf.mxu1  ;;  %v6285_v15 = vor.u32 %v7344_v57, %v6282_v9  ;;  %v6349_v56 = vor.u32 %v7360_v18, %v6346_v59  ;;  %v10375_v19 = vld [vmem:[#allocation23_spill] sm:$0xff]  ;;  %v6280_v9 = vld [vmem:[#allocation4 + $0x150] sm:$0xf] }
 0x38e   : > { %10368 = vst [vmem:[#allocation46_spill] sm:$0xff] %v9338_v48  ;;  %v9347_v8 = vadd.f32 %v2200_v54, %v10373_v55  ;;  %v7345_v18 = vld [vmem:[#allocation4 + $0x154] sm:$0xf0]  ;;  %v6344_v59 = vld [vmem:[#allocation4 + $0x1d0] sm:$0xf] }
 0x38f   : > { %10370 = vst [vmem:[#allocation116_spill] sm:$0xff] %v9341_v51  ;;  %6162 = vmatmul.msk.bf16.gmra.mxu0 %vm608_vm1, %v7270_v40  ;;  %6174 = vmatmul.msk.bf16.gmra.mxu1 %vm608_vm1, %v7270_v40  ;;  %v10379_v51 = vld [vmem:[#allocation24_spill] sm:$0xff] }
 0x390   : > { %10372 = vst [vmem:[#allocation47_spill] sm:$0xff] %v9344_v62  ;;  %6186 = vmatmul.msk.bf16.gmra.mxu2 %vm608_vm1, %v7270_v40  ;;  %3525 = vmatpush.bf16.msrb.mxu3 %v6349_v56 }
 0x391   : > { %10374 = vst [vmem:[#allocation117_spill] sm:$0xff] %v9347_v8  ;;  %6198 = vmatmul.msk.bf16.gmra.mxu3 %vm608_vm1, %v7270_v40  ;;  %3496 = vmatpush.bf16.msrb.mxu2 %v6285_v15  ;;  %v10377_v8 = vld [vmem:[#allocation93_spill] sm:$0xff] }
 0x393   : > { %v2269_v3 = vpop.f32.mrf.mxu2 }
 0x394   : > { %v9354_v60 = vadd.f32 %v2269_v3, %v10375_v19  ;;  %v2338_v54 = vpop.f32.mrf.mxu3  ;;  %v2133_v55 = vpop.f32.mrf.mxu0  ;;  %v6281_v3 = vor.u32 %v7345_v18, %v6280_v9  ;;  %v7361_v19 = vld [vmem:[#allocation4 + $0x1d4] sm:$0xf0] }
 0x395   : > { %v9357_v62 = vadd.f32 %v2338_v54, %v10377_v8  ;;  %v9360_v48 = vadd.f32 %v2133_v55, %v10379_v51  ;;  %v2202_v40 = vpop.f32.mrf.mxu1  ;;  %v10383_v8 = vld [vmem:[#allocation25_spill] sm:$0xff]  ;;  %v10391_v18 = vld [vmem:[#allocation27_spill] sm:$0xff] }
 0x396   : > { %10376 = vst [vmem:[#allocation48_spill] sm:$0xff] %v9354_v60  ;;  %v9363_v57 = vadd.f32 %v2202_v40, %v10381_v43  ;;  %v6345_v60 = vor.u32 %v7361_v19, %v6344_v59  ;;  %3438 = vmatpush.bf16.msrb.mxu0 %v6281_v3  ;;  %v10387_v43 = vld [vmem:[#allocation26_spill] sm:$0xff]  ;;  %v10393_v19 = vld [vmem:[#allocation97_spill] sm:$0xff] }
 0x397   : > { %10378 = vst [vmem:[#allocation118_spill] sm:$0xff] %v9357_v62  ;;  %v10385_v62 = vld [vmem:[#allocation95_spill] sm:$0xff] }
 0x398   : > { %10380 = vst [vmem:[#allocation49_spill] sm:$0xff] %v9360_v48  ;;  %3467 = vmatpush.bf16.msrb.mxu1 %v6345_v60  ;;  %v10389_v48 = vld [vmem:[#allocation96_spill] sm:$0xff] }
 0x399   : > { %10382 = vst [vmem:[#allocation119_spill] sm:$0xff] %v9363_v57 }
 0x39b   : > { %v2271_v15 = vpop.f32.mrf.mxu2 }
 0x39c   : > { %v9367_v54 = vadd.f32 %v2271_v15, %v10383_v8  ;;  %v2340_v51 = vpop.f32.mrf.mxu3  ;;  %v2136_v55 = vpop.f32.mrf.mxu0 }
 0x39d   : > { %v9370_v56 = vadd.f32 %v2340_v51, %v10385_v62  ;;  %v9373_v40 = vadd.f32 %v2136_v55, %v10387_v43  ;;  %v2205_v57 = vpop.f32.mrf.mxu1  ;;  %v10397_v51 = vld [vmem:[#allocation98_spill] sm:$0xff]  ;;  %v7342_v43 = vld [vmem:[#allocation4 + $0x144] sm:$0xf] }
 0x39e   : > { %10384 = vst [vmem:[#allocation50_spill] sm:$0xff] %v9367_v54  ;;  %v9376_v9 = vadd.f32 %v2205_v57, %v10389_v48  ;;  %v10395_v48 = vld [vmem:[#allocation28_spill] sm:$0xff]  ;;  %v10399_v54 = vld [vmem:[#allocation29_spill] sm:$0xff] }
 0x39f   : > { %10386 = vst [vmem:[#allocation120_spill] sm:$0xff] %v9370_v56  ;;  %6163 = vmatmul.msk.bf16.gmra.mxu0 %vm608_vm1, %v7271_v61  ;;  %6175 = vmatmul.msk.bf16.gmra.mxu1 %vm608_vm1, %v7271_v61  ;;  %v6338_v56 = vld [vmem:[#allocation4 + $0x1c8] sm:$0xf0] }
 0x3a0   : > { %10388 = vst [vmem:[#allocation51_spill] sm:$0xff] %v9373_v40  ;;  %6187 = vmatmul.msk.bf16.gmra.mxu2 %vm608_vm1, %v7271_v61 }
 0x3a1   : > { %10390 = vst [vmem:[#allocation121_spill] sm:$0xff] %v9376_v9  ;;  %6199 = vmatmul.msk.bf16.gmra.mxu3 %vm608_vm1, %v7271_v61  ;;  %v6274_v9 = vld [vmem:[#allocation4 + $0x148] sm:$0xf0]  ;;  %v7358_v61 = vld [vmem:[#allocation4 + $0x1c4] sm:$0xf] }
 0x3a2   : > { %v6277_v40 = vor.u32 %v7342_v43, %v6274_v9 }
 0x3a3   : > { %v2274_v60 = vpop.f32.mrf.mxu2 }
 0x3a4   : > { %v9383_v59 = vadd.f32 %v2274_v60, %v10391_v18  ;;  %v2343_v62 = vpop.f32.mrf.mxu3  ;;  %v2138_v3 = vpop.f32.mrf.mxu0  ;;  %v6341_v60 = vor.u32 %v7358_v61, %v6338_v56  ;;  %3497 = vmatpush.bf16.msrb.mxu2 %v6277_v40  ;;  %v7343_v56 = vld [vmem:[#allocation4 + $0x144] sm:$0xf0]  ;;  %v6336_v40 = vld [vmem:[#allocation4 + $0x1c0] sm:$0xf] }
 0x3a5   : > { %v9386_v15 = vadd.f32 %v2343_v62, %v10393_v19  ;;  %v9389_v57 = vadd.f32 %v2138_v3, %v10395_v48  ;;  %v2207_v8 = vpop.f32.mrf.mxu1  ;;  %v10400_v48 = vld [vmem:[#allocation99_spill] sm:$0xff]  ;;  %v7359_v61 = vld [vmem:[#allocation4 + $0x1c4] sm:$0xf0] }
 0x3a6   : > { %10392 = vst [vmem:[#allocation52_spill] sm:$0xff] %v9383_v59  ;;  %v9392_v55 = vadd.f32 %v2207_v8, %v10397_v51  ;;  %3526 = vmatpush.bf16.msrb.mxu3 %v6341_v60  ;;  %v7272_v59 = vld [vmem:[%s7856_s18 + $0x40] sm:$0xff] }
 0x3a7   : > { %10394 = vst [vmem:[#allocation122_spill] sm:$0xff] %v9386_v15  ;;  %v10401_v8 = vld [vmem:[#allocation30_spill] sm:$0xff] }
 0x3a8   : > { %10396 = vst [vmem:[#allocation53_spill] sm:$0xff] %v9389_v57  ;;  %v10402_v57 = vld [vmem:[#allocation100_spill] sm:$0xff] }
 0x3a9   : > { %10398 = vst [vmem:[#allocation123_spill] sm:$0xff] %v9392_v55 }
 0x3ab   : > { %v2276_v18 = vpop.f32.mrf.mxu2 }
 0x3ac   : > { %v9396_v62 = vadd.f32 %v2276_v18, %v10399_v54  ;;  %v2345_v19 = vpop.f32.mrf.mxu3  ;;  %v2141_v3 = vpop.f32.mrf.mxu0  ;;  %v6272_v54 = vld [vmem:[#allocation4 + $0x140] sm:$0xf]  ;;  %v6337_v18 = vor.u32 %v7359_v61, %v6336_v40 }
 0x3ad   : > { %v9399_v15 = vadd.f32 %v2345_v19, %v10400_v48  ;;  %v9402_v51 = vadd.f32 %v2141_v3, %v10401_v8  ;;  %v2210_v55 = vpop.f32.mrf.mxu1  ;;  %v6273_v43 = vor.u32 %v7343_v56, %v6272_v54  ;;  %v10404_v19 = vld [vmem:[#allocation31_spill] sm:$0xff] }
 0x3ae   : > { %v9405_v9 = vadd.f32 %v2210_v55, %v10402_v57  ;;  %3468 = vmatpush.bf16.msrb.mxu1 %v6337_v18  ;;  %v7273_v56 = vld [vmem:[%s7856_s18 + $0x48] sm:$0xff] }
 0x3af   : > { %6164 = vmatmul.msk.bf16.gmra.mxu0 %vm608_vm1, %v7272_v59  ;;  %6176 = vmatmul.msk.bf16.gmra.mxu1 %vm608_vm1, %v7272_v59 }
 0x3b0   : > { %10403 = vst [vmem:[#allocation54_spill] sm:$0xff] %v9405_v9  ;;  %6188 = vmatmul.msk.bf16.gmra.mxu2 %vm608_vm1, %v7272_v59  ;;  %3439 = vmatpush.bf16.msrb.mxu0 %v6273_v43 }
 0x3b1   : > { %6200 = vmatmul.msk.bf16.gmra.mxu3 %vm608_vm1, %v7272_v59 }
 0x3b3   : > { %v2279_v60 = vpop.f32.mrf.mxu2 }
 0x3b4   : > { %v9412_v3 = vadd.f32 %v2279_v60, %v10404_v19  ;;  %v2348_v57 = vpop.f32.mrf.mxu3  ;;  %v2143_v55 = vpop.f32.mrf.mxu0  ;;  %v10407_v19 = vld [vmem:[#allocation101_spill] sm:$0xff] }
 0x3b5   : > { %v9415_v48 = vadd.f32 %v2348_v57, %v9059_v34  ;;  %v9418_v8 = vadd.f32 %v2143_v55, %v9061_v45  ;;  %v2212_v59 = vpop.f32.mrf.mxu1  ;;  %v10409_v34 = vld [vmem:[#allocation32_spill] sm:$0xff]  ;;  %v10411_v55 = vld [vmem:[#allocation102_spill] sm:$0xff] }
 0x3b6   : > { %v9421_v9 = vadd.f32 %v2212_v59, %v9063_v63 }
 0x3b7   : > { %10405 = vst [vmem:[#allocation124_spill] sm:$0xff] %v9415_v48 }
 0x3bb   : > { %v2281_v54 = vpop.f32.mrf.mxu2 }
 0x3bc   : > { %v9425_v40 = vadd.f32 %v2281_v54, %v9074_v38  ;;  %v2350_v61 = vpop.f32.mrf.mxu3  ;;  %v2146_v60 = vpop.f32.mrf.mxu0 }
 0x3bd   : > { %v9428_v43 = vadd.f32 %v2350_v61, %v10407_v19  ;;  %v9431_v57 = vadd.f32 %v2146_v60, %v10409_v34  ;;  %v2215_v45 = vpop.f32.mrf.mxu1  ;;  %v7340_v34 = vld [vmem:[#allocation4 + $0x134] sm:$0xf] }
 0x3be   : > { %10406 = vst [vmem:[#allocation55_spill] sm:$0xff] %v9425_v40  ;;  %v9434_v48 = vadd.f32 %v2215_v45, %v10411_v55  ;;  %v6266_v45 = vld [vmem:[#allocation4 + $0x138] sm:$0xf0] }
 0x3bf   : > { %10408 = vst [vmem:[#allocation125_spill] sm:$0xff] %v9428_v43  ;;  %6165 = vmatmul.msk.bf16.gmra.mxu0 %vm608_vm1, %v7273_v56  ;;  %6177 = vmatmul.msk.bf16.gmra.mxu1 %vm608_vm1, %v7273_v56  ;;  %v6269_v55 = vor.u32 %v7340_v34, %v6266_v45 }
 0x3c0   : > { %10410 = vst [vmem:[#allocation56_spill] sm:$0xff] %v9431_v57  ;;  %6189 = vmatmul.msk.bf16.gmra.mxu2 %vm608_vm1, %v7273_v56  ;;  %v6264_v57 = vld [vmem:[#allocation4 + $0x130] sm:$0xf] }
 0x3c1   : > { %10412 = vst [vmem:[#allocation126_spill] sm:$0xff] %v9434_v48  ;;  %6201 = vmatmul.msk.bf16.gmra.mxu3 %vm608_vm1, %v7273_v56  ;;  %v7356_v56 = vld [vmem:[#allocation4 + $0x1b4] sm:$0xf]  ;;  %v6330_v48 = vld [vmem:[#allocation4 + $0x1b8] sm:$0xf0]  ;;  %3498 = vmatpush.bf16.msrb.mxu2 %v6269_v55 }
 0x3c2   : > { %v6333_v43 = vor.u32 %v7356_v56, %v6330_v48 }
 0x3c3   : > { %v2284_v63 = vpop.f32.mrf.mxu2 }
 0x3c4   : > { %v9441_v38 = vadd.f32 %v2284_v63, %v9094_v42  ;;  %v2353_v18 = vpop.f32.mrf.mxu3  ;;  %v2148_v59 = vpop.f32.mrf.mxu0  ;;  %v7341_v42 = vld [vmem:[#allocation4 + $0x134] sm:$0xf0]  ;;  %3527 = vmatpush.bf16.msrb.mxu3 %v6333_v43 }
 0x3c5   : > { %v9444_v54 = vadd.f32 %v2353_v18, %v9096_v30  ;;  %v9447_v61 = vadd.f32 %v2148_v59, %v9098_v22  ;;  %v2217_v60 = vpop.f32.mrf.mxu1  ;;  %v6265_v40 = vor.u32 %v7341_v42, %v6264_v57  ;;  %v6328_v30 = vld [vmem:[#allocation4 + $0x1b0] sm:$0xf]  ;;  %v7357_v18 = vld [vmem:[#allocation4 + $0x1b4] sm:$0xf0] }
 0x3c6   : > { %10413 = vst [vmem:[#allocation57_spill] sm:$0xff] %v9441_v38  ;;  %v9450_v19 = vadd.f32 %v2217_v60, %v9100_v50  ;;  %v7274_v38 = vld [vmem:[%s7856_s18 + $0x50] sm:$0xff]  ;;  %v6329_v50 = vor.u32 %v7357_v18, %v6328_v30  ;;  %v6258_v30 = vld [vmem:[#allocation4 + $0x128] sm:$0xf0] }
 0x3c7   : > { %10414 = vst [vmem:[#allocation127_spill] sm:$0xff] %v9444_v54  ;;  %3440 = vmatpush.bf16.msrb.mxu0 %v6265_v40  ;;  %v7354_v18 = vld [vmem:[#allocation4 + $0x1a4] sm:$0xf] }
 0x3c8   : > { %3469 = vmatpush.bf16.msrb.mxu1 %v6329_v50 }
 0x3cb   : > { %v2286_v63 = vpop.f32.mrf.mxu2 }
 0x3cc   : > { %v9454_v22 = vadd.f32 %v2286_v63, %v9107_v12  ;;  %v2355_v59 = vpop.f32.mrf.mxu3  ;;  %v2641_v54 = vpop.f32.mrf.mxu0  ;;  %v7338_v63 = vld [vmem:[#allocation4 + $0x124] sm:$0xf] }
 0x3cd   : > { %v9457_v60 = vadd.f32 %v2355_v59, %v9109_v7  ;;  %v2710_v34 = vpop.f32.mrf.mxu1  ;;  %v2908_v45 = vadd.f32 %v2641_v54, %v9112_v20  ;;  %v6261_v59 = vor.u32 %v7338_v63, %v6258_v30  ;;  %v7275_v20 = vld [vmem:[%s7856_s18 + $0x58] sm:$0xff] }
 0x3ce   : > { %v2909_v40 = vadd.f32 %v2710_v34, %v9115_v14 }
 0x3cf   : > { %10415 = vst [vmem:[#allocation58_spill] sm:$0xff] %v9457_v60  ;;  %6166 = vmatmul.msk.bf16.gmra.mxu0 %vm608_vm1, %v7274_v38  ;;  %6178 = vmatmul.msk.bf16.gmra.mxu1 %vm608_vm1, %v7274_v38  ;;  %v3076_v60 = vld [vmem:[%s9989_s2] sm:$0x3] }
 0x3d0   : > { %6190 = vmatmul.msk.bf16.gmra.mxu2 %vm608_vm1, %v7274_v38  ;;  %v9477_v63 = vperm.slane %v3076_v60, 1 }
 0x3d1   : > { %6202 = vmatmul.msk.bf16.gmra.mxu3 %vm608_vm1, %v7274_v38  ;;  %v6322_v38 = vld [vmem:[#allocation4 + $0x1a8] sm:$0xf0]  ;;  %3499 = vmatpush.bf16.msrb.mxu2 %v6261_v59 }
 0x3d2   : > { %v6325_v54 = vor.u32 %v7354_v18, %v6322_v38 }
 0x3d3   : > { %v2779_v12 = vpop.f32.mrf.mxu2 }
 0x3d4   : > { %v2848_v48 = vpop.f32.mrf.mxu3  ;;  %v2643_v57 = vpop.f32.mrf.mxu0  ;;  %3528 = vmatpush.bf16.msrb.mxu3 %v6325_v54  ;;  %v7339_v54 = vld [vmem:[#allocation4 + $0x124] sm:$0xf0] }
 0x3d5   : > { %v2912_v7 = vadd.f32 %v2643_v57, %v9128_v44  ;;  %v2712_v56 = vpop.f32.mrf.mxu1  ;;  %v2910_v44 = vadd.f32 %v2779_v12, %v9122_v11  ;;  %v2911_v57 = vadd.f32 %v2848_v48, %v9125_v58 }
 0x3d6   : > { %v2913_v43 = vadd.f32 %v2712_v56, %v9131_v23 }
 0x3d7   : > { %v3004_v55 = vmax.f32 %v2908_v45, %v2912_v7 }
 0x3d8   : > { %v3005_v42 = vmax.f32 %v2909_v40, %v2913_v43  ;;  %v9475_v40 = vperm.slane %v3076_v60, 0 }
 0x3db   : > { %v2781_v50 = vpop.f32.mrf.mxu2 }
 0x3dc   : > { %v2914_v14 = vadd.f32 %v2781_v50, %v9135_v41  ;;  %v2850_v34 = vpop.f32.mrf.mxu3  ;;  %v2646_v23 = vpop.f32.mrf.mxu0  ;;  %v6256_v50 = vld [vmem:[#allocation4 + $0x120] sm:$0xf] }
 0x3dd   : > { %v2915_v45 = vadd.f32 %v2850_v34, %v9138_v36  ;;  %v2715_v7 = vpop.f32.mrf.mxu1  ;;  %v2916_v59 = vadd.f32 %v2646_v23, %v9141_v17  ;;  %v7355_v34 = vld [vmem:[#allocation4 + $0x1a4] sm:$0xf0]  ;;  %v7276_v17 = vld [vmem:[%s7856_s18 + $0x60] sm:$0xff] }
 0x3de   : > { %v3006_v56 = vmax.f32 %v2910_v44, %v2914_v14  ;;  %v6257_v44 = vor.u32 %v7339_v54, %v6256_v50  ;;  %v6320_v14 = vld [vmem:[#allocation4 + $0x1a0] sm:$0xf]  ;;  %v6248_v23 = vld [vmem:[#allocation4 + $0x110] sm:$0xf] }
 0x3df   : > { %v3007_v43 = vmax.f32 %v2911_v57, %v2915_v45  ;;  %6167 = vmatmul.msk.bf16.gmra.mxu0 %vm608_vm1, %v7275_v20  ;;  %6179 = vmatmul.msk.bf16.gmra.mxu1 %vm608_vm1, %v7275_v20 }
 0x3e0   : > { %v3052_v11 = vmax.f32 %v3004_v55, %v3006_v56  ;;  %6191 = vmatmul.msk.bf16.gmra.mxu2 %vm608_vm1, %v7275_v20  ;;  %v6321_v56 = vor.u32 %v7355_v34, %v6320_v14  ;;  %3441 = vmatpush.bf16.msrb.mxu0 %v6257_v44  ;;  %v6240_v14 = vld [vmem:[#allocation4 + $0x100] sm:$0xf]  ;;  %v7335_v34 = vld [vmem:[#allocation4 + $0x104] sm:$0xf0] }
 0x3e1   : > { %v3053_v41 = vmax.f32 %v3005_v42, %v3007_v43  ;;  %6203 = vmatmul.msk.bf16.gmra.mxu3 %vm608_vm1, %v7275_v20  ;;  %v2917_v42 = vadd.f32 %v2715_v7, %v9144_v25 }
 0x3e2   : > { %v3082_v58 = vadd.f32 %v9475_v40, %v3052_v11  ;;  %3470 = vmatpush.bf16.msrb.mxu1 %v6321_v56 }
 0x3e3   : > { %v3083_v36 = vadd.f32 %v9477_v63, %v3053_v41  ;;  %v2784_v12 = vpop.f32.mrf.mxu2  ;;  %v6312_v41 = vld [vmem:[#allocation4 + $0x190] sm:$0xf] }
 0x3e4   : > { %v3106_v48 = vmax.f32 %v3082_v58, 0.0  ;;  %v2853_v30 = vpop.f32.mrf.mxu3  ;;  %v2648_v18 = vpop.f32.mrf.mxu0  ;;  %v7353_v58 = vld [vmem:[#allocation4 + $0x194] sm:$0xf0] }
 0x3e5   : > { %v3107_v60 = vmax.f32 %v3083_v36, 0.0  ;;  %v2920_v55 = vadd.f32 %v2648_v18, %v9157_v24  ;;  %v2717_v38 = vpop.f32.mrf.mxu1  ;;  %v7337_v24 = vld [vmem:[#allocation4 + $0x114] sm:$0xf0]  ;;  %v7336_v36 = vld [vmem:[#allocation4 + $0x114] sm:$0xf]  ;;  %v6313_v7 = vor.u32 %v7353_v58, %v6312_v41 }
 0x3e6   : > { %v2921_v20 = vadd.f32 %v2717_v38, %v9160_v6  ;;  %v6249_v11 = vor.u32 %v7337_v24, %v6248_v23  ;;  %v6250_v6 = vld [vmem:[#allocation4 + $0x118] sm:$0xf0]  ;;  %v7352_v18 = vld [vmem:[#allocation4 + $0x194] sm:$0xf]  ;;  %v6242_v23 = vld [vmem:[#allocation4 + $0x108] sm:$0xf0] }
 0x3e7   : > { %v3130_v57 = vpack.c.bf16 %v3107_v60, %v3106_v48  ;;  %v3008_v45 = vmax.f32 %v2916_v59, %v2920_v55  ;;  %v6314_v38 = vld [vmem:[#allocation4 + $0x198] sm:$0xf0]  ;;  %v2918_v48 = vadd.f32 %v2784_v12, %v9151_v29  ;;  %v6253_v50 = vor.u32 %v7336_v36, %v6250_v6  ;;  %3471 = vmatpush.bf16.msrb.mxu1 %v6313_v7  ;;  %v7351_v12 = vld [vmem:[#allocation4 + $0x184] sm:$0xf0] }
 0x3e8   : > { %v3009_v43 = vmax.f32 %v2917_v42, %v2921_v20  ;;  %3442 = vmatpush.bf16.msrb.mxu0 %v6249_v11  ;;  %v6317_v54 = vor.u32 %v7352_v18, %v6314_v38  ;;  %v2919_v42 = vadd.f32 %v2853_v30, %v9154_v35  ;;  %v6241_v29 = vor.u32 %v7335_v34, %v6240_v14  ;;  %v7350_v35 = vld [vmem:[#allocation4 + $0x184] sm:$0xf]  ;;  %v6306_v30 = vld [vmem:[#allocation4 + $0x188] sm:$0xf0] }
 0x3e9   : > { %3142 = vst [vmem:[#allocation2] sm:$0xff] %v3130_v57  ;;  %v6304_v57 = vld [vmem:[#allocation4 + $0x180] sm:$0xf]  ;;  %3500 = vmatpush.bf16.msrb.mxu2 %v6253_v50  ;;  %v6309_v58 = vor.u32 %v7350_v35, %v6306_v30  ;;  %v7277_v34 = vld [vmem:[%s7856_s18 + $0x68] sm:$0xff] }
 0x3ea   : > { %3529 = vmatpush.bf16.msrb.mxu3 %v6317_v54  ;;  %v6305_v11 = vor.u32 %v7351_v12, %v6304_v57 }
 0x3eb   : > { %v2786_v25 = vpop.f32.mrf.mxu2 }
 0x3ec   : > { %v2922_v60 = vadd.f32 %v2786_v25, %v9164_v28  ;;  %v2855_v59 = vpop.f32.mrf.mxu3  ;;  %v2651_v55 = vpop.f32.mrf.mxu0  ;;  %v7334_v28 = vld [vmem:[#allocation4 + $0x104] sm:$0xf]  ;;  %3443 = vmatpush.bf16.msrb.mxu0 %v6241_v29  ;;  %3472 = vmatpush.bf16.msrb.mxu1 %v6305_v11 }
 0x3ed   : > { %v2923_v20 = vadd.f32 %v2855_v59, %v9167_v47  ;;  %v2720_v44 = vpop.f32.mrf.mxu1  ;;  %v6245_v41 = vor.u32 %v7334_v28, %v6242_v23 }
 0x3ee   : > { %v3010_v56 = vmax.f32 %v2918_v48, %v2922_v60  ;;  %3530 = vmatpush.bf16.msrb.mxu3 %v6309_v58  ;;  %v2924_v60 = vadd.f32 %v2651_v55, %v9170_v31 }
 0x3ef   : > { %v3011_v24 = vmax.f32 %v2919_v42, %v2923_v20  ;;  %6168 = vmatmul.msk.bf16.gmra.mxu0 %vm608_vm1, %v7276_v17  ;;  %6180 = vmatmul.msk.bf16.gmra.mxu1 %vm608_vm1, %v7276_v17 }
 0x3f0   : > { %v3054_v47 = vmax.f32 %v3008_v45, %v3010_v56  ;;  %6192 = vmatmul.msk.bf16.gmra.mxu2 %vm608_vm1, %v7276_v17 }
 0x3f1   : > { %v3055_v36 = vmax.f32 %v3009_v43, %v3011_v24  ;;  %6204 = vmatmul.msk.bf16.gmra.mxu3 %vm608_vm1, %v7276_v17  ;;  %3501 = vmatpush.bf16.msrb.mxu2 %v6245_v41  ;;  %v2925_v17 = vadd.f32 %v2720_v44, %v9173_v13 }
 0x3f2   : > { %v3084_v25 = vadd.f32 %v9475_v40, %v3054_v47 }
 0x3f3   : > { %v3085_v7 = vadd.f32 %v9477_v63, %v3055_v36  ;;  %v2789_v6 = vpop.f32.mrf.mxu2 }
 0x3f4   : > { %v3108_v18 = vmax.f32 %v3084_v25, 0.0  ;;  %v2858_v45 = vpop.f32.mrf.mxu3  ;;  %v2653_v38 = vpop.f32.mrf.mxu0  ;;  %v2926_v57 = vadd.f32 %v2789_v6, %v9180_v33 }
 0x3f5   : > { %v3109_v48 = vmax.f32 %v3085_v7, 0.0  ;;  %v2928_v43 = vadd.f32 %v2653_v38, %v9186_v53  ;;  %v2722_v59 = vpop.f32.mrf.mxu1  ;;  %v2927_v31 = vadd.f32 %v2858_v45, %v9183_v26 }
 0x3f6   : > { %v2929_v50 = vadd.f32 %v2722_v59, %v9189_v4 }
 0x3f7   : > { %v3131_v54 = vpack.c.bf16 %v3109_v48, %v3108_v18  ;;  %v3012_v42 = vmax.f32 %v2924_v60, %v2928_v43 }
 0x3f8   : > { %v3013_v20 = vmax.f32 %v2925_v17, %v2929_v50 }
 0x3f9   : > { %3143 = vst [vmem:[#allocation2 + $0x8] sm:$0xff] %v3131_v54 }
 0x3fb   : > { %v2791_v14 = vpop.f32.mrf.mxu2 }
 0x3fc   : > { %v2930_v56 = vadd.f32 %v2791_v14, %v9193_v52  ;;  %v2860_v29 = vpop.f32.mrf.mxu3  ;;  %v2656_v12 = vpop.f32.mrf.mxu0 }
 0x3fd   : > { %v2931_v53 = vadd.f32 %v2860_v29, %v9196_v37  ;;  %v2725_v55 = vpop.f32.mrf.mxu1  ;;  %v2932_v41 = vadd.f32 %v2656_v12, %v9199_v2 }
 0x3fe   : > { %v3014_v13 = vmax.f32 %v2926_v57, %v2930_v56  ;;  %v2933_v47 = vadd.f32 %v2725_v55, %v9202_v1 }
 0x3ff   : > { %v3015_v44 = vmax.f32 %v2927_v31, %v2931_v53  ;;  %6169 = vmatmul.msk.bf16.gmra.mxu0 %vm608_vm1, %v7277_v34  ;;  %6181 = vmatmul.msk.bf16.gmra.mxu1 %vm608_vm1, %v7277_v34 }
 0x400   : > { %v3056_v4 = vmax.f32 %v3012_v42, %v3014_v13  ;;  %6193 = vmatmul.msk.bf16.gmra.mxu2 %vm608_vm1, %v7277_v34  ;;  %v6208_v59 = vld [vmem:[#allocation2 + $0x8] sm:$0xf]  ;;  %v7326_v50 = vld [vmem:[#allocation2 + $0xc] sm:$0xf] }
 0x401   : > { %v3057_v28 = vmax.f32 %v3013_v20, %v3015_v44  ;;  %6205 = vmatmul.msk.bf16.gmra.mxu3 %vm608_vm1, %v7277_v34 }
 0x402   : > { %v3086_v33 = vadd.f32 %v9475_v40, %v3056_v4 }
 0x403   : > { %v3087_v52 = vadd.f32 %v9477_v63, %v3057_v28  ;;  %v2794_v26 = vpop.f32.mrf.mxu2 }
 0x404   : > { %v3110_v23 = vmax.f32 %v3086_v33, 0.0  ;;  %v2863_v37 = vpop.f32.mrf.mxu3  ;;  %v2658_v24 = vpop.f32.mrf.mxu0  ;;  %v2934_v18 = vadd.f32 %v2794_v26, %v9209_v46  ;;  %v10416_v33 = vld [vmem:[#allocation33_spill] sm:$0xff]  ;;  %v10417_v26 = vld [vmem:[#allocation34_spill] sm:$0xff] }
 0x405   : > { %v3111_v11 = vmax.f32 %v3087_v52, 0.0  ;;  %v2936_v35 = vadd.f32 %v2658_v24, %v9215_v49  ;;  %v2727_v30 = vpop.f32.mrf.mxu1  ;;  %v2935_v2 = vadd.f32 %v2863_v37, %v9212_v32 }
 0x406   : > { %v2937_v58 = vadd.f32 %v2727_v30, %v9218_v0 }
 0x407   : > { %v3132_v36 = vpack.c.bf16 %v3111_v11, %v3110_v23  ;;  %v3016_v25 = vmax.f32 %v2932_v41, %v2936_v35  ;;  %v10418_v11 = vld [vmem:[#allocation103_spill] sm:$0xff]  ;;  %v10419_v41 = vld [vmem:[#allocation104_spill] sm:$0xff] }
 0x408   : > { %v3017_v7 = vmax.f32 %v2933_v47, %v2937_v58 }
 0x409   : > { %3144 = vst [vmem:[#allocation2 + $0x10] sm:$0xff] %v3132_v36 }
 0x40b   : > { %v2796_v6 = vpop.f32.mrf.mxu2 }
 0x40c   : > { %v2938_v45 = vadd.f32 %v2796_v6, %v9222_v27  ;;  %v2865_v38 = vpop.f32.mrf.mxu3  ;;  %v2661_v48 = vpop.f32.mrf.mxu0 }
 0x40d   : > { %v2939_v49 = vadd.f32 %v2865_v38, %v9225_v10  ;;  %v2730_v60 = vpop.f32.mrf.mxu1  ;;  %v2940_v29 = vadd.f32 %v2661_v48, %v9228_v21  ;;  %v10420_v38 = vld [vmem:[#allocation35_spill] sm:$0xff] }
 0x40e   : > { %v3018_v43 = vmax.f32 %v2934_v18, %v2938_v45  ;;  %v2941_v53 = vadd.f32 %v2730_v60, %v9231_v39 }
 0x40f   : > { %v3019_v1 = vmax.f32 %v2935_v2, %v2939_v49  ;;  %v10421_v2 = vld [vmem:[#allocation37_spill] sm:$0xff] }
 0x410   : > { %v3058_v0 = vmax.f32 %v3016_v25, %v3018_v43  ;;  %v7327_v17 = vld [vmem:[#allocation2 + $0xc] sm:$0xf0]  ;;  %v6210_v54 = vld [vmem:[#allocation2 + $0x10] sm:$0xf0]  ;;  %v10422_v43 = vld [vmem:[#allocation105_spill] sm:$0xff] }
 0x411   : > { %v3059_v42 = vmax.f32 %v3017_v7, %v3019_v1  ;;  %v6209_v20 = vor.u32 %v7327_v17, %v6208_v59  ;;  %v6213_v14 = vor.u32 %v7326_v50, %v6210_v54  ;;  %v10423_v59 = vld [vmem:[#allocation107_spill] sm:$0xff] }
 0x412   : > { %v3088_v46 = vadd.f32 %v9475_v40, %v3058_v0 }
 0x413   : > { %v3089_v27 = vadd.f32 %v9477_v63, %v3059_v42  ;;  %3444 = vmatmul.bf16.vlgmr.msrb.gmra.mxu0 %v6209_v20  ;;  %3473 = vmatmul.bf16.vlgmr.msrb.gmra.mxu1 %v6213_v14  ;;  %v2799_v32 = vpop.f32.mrf.mxu2  ;;  %v7308_v42 = vld [vmem:[#allocation4 + $0x74] sm:$0xf] }
 0x414   : > { %v3112_v34 = vmax.f32 %v3088_v46, 0.0  ;;  %3502 = vmatmul.bf16.vlgmr.msrb.gmra.mxu2 %v6209_v20  ;;  %3531 = vmatmul.bf16.vlgmr.msrb.gmra.mxu3 %v6213_v14  ;;  %v2868_v10 = vpop.f32.mrf.mxu3  ;;  %v2663_v57 = vpop.f32.mrf.mxu0  ;;  %v2942_v52 = vadd.f32 %v2799_v32, %v10416_v33  ;;  %v6458_v20 = vld [vmem:[#allocation4 + $0x78] sm:$0xf0]  ;;  %v7324_v46 = vld [vmem:[#allocation4 + $0xf4] sm:$0xf] }
 0x415   : > { %v3113_v56 = vmax.f32 %v3089_v27, 0.0  ;;  %v2944_v12 = vadd.f32 %v2663_v57, %v9244_v16  ;;  %v2732_v31 = vpop.f32.mrf.mxu1  ;;  %v2943_v21 = vadd.f32 %v2868_v10, %v10418_v11  ;;  %v6461_v14 = vor.u32 %v7308_v42, %v6458_v20  ;;  %v6522_v27 = vld [vmem:[#allocation4 + $0xf8] sm:$0xf0]  ;;  %v6456_v32 = vld [vmem:[#allocation4 + $0x70] sm:$0xf] }
 0x416   : > { %v2945_v55 = vadd.f32 %v2732_v31, %v9247_v5  ;;  %v6525_v10 = vor.u32 %v7324_v46, %v6522_v27  ;;  %v7309_v57 = vld [vmem:[#allocation4 + $0x74] sm:$0xf0]  ;;  %v7306_v33 = vld [vmem:[#allocation4 + $0x64] sm:$0xf] }
 0x417   : > { %v3133_v13 = vpack.c.bf16 %v3113_v56, %v3112_v34  ;;  %v3020_v44 = vmax.f32 %v2940_v29, %v2944_v12  ;;  %v6520_v56 = vld [vmem:[#allocation4 + $0xf0] sm:$0xf]  ;;  %v7325_v29 = vld [vmem:[#allocation4 + $0xf4] sm:$0xf0]  ;;  %v10424_v12 = vld [vmem:[#allocation36_spill] sm:$0xff]  ;;  %3810 = vmatpush.bf16.msra.mxu2 %v6461_v14 }
 0x418   : > { %v3021_v4 = vmax.f32 %v2941_v53, %v2945_v55  ;;  %v10425_v53 = vld [vmem:[#allocation38_spill] sm:$0xff]  ;;  %3839 = vmatpush.bf16.msra.mxu3 %v6525_v10  ;;  %v10431_v20 = vld [vmem:[#allocation111_spill] sm:$0xff]  ;;  %v7307_v10 = vld [vmem:[#allocation4 + $0x64] sm:$0xf0] }
 0x419   : > { %3145 = vst [vmem:[#allocation2 + $0x18] sm:$0xff] %v3133_v13 }
 0x41b   : > { %v2801_v28 = vpop.f32.mrf.mxu2 }
 0x41c   : > { %v2946_v23 = vadd.f32 %v2801_v28, %v10417_v26  ;;  %v2870_v37 = vpop.f32.mrf.mxu3  ;;  %v2666_v24 = vpop.f32.mrf.mxu0  ;;  %v6521_v28 = vor.u32 %v7325_v29, %v6520_v56  ;;  %v7322_v26 = vld [vmem:[#allocation4 + $0xe4] sm:$0xf]  ;;  %v6512_v56 = vld [vmem:[#allocation4 + $0xe0] sm:$0xf]  ;;  %v7323_v29 = vld [vmem:[#allocation4 + $0xe4] sm:$0xf0] }
 0x41d   : > { %v2947_v16 = vadd.f32 %v2870_v37, %v10419_v41  ;;  %v2735_v35 = vpop.f32.mrf.mxu1  ;;  %v2948_v48 = vadd.f32 %v2666_v24, %v10420_v38  ;;  %v10427_v24 = vld [vmem:[#allocation108_spill] sm:$0xff] }
 0x41e   : > { %v3022_v30 = vmax.f32 %v2942_v52, %v2946_v23  ;;  %v2949_v1 = vadd.f32 %v2735_v35, %v10422_v43  ;;  %v6450_v52 = vld [vmem:[#allocation4 + $0x68] sm:$0xf0]  ;;  %v10426_v23 = vld [vmem:[#allocation106_spill] sm:$0xff]  ;;  %3781 = vmatpush.bf16.msra.mxu1 %v6521_v28 }
 0x41f   : > { %v3023_v39 = vmax.f32 %v2943_v21, %v2947_v16  ;;  %v6453_v41 = vor.u32 %v7306_v33, %v6450_v52  ;;  %v6514_v16 = vld [vmem:[#allocation4 + $0xe8] sm:$0xf0]  ;;  %v10433_v33 = vld [vmem:[#allocation42_spill] sm:$0xff] }
 0x420   : > { %v3060_v47 = vmax.f32 %v3020_v44, %v3022_v30  ;;  %v6517_v30 = vor.u32 %v7322_v26, %v6514_v16  ;;  %v10434_v16 = vld [vmem:[#allocation110_spill] sm:$0xff] }
 0x421   : > { %v3061_v5 = vmax.f32 %v3021_v4, %v3023_v39  ;;  %v6457_v4 = vor.u32 %v7309_v57, %v6456_v32  ;;  %3811 = vmatpush.bf16.msra.mxu2 %v6453_v41  ;;  %v6504_v41 = vld [vmem:[#allocation4 + $0xd0] sm:$0xf] }
 0x422   : > { %v3090_v58 = vadd.f32 %v9475_v40, %v3060_v47  ;;  %v6216_v47 = vld [vmem:[#allocation2 + $0x18] sm:$0xf]  ;;  %3840 = vmatpush.bf16.msra.mxu3 %v6517_v30  ;;  %v10435_v30 = vld [vmem:[#allocation112_spill] sm:$0xff] }
 0x423   : > { %v3091_v36 = vadd.f32 %v9477_v63, %v3061_v5  ;;  %v2804_v25 = vpop.f32.mrf.mxu2  ;;  %3752 = vmatpush.bf16.msra.mxu0 %v6457_v4  ;;  %v10432_v4 = vld [vmem:[#allocation40_spill] sm:$0xff] }
 0x424   : > { %v3114_v7 = vmax.f32 %v3090_v58, 0.0  ;;  %v2873_v6 = vpop.f32.mrf.mxu3  ;;  %v2668_v18 = vpop.f32.mrf.mxu0  ;;  %v2950_v31 = vadd.f32 %v2804_v25, %v10424_v12  ;;  %v7304_v12 = vld [vmem:[#allocation4 + $0x54] sm:$0xf] }
 0x425   : > { %v3115_v45 = vmax.f32 %v3091_v36, 0.0  ;;  %v2952_v49 = vadd.f32 %v2668_v18, %v10421_v2  ;;  %v2737_v60 = vpop.f32.mrf.mxu1  ;;  %v2951_v37 = vadd.f32 %v2873_v6, %v10426_v23  ;;  %v7328_v36 = vld [vmem:[#allocation2 + $0x1c] sm:$0xf] }
 0x426   : > { %v2953_v0 = vadd.f32 %v2737_v60, %v10423_v59 }
 0x427   : > { %v3134_v17 = vpack.c.bf16 %v3115_v45, %v3114_v7  ;;  %v3024_v50 = vmax.f32 %v2948_v48, %v2952_v49 }
 0x428   : > { %v3025_v54 = vmax.f32 %v2949_v1, %v2953_v0  ;;  %v10428_v1 = vld [vmem:[#allocation39_spill] sm:$0xff]  ;;  %v10429_v0 = vld [vmem:[#allocation41_spill] sm:$0xff] }
 0x429   : > { %3146 = vst [vmem:[#allocation2 + $0x20] sm:$0xff] %v3134_v17 }
 0x42b   : > { %v2806_v34 = vpop.f32.mrf.mxu2 }
 0x42c   : > { %v2954_v55 = vadd.f32 %v2806_v34, %v10425_v53  ;;  %v2875_v13 = vpop.f32.mrf.mxu3  ;;  %v2671_v44 = vpop.f32.mrf.mxu0  ;;  %v6448_v34 = vld [vmem:[#allocation4 + $0x60] sm:$0xf]  ;;  %v6513_v53 = vor.u32 %v7323_v29, %v6512_v56 }
 0x42d   : > { %v2955_v11 = vadd.f32 %v2875_v13, %v10427_v24  ;;  %v2740_v21 = vpop.f32.mrf.mxu1  ;;  %v2956_v59 = vadd.f32 %v2671_v44, %v10428_v1  ;;  %v6449_v57 = vor.u32 %v7307_v10, %v6448_v34  ;;  %v7320_v13 = vld [vmem:[#allocation4 + $0xd4] sm:$0xf]  ;;  %v6506_v44 = vld [vmem:[#allocation4 + $0xd8] sm:$0xf0] }
 0x42e   : > { %v3026_v35 = vmax.f32 %v2950_v31, %v2954_v55  ;;  %v6442_v55 = vld [vmem:[#allocation4 + $0x58] sm:$0xf0]  ;;  %v6509_v24 = vor.u32 %v7320_v13, %v6506_v44  ;;  %3782 = vmatpush.bf16.msra.mxu1 %v6513_v53  ;;  %v7303_v53 = vld [vmem:[#allocation4 + $0x44] sm:$0xf0]  ;;  %v6496_v13 = vld [vmem:[#allocation4 + $0xc0] sm:$0xf] }
 0x42f   : > { %v3027_v39 = vmax.f32 %v2951_v37, %v2955_v11  ;;  %3753 = vmatpush.bf16.msra.mxu0 %v6449_v57  ;;  %v6445_v37 = vor.u32 %v7304_v12, %v6442_v55  ;;  %v6440_v11 = vld [vmem:[#allocation4 + $0x50] sm:$0xf]  ;;  %v7319_v44 = vld [vmem:[#allocation4 + $0xc4] sm:$0xf0] }
 0x430   : > { %v3062_v5 = vmax.f32 %v3024_v50, %v3026_v35  ;;  %v7329_v58 = vld [vmem:[#allocation2 + $0x1c] sm:$0xf0]  ;;  %v6218_v25 = vld [vmem:[#allocation2 + $0x20] sm:$0xf0]  ;;  %3841 = vmatpush.bf16.msra.mxu3 %v6509_v24 }
 0x431   : > { %v3063_v7 = vmax.f32 %v3025_v54, %v3027_v39  ;;  %v6217_v18 = vor.u32 %v7329_v58, %v6216_v47  ;;  %v6221_v6 = vor.u32 %v7328_v36, %v6218_v25  ;;  %v10430_v54 = vld [vmem:[#allocation109_spill] sm:$0xff]  ;;  %v7321_v58 = vld [vmem:[#allocation4 + $0xd4] sm:$0xf0]  ;;  %v7302_v36 = vld [vmem:[#allocation4 + $0x44] sm:$0xf]  ;;  %3812 = vmatpush.bf16.msra.mxu2 %v6445_v37 }
 0x432   : > { %v3092_v45 = vadd.f32 %v9475_v40, %v3062_v5  ;;  %v2957_v42 = vadd.f32 %v2740_v21, %v10430_v54  ;;  %v7305_v21 = vld [vmem:[#allocation4 + $0x54] sm:$0xf0]  ;;  %v6434_v25 = vld [vmem:[#allocation4 + $0x48] sm:$0xf0]  ;;  %v10440_v37 = vld [vmem:[#allocation44_spill] sm:$0xff] }
 0x433   : > { %v3093_v38 = vadd.f32 %v9477_v63, %v3063_v7  ;;  %3449 = vmatmul.bf16.gmra.mxu0 %v6217_v18  ;;  %3478 = vmatmul.bf16.gmra.mxu1 %v6221_v6  ;;  %v2809_v48 = vpop.f32.mrf.mxu2  ;;  %v6441_v5 = vor.u32 %v7305_v21, %v6440_v11  ;;  %v10441_v11 = vld [vmem:[#allocation46_spill] sm:$0xff] }
 0x434   : > { %v3116_v2 = vmax.f32 %v3092_v45, 0.0  ;;  %3507 = vmatmul.bf16.gmra.mxu2 %v6217_v18  ;;  %3536 = vmatmul.bf16.gmra.mxu3 %v6221_v6  ;;  %v2878_v49 = vpop.f32.mrf.mxu3  ;;  %v2673_v60 = vpop.f32.mrf.mxu0  ;;  %v2958_v28 = vadd.f32 %v2809_v48, %v10432_v4  ;;  %v6505_v18 = vor.u32 %v7321_v58, %v6504_v41  ;;  %v7318_v6 = vld [vmem:[#allocation4 + $0xc4] sm:$0xf]  ;;  %v6498_v45 = vld [vmem:[#allocation4 + $0xc8] sm:$0xf0]  ;;  %v6437_v48 = vor.u32 %v7302_v36, %v6434_v25  ;;  %v10442_v58 = vld [vmem:[#allocation114_spill] sm:$0xff] }
 0x435   : > { %v3117_v43 = vmax.f32 %v3093_v38, 0.0  ;;  %v2960_v17 = vadd.f32 %v2673_v60, %v10429_v0  ;;  %v2742_v50 = vpop.f32.mrf.mxu1  ;;  %v2959_v35 = vadd.f32 %v2878_v49, %v10434_v16  ;;  %3754 = vmatpush.bf16.msra.mxu0 %v6441_v5  ;;  %v7300_v4 = vld [vmem:[#allocation4 + $0x34] sm:$0xf]  ;;  %v6488_v5 = vld [vmem:[#allocation4 + $0xb0] sm:$0xf]  ;;  %v10443_v25 = vld [vmem:[#allocation116_spill] sm:$0xff] }
 0x436   : > { %v2961_v14 = vadd.f32 %v2742_v50, %v10431_v20  ;;  %3783 = vmatpush.bf16.msra.mxu1 %v6505_v18  ;;  %3813 = vmatpush.bf16.msra.mxu2 %v6437_v48  ;;  %v6418_v48 = vld [vmem:[#allocation4 + $0x28] sm:$0xf0] }
 0x437   : > { %v3135_v46 = vpack.c.bf16 %v3117_v43, %v3116_v2  ;;  %v3028_v27 = vmax.f32 %v2956_v59, %v2960_v17  ;;  %v6501_v2 = vor.u32 %v7318_v6, %v6498_v45  ;;  %v7317_v45 = vld [vmem:[#allocation4 + $0xb4] sm:$0xf0] }
 0x438   : > { %v3029_v32 = vmax.f32 %v2957_v42, %v2961_v14  ;;  %v10436_v42 = vld [vmem:[#allocation43_spill] sm:$0xff]  ;;  %v10437_v14 = vld [vmem:[#allocation45_spill] sm:$0xff] }
 0x439   : > { %3147 = vst [vmem:[#allocation2 + $0x28] sm:$0xff] %v3135_v46  ;;  %3842 = vmatpush.bf16.msra.mxu3 %v6501_v2 }
 0x43b   : > { %v2811_v31 = vpop.f32.mrf.mxu2 }
 0x43c   : > { %v2962_v52 = vadd.f32 %v2811_v31, %v10433_v33  ;;  %v2880_v26 = vpop.f32.mrf.mxu3  ;;  %v2676_v23 = vpop.f32.mrf.mxu0  ;;  %v6432_v31 = vld [vmem:[#allocation4 + $0x40] sm:$0xf]  ;;  %v6497_v33 = vor.u32 %v7319_v44, %v6496_v13 }
 0x43d   : > { %v2963_v39 = vadd.f32 %v2880_v26, %v10435_v30  ;;  %v2745_v47 = vpop.f32.mrf.mxu1  ;;  %v2964_v20 = vadd.f32 %v2676_v23, %v10436_v42  ;;  %v6433_v55 = vor.u32 %v7303_v53, %v6432_v31  ;;  %v7316_v26 = vld [vmem:[#allocation4 + $0xb4] sm:$0xf]  ;;  %v6490_v23 = vld [vmem:[#allocation4 + $0xb8] sm:$0xf0] }
 0x43e   : > { %v3030_v7 = vmax.f32 %v2958_v28, %v2962_v52  ;;  %v6426_v52 = vld [vmem:[#allocation4 + $0x38] sm:$0xf0]  ;;  %v6493_v30 = vor.u32 %v7316_v26, %v6490_v23  ;;  %3784 = vmatpush.bf16.msra.mxu1 %v6497_v33  ;;  %v6416_v26 = vld [vmem:[#allocation4 + $0x20] sm:$0xf]  ;;  %v7299_v23 = vld [vmem:[#allocation4 + $0x24] sm:$0xf0] }
 0x43f   : > { %v3031_v38 = vmax.f32 %v2959_v35, %v2963_v39  ;;  %3755 = vmatpush.bf16.msra.mxu0 %v6433_v55  ;;  %v6429_v35 = vor.u32 %v7300_v4, %v6426_v52  ;;  %v6424_v39 = vld [vmem:[#allocation4 + $0x30] sm:$0xf]  ;;  %v10444_v53 = vld [vmem:[#allocation47_spill] sm:$0xff]  ;;  %v10445_v55 = vld [vmem:[#allocation49_spill] sm:$0xff] }
 0x440   : > { %v3064_v60 = vmax.f32 %v3028_v27, %v3030_v7  ;;  %v10438_v27 = vld [vmem:[#allocation113_spill] sm:$0xff]  ;;  %3843 = vmatpush.bf16.msra.mxu3 %v6493_v30  ;;  %v10447_v33 = vld [vmem:[#allocation119_spill] sm:$0xff] }
 0x441   : > { %v3065_v49 = vmax.f32 %v3029_v32, %v3031_v38  ;;  %v2965_v10 = vadd.f32 %v2745_v47, %v10438_v27  ;;  %v10439_v32 = vld [vmem:[#allocation115_spill] sm:$0xff]  ;;  %v7298_v38 = vld [vmem:[#allocation4 + $0x24] sm:$0xf]  ;;  %3814 = vmatpush.bf16.msra.mxu2 %v6429_v35  ;;  %v7330_v42 = vld [vmem:[#allocation2 + $0x2c] sm:$0xf] }
 0x442   : > { %v3094_v43 = vadd.f32 %v9475_v40, %v3064_v60  ;;  %v7301_v47 = vld [vmem:[#allocation4 + $0x34] sm:$0xf0]  ;;  %v6489_v60 = vor.u32 %v7317_v45, %v6488_v5  ;;  %v10446_v4 = vld [vmem:[#allocation117_spill] sm:$0xff]  ;;  %v7312_v5 = vld [vmem:[#allocation4 + $0x94] sm:$0xf] }
 0x443   : > { %v3095_v1 = vadd.f32 %v9477_v63, %v3065_v49  ;;  %v2814_v59 = vpop.f32.mrf.mxu2  ;;  %v6425_v6 = vor.u32 %v7301_v47, %v6424_v39  ;;  %v7314_v49 = vld [vmem:[#allocation4 + $0xa4] sm:$0xf]  ;;  %v7296_v39 = vld [vmem:[#allocation4 + $0x14] sm:$0xf]  ;;  %v7313_v45 = vld [vmem:[#allocation4 + $0x94] sm:$0xf0] }
 0x444   : > { %v3118_v0 = vmax.f32 %v3094_v43, 0.0  ;;  %v2883_v17 = vpop.f32.mrf.mxu3  ;;  %v2678_v50 = vpop.f32.mrf.mxu0  ;;  %v2966_v24 = vadd.f32 %v2814_v59, %v10440_v37  ;;  %v6482_v43 = vld [vmem:[#allocation4 + $0xa8] sm:$0xf0]  ;;  %v6224_v59 = vld [vmem:[#allocation2 + $0x28] sm:$0xf]  ;;  %3785 = vmatpush.bf16.msra.mxu1 %v6489_v60 }
 0x445   : > { %v3119_v54 = vmax.f32 %v3095_v1, 0.0  ;;  %v2968_v46 = vadd.f32 %v2678_v50, %v10437_v14  ;;  %v2747_v34 = vpop.f32.mrf.mxu1  ;;  %v2967_v36 = vadd.f32 %v2883_v17, %v10442_v58  ;;  %v6485_v50 = vor.u32 %v7314_v49, %v6482_v43  ;;  %3756 = vmatpush.bf16.msra.mxu0 %v6425_v6  ;;  %v6480_v37 = vld [vmem:[#allocation4 + $0xa0] sm:$0xf]  ;;  %v6474_v58 = vld [vmem:[#allocation4 + $0x98] sm:$0xf0] }
 0x446   : > { %v2969_v57 = vadd.f32 %v2747_v34, %v10439_v32  ;;  %v6472_v6 = vld [vmem:[#allocation4 + $0x90] sm:$0xf] }
 0x447   : > { %v3136_v56 = vpack.c.bf16 %v3119_v54, %v3118_v0  ;;  %v3032_v29 = vmax.f32 %v2964_v20, %v2968_v46  ;;  %v6421_v0 = vor.u32 %v7298_v38, %v6418_v48  ;;  %3844 = vmatpush.bf16.msra.mxu3 %v6485_v50  ;;  %v10448_v38 = vld [vmem:[#allocation48_spill] sm:$0xff]  ;;  %v6402_v50 = vld [vmem:[#allocation4 + $0x8] sm:$0xf0] }
 0x448   : > { %v3033_v12 = vmax.f32 %v2965_v10, %v2969_v57 }
 0x449   : > { %3148 = vst [vmem:[#allocation2 + $0x30] sm:$0xff] %v3136_v56  ;;  %3815 = vmatpush.bf16.msra.mxu2 %v6421_v0  ;;  %v7294_v0 = vld [vmem:[#allocation4 + $0x4] sm:$0xf] }
 0x44b   : > { %v2816_v28 = vpop.f32.mrf.mxu2 }
 0x44c   : > { %v2970_v21 = vadd.f32 %v2816_v28, %v10441_v11  ;;  %v2885_v41 = vpop.f32.mrf.mxu3  ;;  %v2681_v16 = vpop.f32.mrf.mxu0 }
 0x44d   : > { %v2971_v7 = vadd.f32 %v2885_v41, %v10443_v25  ;;  %v2750_v18 = vpop.f32.mrf.mxu1  ;;  %v7315_v41 = vld [vmem:[#allocation4 + $0xa4] sm:$0xf0] }
 0x44e   : > { %v3034_v2 = vmax.f32 %v2966_v24, %v2970_v21  ;;  %v2973_v28 = vadd.f32 %v2750_v18, %v10446_v4  ;;  %v6417_v21 = vor.u32 %v7299_v23, %v6416_v26  ;;  %v6481_v30 = vor.u32 %v7315_v41, %v6480_v37  ;;  %v7297_v18 = vld [vmem:[#allocation4 + $0x14] sm:$0xf0]  ;;  %v10453_v41 = vld [vmem:[#allocation53_spill] sm:$0xff] }
 0x44f   : > { %v3035_v1 = vmax.f32 %v2967_v36, %v2971_v7  ;;  %v6408_v36 = vld [vmem:[#allocation4 + $0x10] sm:$0xf]  ;;  %v6477_v7 = vor.u32 %v7312_v5, %v6474_v58 }
 0x450   : > { %v3066_v54 = vmax.f32 %v3032_v29, %v3034_v2  ;;  %v7331_v17 = vld [vmem:[#allocation2 + $0x2c] sm:$0xf0]  ;;  %v6226_v20 = vld [vmem:[#allocation2 + $0x30] sm:$0xf0]  ;;  %3757 = vmatpush.bf16.msra.mxu0 %v6417_v21  ;;  %3786 = vmatpush.bf16.msra.mxu1 %v6481_v30 }
 0x451   : > { %v3067_v14 = vmax.f32 %v3033_v12, %v3035_v1  ;;  %v6225_v46 = vor.u32 %v7331_v17, %v6224_v59  ;;  %v6229_v34 = vor.u32 %v7330_v42, %v6226_v20  ;;  %v2972_v12 = vadd.f32 %v2681_v16, %v10444_v53  ;;  %v6410_v16 = vld [vmem:[#allocation4 + $0x18] sm:$0xf0]  ;;  %v10449_v2 = vld [vmem:[#allocation50_spill] sm:$0xff]  ;;  %v10451_v20 = vld [vmem:[#allocation120_spill] sm:$0xff]  ;;  %3845 = vmatpush.bf16.msra.mxu3 %v6477_v7 }
 0x452   : > { %v3096_v27 = vadd.f32 %v9475_v40, %v3066_v54  ;;  %v6413_v47 = vor.u32 %v7296_v39, %v6410_v16  ;;  %v6409_v1 = vor.u32 %v7297_v18, %v6408_v36  ;;  %v6473_v59 = vor.u32 %v7313_v45, %v6472_v6  ;;  %v7310_v54 = vld [vmem:[#allocation4 + $0x84] sm:$0xf]  ;;  %v10450_v17 = vld [vmem:[#allocation118_spill] sm:$0xff]  ;;  %v10454_v39 = vld [vmem:[#allocation121_spill] sm:$0xff] }
 0x453   : > { %v3097_v10 = vadd.f32 %v9477_v63, %v3067_v14  ;;  %3454 = vmatmul.bf16.gmra.mxu0 %v6225_v46  ;;  %3483 = vmatmul.bf16.gmra.mxu1 %v6229_v34  ;;  %v2819_v32 = vpop.f32.mrf.mxu2  ;;  %v6618_v7 = vld [vmem:[#allocation4 + $0x278] sm:$0xf0]  ;;  %v7404_v6 = vld [vmem:[#allocation4 + $0x2f4] sm:$0xf] }
 0x454   : > { %v3120_v57 = vmax.f32 %v3096_v27, 0.0  ;;  %3512 = vmatmul.bf16.gmra.mxu2 %v6225_v46  ;;  %3541 = vmatmul.bf16.gmra.mxu3 %v6229_v34  ;;  %v2888_v56 = vpop.f32.mrf.mxu3  ;;  %v2683_v29 = vpop.f32.mrf.mxu0  ;;  %v2974_v48 = vadd.f32 %v2819_v32, %v10448_v38  ;;  %v6405_v34 = vor.u32 %v7294_v0, %v6402_v50  ;;  %v6466_v27 = vld [vmem:[#allocation4 + $0x88] sm:$0xf0]  ;;  %v6682_v45 = vld [vmem:[#allocation4 + $0x2f8] sm:$0xf0] }
 0x455   : > { %v3121_v31 = vmax.f32 %v3097_v10, 0.0  ;;  %v2976_v13 = vadd.f32 %v2683_v29, %v10445_v55  ;;  %v2752_v44 = vpop.f32.mrf.mxu1  ;;  %3816 = vmatpush.bf16.msra.mxu2 %v6413_v47  ;;  %v2975_v42 = vadd.f32 %v2888_v56, %v10450_v17  ;;  %3758 = vmatpush.bf16.msra.mxu0 %v6409_v1  ;;  %v6469_v32 = vor.u32 %v7310_v54, %v6466_v27  ;;  %v7295_v29 = vld [vmem:[#allocation4 + $0x4] sm:$0xf0]  ;;  %v6616_v38 = vld [vmem:[#allocation4 + $0x270] sm:$0xf]  ;;  %v10456_v1 = vld [vmem:[#allocation52_spill] sm:$0xff] }
 0x456   : > { %v2977_v52 = vadd.f32 %v2752_v44, %v10447_v33  ;;  %3787 = vmatpush.bf16.msra.mxu1 %v6473_v59  ;;  %v7311_v55 = vld [vmem:[#allocation4 + $0x84] sm:$0xf0] }
 0x457   : > { %v3137_v24 = vpack.c.bf16 %v3121_v31, %v3120_v57  ;;  %v3036_v11 = vmax.f32 %v2972_v12, %v2976_v13  ;;  %v6400_v57 = vld [vmem:[#allocation4] sm:$0xf]  ;;  %3846 = vmatpush.bf16.msra.mxu3 %v6469_v32 }
 0x458   : > { %v3037_v35 = vmax.f32 %v2973_v28, %v2977_v52  ;;  %v6464_v31 = vld [vmem:[#allocation4 + $0x80] sm:$0xf]  ;;  %v6401_v12 = vor.u32 %v7295_v29, %v6400_v57  ;;  %v6674_v29 = vld [vmem:[#allocation4 + $0x2e8] sm:$0xf0] }
 0x459   : > { %3149 = vst [vmem:[#allocation2 + $0x38] sm:$0xff] %v3137_v24  ;;  %3817 = vmatpush.bf16.msra.mxu2 %v6405_v34  ;;  %v6465_v44 = vor.u32 %v7311_v55, %v6464_v31  ;;  %v10452_v24 = vld [vmem:[#allocation51_spill] sm:$0xff]  ;;  %v10457_v34 = vld [vmem:[#allocation122_spill] sm:$0xff] }
 0x45a   : > { %3759 = vmatpush.bf16.msra.mxu0 %v6401_v12 }
 0x45b   : > { %v2821_v25 = vpop.f32.mrf.mxu2  ;;  %3788 = vmatpush.bf16.msra.mxu1 %v6465_v44 }
 0x45c   : > { %v2978_v60 = vadd.f32 %v2821_v25, %v10449_v2  ;;  %v2890_v49 = vpop.f32.mrf.mxu3  ;;  %v2686_v43 = vpop.f32.mrf.mxu0  ;;  %v7388_v25 = vld [vmem:[#allocation4 + $0x274] sm:$0xf]  ;;  %v6685_v2 = vor.u32 %v7404_v6, %v6682_v45  ;;  %v7403_v6 = vld [vmem:[#allocation4 + $0x2e4] sm:$0xf0] }
 0x45d   : > { %v2979_v14 = vadd.f32 %v2890_v49, %v10451_v20  ;;  %v2755_v46 = vpop.f32.mrf.mxu1  ;;  %v2980_v21 = vadd.f32 %v2686_v43, %v10452_v24  ;;  %v6621_v18 = vor.u32 %v7388_v25, %v6618_v7  ;;  %v6680_v49 = vld [vmem:[#allocation4 + $0x2f0] sm:$0xf]  ;;  %v7405_v43 = vld [vmem:[#allocation4 + $0x2f4] sm:$0xf0]  ;;  %v7386_v20 = vld [vmem:[#allocation4 + $0x264] sm:$0xf] }
 0x45e   : > { %v3038_v10 = vmax.f32 %v2974_v48, %v2978_v60  ;;  %v2981_v16 = vadd.f32 %v2755_v46, %v10454_v39  ;;  %v7389_v60 = vld [vmem:[#allocation4 + $0x274] sm:$0xf0]  ;;  %v7402_v46 = vld [vmem:[#allocation4 + $0x2e4] sm:$0xf]  ;;  %4197 = vmatpush.bf16.msrb.mxu3 %v6685_v2  ;;  %v10458_v39 = vld [vmem:[#allocation54_spill] sm:$0xff] }
 0x45f   : > { %v3039_v53 = vmax.f32 %v2975_v42, %v2979_v14  ;;  %4168 = vmatpush.bf16.msrb.mxu2 %v6621_v18  ;;  %v6617_v17 = vor.u32 %v7389_v60, %v6616_v38  ;;  %v6681_v42 = vor.u32 %v7405_v43, %v6680_v49  ;;  %v6610_v14 = vld [vmem:[#allocation4 + $0x268] sm:$0xf0]  ;;  %v7387_v25 = vld [vmem:[#allocation4 + $0x264] sm:$0xf0]  ;;  %v6672_v18 = vld [vmem:[#allocation4 + $0x2e0] sm:$0xf] }
 0x460   : > { %v3068_v13 = vmax.f32 %v3036_v11, %v3038_v10  ;;  %v6613_v57 = vor.u32 %v7386_v20, %v6610_v14  ;;  %v6232_v12 = vld [vmem:[#allocation2 + $0x38] sm:$0xf]  ;;  %v7332_v44 = vld [vmem:[#allocation2 + $0x3c] sm:$0xf]  ;;  %v7384_v45 = vld [vmem:[#allocation4 + $0x254] sm:$0xf] }
 0x461   : > { %v3069_v56 = vmax.f32 %v3037_v35, %v3039_v53  ;;  %v10455_v35 = vld [vmem:[#allocation123_spill] sm:$0xff]  ;;  %4110 = vmatpush.bf16.msrb.mxu0 %v6617_v17  ;;  %4139 = vmatpush.bf16.msrb.mxu1 %v6681_v42  ;;  %v7400_v2 = vld [vmem:[#allocation4 + $0x2d4] sm:$0xf]  ;;  %v6664_v42 = vld [vmem:[#allocation4 + $0x2d0] sm:$0xf] }
 0x462   : > { %v3098_v4 = vadd.f32 %v9475_v40, %v3068_v13  ;;  %v10459_v49 = vld [vmem:[#allocation55_spill] sm:$0xff]  ;;  %v10460_v20 = vld [vmem:[#allocation124_spill] sm:$0xff] }
 0x463   : > { %v3099_v28 = vadd.f32 %v9477_v63, %v3069_v56  ;;  %v2824_v33 = vpop.f32.mrf.mxu2  ;;  %4169 = vmatpush.bf16.msrb.mxu2 %v6613_v57  ;;  %v7385_v17 = vld [vmem:[#allocation4 + $0x254] sm:$0xf0]  ;;  %v6594_v57 = vld [vmem:[#allocation4 + $0x248] sm:$0xf0] }
 0x464   : > { %v3122_v52 = vmax.f32 %v3098_v4, 0.0  ;;  %v2893_v26 = vpop.f32.mrf.mxu3  ;;  %v2688_v23 = vpop.f32.mrf.mxu0  ;;  %v2982_v59 = vadd.f32 %v2824_v33, %v10456_v1 }
 0x465   : > { %v3123_v37 = vmax.f32 %v3099_v28, 0.0  ;;  %v2984_v30 = vadd.f32 %v2688_v23, %v10453_v41  ;;  %v2757_v11 = vpop.f32.mrf.mxu1  ;;  %v2983_v27 = vadd.f32 %v2893_v26, %v10457_v34 }
 0x466   : > { %v2985_v47 = vadd.f32 %v2757_v11, %v10455_v35 }
 0x467   : > { %v3138_v5 = vpack.c.bf16 %v3123_v37, %v3122_v52  ;;  %v3040_v58 = vmax.f32 %v2980_v21, %v2984_v30 }
 0x468   : > { %v3041_v36 = vmax.f32 %v2981_v16, %v2985_v47 }
 0x469   : > { %3150 = vst [vmem:[#allocation2 + $0x40] sm:$0xff] %v3138_v5 }
 0x46b   : > { %v2826_v48 = vpop.f32.mrf.mxu2 }
 0x46c   : > { %v2986_v0 = vadd.f32 %v2826_v48, %v9396_v62  ;;  %v2895_v50 = vpop.f32.mrf.mxu3  ;;  %v2691_v54 = vpop.f32.mrf.mxu0  ;;  %v6677_v62 = vor.u32 %v7402_v46, %v6674_v29  ;;  %v6673_v48 = vor.u32 %v7403_v6, %v6672_v18  ;;  %v10461_v46 = vld [vmem:[#allocation125_spill] sm:$0xff] }
 0x46d   : > { %v2987_v10 = vadd.f32 %v2895_v50, %v9399_v15  ;;  %v2760_v32 = vpop.f32.mrf.mxu1  ;;  %v2988_v41 = vadd.f32 %v2691_v54, %v9402_v51  ;;  %v6602_v51 = vld [vmem:[#allocation4 + $0x258] sm:$0xf0]  ;;  %v6600_v54 = vld [vmem:[#allocation4 + $0x250] sm:$0xf] }
 0x46e   : > { %v3042_v31 = vmax.f32 %v2982_v59, %v2986_v0  ;;  %4198 = vmatpush.bf16.msrb.mxu3 %v6677_v62  ;;  %v2989_v16 = vadd.f32 %v2760_v32, %v10458_v39  ;;  %v7287_v59 = vld [vmem:[#allocation2 + $0x4] sm:$0xf0]  ;;  %v6605_v0 = vor.u32 %v7384_v45, %v6602_v51  ;;  %4140 = vmatpush.bf16.msrb.mxu1 %v6673_v48  ;;  %v7401_v32 = vld [vmem:[#allocation4 + $0x2d4] sm:$0xf0]  ;;  %v6650_v48 = vld [vmem:[#allocation4 + $0x2b8] sm:$0xf0] }
 0x46f   : > { %v3043_v53 = vmax.f32 %v2983_v27, %v2987_v10  ;;  %v6601_v10 = vor.u32 %v7385_v17, %v6600_v54  ;;  %v6665_v62 = vor.u32 %v7401_v32, %v6664_v42  ;;  %v10463_v51 = vld [vmem:[#allocation126_spill] sm:$0xff]  ;;  %v6578_v54 = vld [vmem:[#allocation4 + $0x228] sm:$0xf0] }
 0x470   : > { %v3070_v55 = vmax.f32 %v3040_v58, %v3042_v31  ;;  %v7333_v13 = vld [vmem:[#allocation2 + $0x3c] sm:$0xf0]  ;;  %v6234_v56 = vld [vmem:[#allocation2 + $0x40] sm:$0xf0]  ;;  %v6370_v31 = vld [vmem:[#allocation2 + $0x8] sm:$0xf0]  ;;  %4170 = vmatpush.bf16.msrb.mxu2 %v6605_v0 }
 0x471   : > { %v3071_v4 = vmax.f32 %v3041_v36, %v3043_v53  ;;  %v6233_v28 = vor.u32 %v7333_v13, %v6232_v12  ;;  %v6237_v33 = vor.u32 %v7332_v44, %v6234_v56  ;;  %v6608_v36 = vld [vmem:[#allocation4 + $0x260] sm:$0xf]  ;;  %v7398_v53 = vld [vmem:[#allocation4 + $0x2c4] sm:$0xf]  ;;  %v6658_v12 = vld [vmem:[#allocation4 + $0x2c8] sm:$0xf0] }
 0x472   : > { %v3100_v15 = vadd.f32 %v9475_v40, %v3070_v55  ;;  %v6609_v7 = vor.u32 %v7387_v25, %v6608_v36  ;;  %v6368_v13 = vld [vmem:[#allocation2] sm:$0xf]  ;;  %v7286_v44 = vld [vmem:[#allocation2 + $0x4] sm:$0xf]  ;;  %4141 = vmatpush.bf16.msrb.mxu1 %v6665_v62 }
 0x473   : > { %v3101_v52 = vadd.f32 %v9477_v63, %v3071_v4  ;;  %3459 = vmatmul.bf16.gmra.mxu0 %v6233_v28  ;;  %3488 = vmatmul.bf16.gmra.mxu1 %v6237_v33  ;;  %v2829_v26 = vpop.f32.mrf.mxu2  ;;  %v6661_v4 = vor.u32 %v7398_v53, %v6658_v12  ;;  %v10462_v25 = vld [vmem:[#allocation56_spill] sm:$0xff]  ;;  %v7289_v12 = vld [vmem:[#allocation2 + $0x14] sm:$0xf0] }
 0x474   : > { %v3124_v23 = vmax.f32 %v3100_v15, 0.0  ;;  %3517 = vmatmul.bf16.gmra.mxu2 %v6233_v28  ;;  %3546 = vmatmul.bf16.gmra.mxu3 %v6237_v33  ;;  %v2898_v37 = vpop.f32.mrf.mxu3  ;;  %v2693_v24 = vpop.f32.mrf.mxu0  ;;  %v2990_v60 = vadd.f32 %v2829_v26, %v9412_v3  ;;  %v7382_v3 = vld [vmem:[#allocation4 + $0x244] sm:$0xf]  ;;  %v6592_v33 = vld [vmem:[#allocation4 + $0x240] sm:$0xf] }
 0x475   : > { %v3125_v21 = vmax.f32 %v3101_v52, 0.0  ;;  %v2992_v30 = vadd.f32 %v2693_v24, %v9418_v8  ;;  %v2762_v11 = vpop.f32.mrf.mxu1  ;;  %v6666_v8 = vld [vmem:[#allocation4 + $0x2d8] sm:$0xf0]  ;;  %4111 = vmatpush.bf16.msrb.mxu0 %v6609_v7  ;;  %v2991_v14 = vadd.f32 %v2898_v37, %v10460_v20  ;;  %v6597_v56 = vor.u32 %v7382_v3, %v6594_v57  ;;  %v7383_v15 = vld [vmem:[#allocation4 + $0x244] sm:$0xf0] }
 0x476   : > { %v2993_v35 = vadd.f32 %v2762_v11, %v9421_v9  ;;  %v6669_v50 = vor.u32 %v7400_v2, %v6666_v8  ;;  %v6656_v52 = vld [vmem:[#allocation4 + $0x2c0] sm:$0xf]  ;;  %v6373_v37 = vor.u32 %v7286_v44, %v6370_v31  ;;  %v6593_v24 = vor.u32 %v7383_v15, %v6592_v33  ;;  %v10465_v57 = vld [vmem:[#allocation127_spill] sm:$0xff]  ;;  %v10466_v31 = vld [vmem:[#allocation58_spill] sm:$0xff] }
 0x477   : > { %v3139_v47 = vpack.c.bf16 %v3125_v21, %v3124_v23  ;;  %v3044_v5 = vmax.f32 %v2988_v41, %v2992_v30  ;;  %v6369_v23 = vor.u32 %v7287_v59, %v6368_v13  ;;  %v7399_v21 = vld [vmem:[#allocation4 + $0x2c4] sm:$0xf0]  ;;  %4171 = vmatpush.bf16.msrb.mxu2 %v6597_v56  ;;  %v7288_v33 = vld [vmem:[#allocation2 + $0x14] sm:$0xf] }
 0x478   : > { %v3045_v58 = vmax.f32 %v2989_v16, %v2993_v35  ;;  %4199 = vmatpush.bf16.msrb.mxu3 %v6669_v50  ;;  %v6657_v30 = vor.u32 %v7399_v21, %v6656_v52  ;;  %v7397_v50 = vld [vmem:[#allocation4 + $0x2b4] sm:$0xf0] }
 0x479   : > { %3151 = vst [vmem:[#allocation2 + $0x48] sm:$0xff] %v3139_v47  ;;  %4112 = vmatpush.bf16.msrb.mxu0 %v6601_v10 }
 0x47a   : > { %4142 = vmatpush.bf16.msrb.mxu1 %v6657_v30  ;;  %v7395_v30 = vld [vmem:[#allocation4 + $0x2a4] sm:$0xf0] }
 0x47b   : > { %v2831_v38 = vpop.f32.mrf.mxu2 }
 0x47c   : > { %v2994_v43 = vadd.f32 %v2831_v38, %v10459_v49  ;;  %v2900_v9 = vpop.f32.mrf.mxu3  ;;  %v2696_v1 = vpop.f32.mrf.mxu0  ;;  %4200 = vmatpush.bf16.msrb.mxu3 %v6661_v4  ;;  %v7396_v38 = vld [vmem:[#allocation4 + $0x2b4] sm:$0xf]  ;;  %v6584_v49 = vld [vmem:[#allocation4 + $0x230] sm:$0xf] }
 0x47d   : > { %v2995_v34 = vadd.f32 %v2900_v9, %v10461_v46  ;;  %v2765_v27 = vpop.f32.mrf.mxu1  ;;  %v2996_v7 = vadd.f32 %v2696_v1, %v10462_v25  ;;  %4113 = vmatpush.bf16.msrb.mxu0 %v6593_v24  ;;  %v6648_v9 = vld [vmem:[#allocation4 + $0x2b0] sm:$0xf]  ;;  %v6642_v46 = vld [vmem:[#allocation4 + $0x2a8] sm:$0xf0]  ;;  %v6640_v24 = vld [vmem:[#allocation4 + $0x2a0] sm:$0xf] }
 0x47e   : > { %v3046_v29 = vmax.f32 %v2990_v60, %v2994_v43  ;;  %v2997_v2 = vadd.f32 %v2765_v27, %v10463_v51  ;;  %v6653_v60 = vor.u32 %v7396_v38, %v6650_v48  ;;  %v7381_v43 = vld [vmem:[#allocation4 + $0x234] sm:$0xf0]  ;;  %v6649_v42 = vor.u32 %v7397_v50, %v6648_v9  ;;  %v10464_v27 = vld [vmem:[#allocation57_spill] sm:$0xff]  ;;  %v6634_v25 = vld [vmem:[#allocation4 + $0x298] sm:$0xf0] }
 0x47f   : > { %v3047_v55 = vmax.f32 %v2991_v14, %v2995_v34  ;;  %v6585_v1 = vor.u32 %v7381_v43, %v6584_v49  ;;  %v7394_v14 = vld [vmem:[#allocation4 + $0x2a4] sm:$0xf]  ;;  %v7377_v38 = vld [vmem:[#allocation4 + $0x214] sm:$0xf0]  ;;  %v6632_v51 = vld [vmem:[#allocation4 + $0x290] sm:$0xf] }
 0x480   : > { %v3072_v28 = vmax.f32 %v3044_v5, %v3046_v29  ;;  %v7380_v5 = vld [vmem:[#allocation4 + $0x234] sm:$0xf]  ;;  %4201 = vmatpush.bf16.msrb.mxu3 %v6653_v60  ;;  %4143 = vmatpush.bf16.msrb.mxu1 %v6649_v42  ;;  %v6562_v49 = vld [vmem:[#allocation4 + $0x208] sm:$0xf0]  ;;  %v7390_v43 = vld [vmem:[#allocation4 + $0x284] sm:$0xf] }
 0x481   : > { %v3073_v26 = vmax.f32 %v3045_v58, %v3047_v55  ;;  %v6586_v58 = vld [vmem:[#allocation4 + $0x238] sm:$0xf0]  ;;  %4114 = vmatpush.bf16.msrb.mxu0 %v6585_v1  ;;  %v6626_v9 = vld [vmem:[#allocation4 + $0x288] sm:$0xf0]  ;;  %v7291_v1 = vld [vmem:[#allocation2 + $0x24] sm:$0xf0] }
 0x482   : > { %v3102_v41 = vadd.f32 %v9475_v40, %v3072_v28  ;;  %v6589_v45 = vor.u32 %v7380_v5, %v6586_v58  ;;  %v6378_v55 = vld [vmem:[#allocation2 + $0x18] sm:$0xf0]  ;;  %v6376_v28 = vld [vmem:[#allocation2 + $0x10] sm:$0xf]  ;;  %v6386_v50 = vld [vmem:[#allocation2 + $0x28] sm:$0xf0] }
 0x483   : > { %v3103_v11 = vadd.f32 %v9477_v63, %v3073_v26  ;;  %3760 = vmatmul.bf16.vlgmr.msra.gmra.mxu0 %v6369_v23  ;;  %3789 = vmatmul.bf16.vlgmr.msra.gmra.mxu1 %v6373_v37  ;;  %v2834_v39 = vpop.f32.mrf.mxu2  ;;  %v6377_v26 = vor.u32 %v7289_v12, %v6376_v28  ;;  %v7442_v28 = vld [vmem:[#allocation4 + $0x3e4] sm:$0xf] }
 0x484   : > { %v3126_v16 = vmax.f32 %v3102_v41, 0.0  ;;  %3818 = vmatmul.bf16.vlgmr.msra.gmra.mxu2 %v6369_v23  ;;  %3847 = vmatmul.bf16.vlgmr.msra.gmra.mxu3 %v6373_v37  ;;  %v2903_v35 = vpop.f32.mrf.mxu3  ;;  %v2698_v47 = vpop.f32.mrf.mxu0  ;;  %v2998_v10 = vadd.f32 %v2834_v39, %v10464_v27  ;;  %v6576_v23 = vld [vmem:[#allocation4 + $0x220] sm:$0xf]  ;;  %v7379_v37 = vld [vmem:[#allocation4 + $0x224] sm:$0xf0]  ;;  %v6641_v39 = vor.u32 %v7395_v30, %v6640_v24 }
 0x485   : > { %v3127_v36 = vmax.f32 %v3103_v11, 0.0  ;;  %v3000_v18 = vadd.f32 %v2698_v47, %v9447_v61  ;;  %v2767_v6 = vpop.f32.mrf.mxu1  ;;  %4172 = vmatpush.bf16.msrb.mxu2 %v6589_v45  ;;  %v7378_v61 = vld [vmem:[#allocation4 + $0x224] sm:$0xf]  ;;  %v2999_v29 = vadd.f32 %v2903_v35, %v10465_v57  ;;  %v6577_v41 = vor.u32 %v7379_v37, %v6576_v23  ;;  %v7376_v35 = vld [vmem:[#allocation4 + $0x214] sm:$0xf] }
 0x486   : > { %v3001_v8 = vadd.f32 %v2767_v6, %v9450_v19  ;;  %v6581_v20 = vor.u32 %v7378_v61, %v6578_v54  ;;  %v6645_v19 = vor.u32 %v7394_v14, %v6642_v46  ;;  %v6570_v47 = vld [vmem:[#allocation4 + $0x218] sm:$0xf0]  ;;  %4144 = vmatpush.bf16.msrb.mxu1 %v6641_v39  ;;  %v6568_v45 = vld [vmem:[#allocation4 + $0x210] sm:$0xf]  ;;  %v6560_v61 = vld [vmem:[#allocation4 + $0x200] sm:$0xf] }
 0x487   : > { %v3140_v59 = vpack.c.bf16 %v3127_v36, %v3126_v16  ;;  %v3048_v0 = vmax.f32 %v2996_v7, %v3000_v18  ;;  %4115 = vmatpush.bf16.msrb.mxu0 %v6577_v41  ;;  %v6573_v58 = vor.u32 %v7376_v35, %v6570_v47  ;;  %v7392_v36 = vld [vmem:[#allocation4 + $0x294] sm:$0xf]  ;;  %v6569_v48 = vor.u32 %v7377_v38, %v6568_v45  ;;  %v7375_v54 = vld [vmem:[#allocation4 + $0x204] sm:$0xf0]  ;;  %v6384_v14 = vld [vmem:[#allocation2 + $0x20] sm:$0xf] }
 0x488   : > { %v3049_v17 = vmax.f32 %v2997_v2, %v3001_v8  ;;  %4202 = vmatpush.bf16.msrb.mxu3 %v6645_v19  ;;  %v6637_v7 = vor.u32 %v7392_v36, %v6634_v25  ;;  %v7393_v2 = vld [vmem:[#allocation4 + $0x294] sm:$0xf0]  ;;  %v7374_v8 = vld [vmem:[#allocation4 + $0x204] sm:$0xf]  ;;  %v6561_v42 = vor.u32 %v7375_v54, %v6560_v61  ;;  %v6394_v24 = vld [vmem:[#allocation2 + $0x38] sm:$0xf0] }
 0x489   : > { %3152 = vst [vmem:[#allocation2 + $0x50] sm:$0xff] %v3140_v59  ;;  %4173 = vmatpush.bf16.msrb.mxu2 %v6581_v20  ;;  %v6633_v60 = vor.u32 %v7393_v2, %v6632_v51  ;;  %v6565_v59 = vor.u32 %v7374_v8, %v6562_v49  ;;  %v7391_v20 = vld [vmem:[#allocation4 + $0x284] sm:$0xf0]  ;;  %v7290_v46 = vld [vmem:[#allocation2 + $0x24] sm:$0xf] }
 0x48a   : > { %v6389_v27 = vor.u32 %v7290_v46, %v6386_v50  ;;  %v7293_v37 = vld [vmem:[#allocation2 + $0x34] sm:$0xf0]  ;;  %v6392_v39 = vld [vmem:[#allocation2 + $0x30] sm:$0xf]  ;;  %v7427_v36 = vld [vmem:[#allocation4 + $0x364] sm:$0xf0] }
 0x48b   : > { %v2836_v34 = vpop.f32.mrf.mxu2  ;;  %4116 = vmatpush.bf16.msrb.mxu0 %v6569_v48  ;;  %4145 = vmatpush.bf16.msrb.mxu1 %v6633_v60  ;;  %v6393_v47 = vor.u32 %v7293_v37, %v6392_v39  ;;  %v6832_v25 = vld [vmem:[#allocation4 + $0x3e0] sm:$0xf]  ;;  %v6762_v45 = vld [vmem:[#allocation4 + $0x358] sm:$0xf0]  ;;  %v7440_v38 = vld [vmem:[#allocation4 + $0x3d4] sm:$0xf] }
 0x48c   : > { %v3002_v32 = vadd.f32 %v2836_v34, %v9454_v22  ;;  %v2905_v3 = vpop.f32.mrf.mxu3  ;;  %v6381_v22 = vor.u32 %v7288_v33, %v6378_v55  ;;  %4203 = vmatpush.bf16.msrb.mxu3 %v6637_v7  ;;  %v6385_v34 = vor.u32 %v7291_v1, %v6384_v14  ;;  %v6840_v55 = vld [vmem:[#allocation4 + $0x3f0] sm:$0xf]  ;;  %v6834_v33 = vld [vmem:[#allocation4 + $0x3e8] sm:$0xf0]  ;;  %v6826_v51 = vld [vmem:[#allocation4 + $0x3d8] sm:$0xf0] }
 0x48d   : > { %v3003_v62 = vadd.f32 %v2905_v3, %v10466_v31  ;;  %4174 = vmatpush.bf16.msrb.mxu2 %v6573_v58  ;;  %v7444_v3 = vld [vmem:[#allocation4 + $0x3f4] sm:$0xf]  ;;  %v6776_v31 = vld [vmem:[#allocation4 + $0x370] sm:$0xf]  ;;  %v6837_v23 = vor.u32 %v7442_v28, %v6834_v33  ;;  %v6768_v58 = vld [vmem:[#allocation4 + $0x360] sm:$0xf]  ;;  %v6829_v2 = vor.u32 %v7440_v38, %v6826_v51 }
 0x48e   : > { %v3050_v53 = vmax.f32 %v2998_v10, %v3002_v32  ;;  %v7428_v10 = vld [vmem:[#allocation4 + $0x374] sm:$0xf]  ;;  %v6778_v32 = vld [vmem:[#allocation4 + $0x378] sm:$0xf0]  ;;  %v6769_v7 = vor.u32 %v7427_v36, %v6768_v58  ;;  %v7441_v1 = vld [vmem:[#allocation4 + $0x3d4] sm:$0xf0] }
 0x48f   : > { %v3051_v13 = vmax.f32 %v2999_v29, %v3003_v62  ;;  %4117 = vmatpush.bf16.msrb.mxu0 %v6561_v42  ;;  %v6781_v57 = vor.u32 %v7428_v10, %v6778_v32  ;;  %v6842_v29 = vld [vmem:[#allocation4 + $0x3f8] sm:$0xf0]  ;;  %v7429_v62 = vld [vmem:[#allocation4 + $0x374] sm:$0xf0]  ;;  %v7422_v50 = vld [vmem:[#allocation4 + $0x344] sm:$0xf] }
 0x490   : > { %v3074_v44 = vmax.f32 %v3048_v0, %v3050_v53  ;;  %v3445_v56 = vpop.f32.mrf.mxu0  ;;  %v3474_v4 = vpop.f32.mrf.mxu1  ;;  %v6629_v0 = vor.u32 %v7390_v43, %v6626_v9  ;;  %v6845_v53 = vor.u32 %v7444_v3, %v6842_v29  ;;  %v6777_v12 = vor.u32 %v7429_v62, %v6776_v31  ;;  %v6760_v43 = vld [vmem:[#allocation4 + $0x350] sm:$0xf]  ;;  %v7425_v9 = vld [vmem:[#allocation4 + $0x354] sm:$0xf0]  ;;  %v6754_v61 = vld [vmem:[#allocation4 + $0x348] sm:$0xf0] }
 0x491   : > { %v3075_v15 = vmax.f32 %v3049_v17, %v3051_v13  ;;  %v9603_v52 = vadd.f32 %v3474_v4, %v3445_v56  ;;  %4175 = vmatpush.bf16.msrb.mxu2 %v6565_v59  ;;  %v6624_v17 = vld [vmem:[#allocation4 + $0x280] sm:$0xf]  ;;  %v7445_v13 = vld [vmem:[#allocation4 + $0x3f4] sm:$0xf0]  ;;  %v6770_v4 = vld [vmem:[#allocation4 + $0x368] sm:$0xf0] }
 0x492   : > { %v3104_v21 = vadd.f32 %v9475_v40, %v3074_v44  ;;  %4204 = vmatpush.bf16.msrb.mxu3 %v6629_v0  ;;  %v6625_v19 = vor.u32 %v7391_v20, %v6624_v17  ;;  %v7426_v44 = vld [vmem:[#allocation4 + $0x364] sm:$0xf]  ;;  %v6841_v56 = vor.u32 %v7445_v13, %v6840_v55  ;;  %v6824_v59 = vld [vmem:[#allocation4 + $0x3d0] sm:$0xf]  ;;  %v6761_v0 = vor.u32 %v7425_v9, %v6760_v43  ;;  %v6818_v20 = vld [vmem:[#allocation4 + $0x3c8] sm:$0xf0] }
 0x493   : > { %v3105_v11 = vadd.f32 %v9477_v63, %v3075_v15  ;;  %3765 = vmatmul.bf16.gmra.mxu0 %v6377_v26  ;;  %3794 = vmatmul.bf16.gmra.mxu1 %v6381_v22  ;;  %v6825_v54 = vor.u32 %v7441_v1, %v6824_v59  ;;  %v6757_v17 = vor.u32 %v7422_v50, %v6754_v61  ;;  %v7438_v42 = vld [vmem:[#allocation4 + $0x3c4] sm:$0xf]  ;;  %v7367_v46 = vld [vmem:[#allocation2 + $0x14] sm:$0xf0]  ;;  %v6752_v10 = vld [vmem:[#allocation4 + $0x340] sm:$0xf] }
 0x494   : > { %v3128_v16 = vmax.f32 %v3104_v21, 0.0  ;;  %3823 = vmatmul.bf16.gmra.mxu2 %v6377_v26  ;;  %3852 = vmatmul.bf16.gmra.mxu3 %v6381_v22  ;;  %v6773_v22 = vor.u32 %v7426_v44, %v6770_v4  ;;  %v6821_v14 = vor.u32 %v7438_v42, %v6818_v20  ;;  %v7423_v32 = vld [vmem:[#allocation4 + $0x344] sm:$0xf0]  ;;  %v6816_v3 = vld [vmem:[#allocation4 + $0x3c0] sm:$0xf] }
 0x495   : > { %v3129_v5 = vmax.f32 %v3105_v11, 0.0  ;;  %4146 = vmatpush.bf16.msrb.mxu1 %v6625_v19  ;;  %4542 = vmatpush.bf16.msra.mxu2 %v6781_v57  ;;  %v6530_v19 = vld [vmem:[#allocation2 + $0x18] sm:$0xf0]  ;;  %v6753_v31 = vor.u32 %v7423_v32, %v6752_v10  ;;  %v7439_v62 = vld [vmem:[#allocation4 + $0x3c4] sm:$0xf0] }
 0x496   : > { %4571 = vmatpush.bf16.msra.mxu3 %v6845_v53  ;;  %4484 = vmatpush.bf16.msra.mxu0 %v6777_v12  ;;  %v6817_v53 = vor.u32 %v7439_v62, %v6816_v3  ;;  %v7420_v12 = vld [vmem:[#allocation4 + $0x334] sm:$0xf]  ;;  %v6746_v55 = vld [vmem:[#allocation4 + $0x338] sm:$0xf0]  ;;  %v6744_v4 = vld [vmem:[#allocation4 + $0x330] sm:$0xf] }
 0x497   : > { %v3141_v40 = vpack.c.bf16 %v3129_v5, %v3128_v16  ;;  %v3503_v18 = vpop.f32.mrf.mxu2  ;;  %v3532_v6 = vpop.f32.mrf.mxu3  ;;  %v7292_v16 = vld [vmem:[#allocation2 + $0x34] sm:$0xf]  ;;  %v6749_v44 = vor.u32 %v7420_v12, %v6746_v55  ;;  %v7421_v28 = vld [vmem:[#allocation4 + $0x334] sm:$0xf0]  ;;  %v7434_v39 = vld [vmem:[#allocation4 + $0x3a4] sm:$0xf] }
 0x498   : > { %v9607_v63 = vadd.f32 %v3532_v6, %v3503_v18  ;;  %v9609_v15 = vpop.f32.mrf.mxu0  ;;  %v9611_v26 = vpop.f32.mrf.mxu1  ;;  %v6397_v5 = vor.u32 %v7292_v16, %v6394_v24  ;;  %v7424_v6 = vld [vmem:[#allocation4 + $0x354] sm:$0xf]  ;;  %v7437_v37 = vld [vmem:[#allocation4 + $0x3b4] sm:$0xf0]  ;;  %v7418_v24 = vld [vmem:[#allocation4 + $0x324] sm:$0xf] }
 0x499   : > { %3153 = vst [vmem:[#allocation2 + $0x58] sm:$0xff] %v3141_v40  ;;  %4513 = vmatpush.bf16.msra.mxu1 %v6841_v56  ;;  %4543 = vmatpush.bf16.msra.mxu2 %v6773_v22  ;;  %v7443_v40 = vld [vmem:[#allocation4 + $0x3e4] sm:$0xf0]  ;;  %v6765_v48 = vor.u32 %v7424_v6, %v6762_v45  ;;  %v7436_v13 = vld [vmem:[#allocation4 + $0x3b4] sm:$0xf]  ;;  %v6745_v22 = vor.u32 %v7421_v28, %v6744_v4 }
 0x49a   : > { %4572 = vmatpush.bf16.msra.mxu3 %v6837_v23  ;;  %v6833_v18 = vor.u32 %v7443_v40, %v6832_v25  ;;  %4485 = vmatpush.bf16.msra.mxu0 %v6769_v7  ;;  %v6810_v56 = vld [vmem:[#allocation4 + $0x3b8] sm:$0xf0]  ;;  %v6808_v23 = vld [vmem:[#allocation4 + $0x3b0] sm:$0xf]  ;;  %v6802_v16 = vld [vmem:[#allocation4 + $0x3a8] sm:$0xf0] }
 0x49b   : > { %v6813_v33 = vor.u32 %v7436_v13, %v6810_v56  ;;  %v6805_v36 = vor.u32 %v7434_v39, %v6802_v16  ;;  %v7369_v25 = vld [vmem:[#allocation2 + $0x24] sm:$0xf0]  ;;  %v6538_v7 = vld [vmem:[#allocation2 + $0x28] sm:$0xf0]  ;;  %v6536_v38 = vld [vmem:[#allocation2 + $0x20] sm:$0xf] }
 0x49c   : > { %v7419_v43 = vld [vmem:[#allocation4 + $0x324] sm:$0xf0]  ;;  %v6800_v9 = vld [vmem:[#allocation4 + $0x3a0] sm:$0xf]  ;;  %v7416_v50 = vld [vmem:[#allocation4 + $0x314] sm:$0xf] }
 0x49d   : > { %4514 = vmatpush.bf16.msra.mxu1 %v6833_v18  ;;  %4544 = vmatpush.bf16.msra.mxu2 %v6765_v48  ;;  %v7368_v48 = vld [vmem:[#allocation2 + $0x24] sm:$0xf]  ;;  %v6730_v61 = vld [vmem:[#allocation4 + $0x318] sm:$0xf0]  ;;  %v6792_v10 = vld [vmem:[#allocation4 + $0x390] sm:$0xf] }
 0x49e   : > { %4573 = vmatpush.bf16.msra.mxu3 %v6829_v2  ;;  %4486 = vmatpush.bf16.msra.mxu0 %v6761_v0  ;;  %v6537_v2 = vor.u32 %v7369_v25, %v6536_v38  ;;  %v7435_v0 = vld [vmem:[#allocation4 + $0x3a4] sm:$0xf0]  ;;  %v6794_v42 = vld [vmem:[#allocation4 + $0x398] sm:$0xf0]  ;;  %v7433_v3 = vld [vmem:[#allocation4 + $0x394] sm:$0xf0] }
 0x49f   : > { %v9613_v21 = vpop.f32.mrf.mxu2  ;;  %v9615_v41 = vpop.f32.mrf.mxu3  ;;  %v6801_v1 = vor.u32 %v7435_v0, %v6800_v9  ;;  %v6786_v12 = vld [vmem:[#allocation4 + $0x388] sm:$0xf0]  ;;  %v7371_v13 = vld [vmem:[#allocation2 + $0x34] sm:$0xf0]  ;;  %v6720_v56 = vld [vmem:[#allocation4 + $0x300] sm:$0xf] }
 0x4a0   : > { %v7415_v4 = vld [vmem:[#allocation4 + $0x304] sm:$0xf0]  ;;  %v6784_v28 = vld [vmem:[#allocation4 + $0x380] sm:$0xf]  ;;  %v7468_v39 = vld [vmem:[#allocation4 + $0x474] sm:$0xf] }
 0x4a1   : > { %4515 = vmatpush.bf16.msra.mxu1 %v6825_v54  ;;  %4545 = vmatpush.bf16.msra.mxu2 %v6757_v17  ;;  %v7432_v54 = vld [vmem:[#allocation4 + $0x394] sm:$0xf]  ;;  %v6733_v17 = vor.u32 %v7416_v50, %v6730_v61  ;;  %v6938_v16 = vld [vmem:[#allocation4 + $0x478] sm:$0xf0]  ;;  %v6936_v38 = vld [vmem:[#allocation4 + $0x470] sm:$0xf] }
 0x4a2   : > { %4574 = vmatpush.bf16.msra.mxu3 %v6821_v14  ;;  %4487 = vmatpush.bf16.msra.mxu0 %v6753_v31  ;;  %v6797_v20 = vor.u32 %v7432_v54, %v6794_v42  ;;  %v6793_v31 = vor.u32 %v7433_v3, %v6792_v10  ;;  %v7002_v25 = vld [vmem:[#allocation4 + $0x4f8] sm:$0xf0]  ;;  %v6930_v9 = vld [vmem:[#allocation4 + $0x468] sm:$0xf0]  ;;  %v7373_v61 = vld [vmem:[#allocation2 + $0x44] sm:$0xf0] }
 0x4a3   : > { %3770 = vmatmul.bf16.gmra.mxu0 %v6385_v34  ;;  %3799 = vmatmul.bf16.gmra.mxu1 %v6389_v27  ;;  %v6994_v50 = vld [vmem:[#allocation4 + $0x4e8] sm:$0xf0] }
 0x4a4   : > { %3828 = vmatmul.bf16.gmra.mxu2 %v6385_v34  ;;  %3857 = vmatmul.bf16.gmra.mxu3 %v6389_v27  ;;  %v6528_v34 = vld [vmem:[#allocation2 + $0x10] sm:$0xf]  ;;  %v7366_v27 = vld [vmem:[#allocation2 + $0x14] sm:$0xf]  ;;  %v6554_v54 = vld [vmem:[#allocation2 + $0x48] sm:$0xf0] }
 0x4a5   : > { %v6529_v57 = vor.u32 %v7367_v46, %v6528_v34  ;;  %v6533_v29 = vor.u32 %v7366_v27, %v6530_v19  ;;  %4516 = vmatpush.bf16.msra.mxu1 %v6817_v53  ;;  %4546 = vmatpush.bf16.msra.mxu2 %v6749_v44  ;;  %v6728_v34 = vld [vmem:[#allocation4 + $0x310] sm:$0xf]  ;;  %v7417_v27 = vld [vmem:[#allocation4 + $0x314] sm:$0xf0]  ;;  %v7430_v53 = vld [vmem:[#allocation4 + $0x384] sm:$0xf] }
 0x4a6   : > { %4575 = vmatpush.bf16.msra.mxu3 %v6813_v33  ;;  %4488 = vmatpush.bf16.msra.mxu0 %v6745_v22  ;;  %v6729_v32 = vor.u32 %v7417_v27, %v6728_v34  ;;  %v6789_v55 = vor.u32 %v7430_v53, %v6786_v12  ;;  %v6546_v44 = vld [vmem:[#allocation2 + $0x38] sm:$0xf0]  ;;  %v6544_v33 = vld [vmem:[#allocation2 + $0x30] sm:$0xf]  ;;  %v7370_v22 = vld [vmem:[#allocation2 + $0x34] sm:$0xf] }
 0x4a7   : > { %v6552_v34 = vld [vmem:[#allocation2 + $0x40] sm:$0xf]  ;;  %v7372_v27 = vld [vmem:[#allocation2 + $0x44] sm:$0xf]  ;;  %v7483_v53 = vld [vmem:[#allocation4 + $0x4e4] sm:$0xf0] }
 0x4a8   : > { %v6557_v3 = vor.u32 %v7372_v27, %v6554_v54  ;;  %v7464_v12 = vld [vmem:[#allocation4 + $0x454] sm:$0xf]  ;;  %v6688_v54 = vld [vmem:[#allocation2 + $0x18] sm:$0xf] }
 0x4aa   : > { %4576 = vmatpush.bf16.msra.mxu3 %v6805_v36  ;;  %v6941_v36 = vor.u32 %v7468_v39, %v6938_v16  ;;  %v7465_v39 = vld [vmem:[#allocation4 + $0x454] sm:$0xf0]  ;;  %v6984_v16 = vld [vmem:[#allocation4 + $0x4d0] sm:$0xf] }
 0x4ae   : > { %4577 = vmatpush.bf16.msra.mxu3 %v6797_v20 }
 0x4b0   : > { %v3450_v30 = vpop.f32.mrf.mxu0  ;;  %v3479_v11 = vpop.f32.mrf.mxu1 }
 0x4b1   : > { %v9617_v35 = vadd.f32 %v3479_v11, %v3450_v30  ;;  %v6809_v30 = vor.u32 %v7437_v37, %v6808_v23  ;;  %v6738_v11 = vld [vmem:[#allocation4 + $0x328] sm:$0xf0]  ;;  %v6721_v23 = vor.u32 %v7415_v4, %v6720_v56  ;;  %v7431_v37 = vld [vmem:[#allocation4 + $0x384] sm:$0xf0]  ;;  %v7480_v56 = vld [vmem:[#allocation4 + $0x4d4] sm:$0xf] }
 0x4b2   : > { %v6741_v58 = vor.u32 %v7418_v24, %v6738_v11  ;;  %4578 = vmatpush.bf16.msra.mxu3 %v6789_v55  ;;  %v6545_v24 = vor.u32 %v7371_v13, %v6544_v33  ;;  %v6785_v11 = vor.u32 %v7431_v37, %v6784_v28  ;;  %v6922_v55 = vld [vmem:[#allocation4 + $0x458] sm:$0xf0] }
 0x4b3   : > { %3775 = vmatmul.bf16.gmra.mxu0 %v6393_v47  ;;  %3804 = vmatmul.bf16.gmra.mxu1 %v6397_v5  ;;  %v6986_v4 = vld [vmem:[#allocation4 + $0x4d8] sm:$0xf0] }
 0x4b4   : > { %3833 = vmatmul.bf16.gmra.mxu2 %v6393_v47  ;;  %3862 = vmatmul.bf16.gmra.mxu3 %v6397_v5  ;;  %v6989_v28 = vor.u32 %v7480_v56, %v6986_v4  ;;  %v3477_v56 = vadd.f32 %v9611_v26, %v9609_v15  ;;  %v7458_v15 = vld [vmem:[#allocation4 + $0x424] sm:$0xf]  ;;  %v6898_v26 = vld [vmem:[#allocation4 + $0x428] sm:$0xf0] }
 0x4b5   : > { %4517 = vmatpush.bf16.msra.mxu1 %v6809_v30  ;;  %4547 = vmatpush.bf16.msra.mxu2 %v6741_v58  ;;  %v6549_v30 = vor.u32 %v7370_v22, %v6546_v44  ;;  %v7484_v58 = vld [vmem:[#allocation4 + $0x4f4] sm:$0xf]  ;;  %v6925_v44 = vor.u32 %v7464_v12, %v6922_v55 }
 0x4b7   : > { %v3508_v8 = vpop.f32.mrf.mxu2  ;;  %v3537_v60 = vpop.f32.mrf.mxu3 }
 0x4b8   : > { %v9619_v49 = vadd.f32 %v3537_v60, %v3508_v8  ;;  %v9621_v47 = vpop.f32.mrf.mxu0  ;;  %v9623_v5 = vpop.f32.mrf.mxu1  ;;  %v6541_v8 = vor.u32 %v7368_v48, %v6538_v7  ;;  %v6736_v60 = vld [vmem:[#allocation4 + $0x320] sm:$0xf]  ;;  %v7005_v7 = vor.u32 %v7484_v58, %v7002_v25  ;;  %v7469_v48 = vld [vmem:[#allocation4 + $0x474] sm:$0xf0]  ;;  %v7462_v25 = vld [vmem:[#allocation4 + $0x444] sm:$0xf] }
 0x4b9   : > { %v6737_v59 = vor.u32 %v7419_v43, %v6736_v60  ;;  %4518 = vmatpush.bf16.msra.mxu1 %v6801_v1  ;;  %4548 = vmatpush.bf16.msra.mxu2 %v6733_v17  ;;  %v7485_v60 = vld [vmem:[#allocation4 + $0x4f4] sm:$0xf0]  ;;  %v7466_v43 = vld [vmem:[#allocation4 + $0x464] sm:$0xf] }
 0x4ba   : > { %v6933_v0 = vor.u32 %v7466_v43, %v6930_v9  ;;  %v7482_v1 = vld [vmem:[#allocation4 + $0x4e4] sm:$0xf] }
 0x4bb   : > { %4489 = vmatpush.bf16.msra.mxu0 %v6737_v59  ;;  %v6997_v17 = vor.u32 %v7482_v1, %v6994_v50  ;;  %v6690_v43 = vld [vmem:[#allocation2 + $0x20] sm:$0xf0] }
 0x4bd   : > { %4519 = vmatpush.bf16.msra.mxu1 %v6793_v31  ;;  %v6992_v31 = vld [vmem:[#allocation4 + $0x4e0] sm:$0xf] }
 0x4be   : > { %v6993_v13 = vor.u32 %v7483_v53, %v6992_v31  ;;  %v7479_v31 = vld [vmem:[#allocation4 + $0x4c4] sm:$0xf0]  ;;  %v6906_v53 = vld [vmem:[#allocation4 + $0x438] sm:$0xf0] }
 0x4bf   : > { %v9625_v40 = vpop.f32.mrf.mxu2  ;;  %v9627_v18 = vpop.f32.mrf.mxu3  ;;  %4490 = vmatpush.bf16.msra.mxu0 %v6729_v32  ;;  %v6553_v32 = vor.u32 %v7373_v61, %v6552_v34 }
 0x4c1   : > { %4520 = vmatpush.bf16.msra.mxu1 %v6785_v11  ;;  %v6920_v11 = vld [vmem:[#allocation4 + $0x450] sm:$0xf] }
 0x4c2   : > { %v6921_v58 = vor.u32 %v7465_v39, %v6920_v11 }
 0x4c3   : > { %4118 = vmatmul.bf16.vlgmr.msrb.gmra.mxu0 %v6529_v57  ;;  %4147 = vmatmul.bf16.vlgmr.msrb.gmra.mxu1 %v6533_v29 }
 0x4c4   : > { %4176 = vmatmul.bf16.vlgmr.msrb.gmra.mxu2 %v6529_v57  ;;  %4205 = vmatmul.bf16.vlgmr.msrb.gmra.mxu3 %v6533_v29  ;;  %v7414_v57 = vld [vmem:[#allocation4 + $0x304] sm:$0xf]  ;;  %v6722_v29 = vld [vmem:[#allocation4 + $0x308] sm:$0xf0] }
 0x4c5   : > { %v6725_v62 = vor.u32 %v7414_v57, %v6722_v29  ;;  %4491 = vmatpush.bf16.msra.mxu0 %v6721_v23  ;;  %4945 = vmatpush.bf16.msrb.mxu3 %v7005_v7  ;;  %v6928_v57 = vld [vmem:[#allocation4 + $0x460] sm:$0xf]  ;;  %v7467_v29 = vld [vmem:[#allocation4 + $0x464] sm:$0xf0]  ;;  %v6914_v7 = vld [vmem:[#allocation4 + $0x448] sm:$0xf0] }
 0x4c7   : > { %4549 = vmatpush.bf16.msra.mxu2 %v6725_v62  ;;  %v6929_v62 = vor.u32 %v7467_v29, %v6928_v57  ;;  %v6976_v57 = vld [vmem:[#allocation4 + $0x4c0] sm:$0xf] }
 0x4c8   : > { %v6977_v12 = vor.u32 %v7479_v31, %v6976_v57  ;;  %v7459_v57 = vld [vmem:[#allocation4 + $0x424] sm:$0xf0] }
 0x4c9   : > { %4946 = vmatpush.bf16.msrb.mxu3 %v6997_v17  ;;  %v7406_v17 = vld [vmem:[#allocation2 + $0x1c] sm:$0xf] }
 0x4ca   : > { %v6693_v34 = vor.u32 %v7406_v17, %v6690_v43  ;;  %v6698_v43 = vld [vmem:[#allocation2 + $0x30] sm:$0xf0]  ;;  %v6696_v17 = vld [vmem:[#allocation2 + $0x28] sm:$0xf] }
 0x4cb   : > { %4916 = vmatpush.bf16.msrb.mxu2 %v6941_v36  ;;  %v7481_v36 = vld [vmem:[#allocation4 + $0x4d4] sm:$0xf0] }
 0x4cd   : > { %4947 = vmatpush.bf16.msrb.mxu3 %v6989_v28 }
 0x4cf   : > { %4917 = vmatpush.bf16.msrb.mxu2 %v6933_v0 }
 0x4d0   : > { %v3455_v6 = vpop.f32.mrf.mxu0  ;;  %v3484_v45 = vpop.f32.mrf.mxu1 }
 0x4d1   : > { %v9629_v51 = vadd.f32 %v3484_v45, %v3455_v6 }
 0x4d3   : > { %4123 = vmatmul.bf16.gmra.mxu0 %v6537_v2  ;;  %4152 = vmatmul.bf16.gmra.mxu1 %v6541_v8 }
 0x4d4   : > { %4181 = vmatmul.bf16.gmra.mxu2 %v6537_v2  ;;  %4210 = vmatmul.bf16.gmra.mxu3 %v6541_v8  ;;  %v7000_v2 = vld [vmem:[#allocation4 + $0x4f0] sm:$0xf]  ;;  %v6937_v8 = vor.u32 %v7469_v48, %v6936_v38  ;;  %v6985_v38 = vor.u32 %v7481_v36, %v6984_v16  ;;  %v6917_v48 = vor.u32 %v7462_v25, %v6914_v7  ;;  %v7477_v7 = vld [vmem:[#allocation4 + $0x4b4] sm:$0xf0] }
 0x4d5   : > { %v7001_v59 = vor.u32 %v7485_v60, %v7000_v2  ;;  %4918 = vmatpush.bf16.msrb.mxu2 %v6925_v44  ;;  %v7478_v2 = vld [vmem:[#allocation4 + $0x4c4] sm:$0xf]  ;;  %v7407_v60 = vld [vmem:[#allocation2 + $0x1c] sm:$0xf0]  ;;  %v6970_v44 = vld [vmem:[#allocation4 + $0x4b8] sm:$0xf0] }
 0x4d6   : > { %4858 = vmatpush.bf16.msrb.mxu0 %v6937_v8  ;;  %v6978_v8 = vld [vmem:[#allocation4 + $0x4c8] sm:$0xf0]  ;;  %v6904_v16 = vld [vmem:[#allocation4 + $0x430] sm:$0xf] }
 0x4d7   : > { %v3513_v14 = vpop.f32.mrf.mxu2  ;;  %v3542_v46 = vpop.f32.mrf.mxu3  ;;  %4887 = vmatpush.bf16.msrb.mxu1 %v7001_v59  ;;  %v6981_v9 = vor.u32 %v7478_v2, %v6978_v8  ;;  %v6968_v36 = vld [vmem:[#allocation4 + $0x4b0] sm:$0xf]  ;;  %v7474_v2 = vld [vmem:[#allocation4 + $0x4a4] sm:$0xf]  ;;  %v6962_v8 = vld [vmem:[#allocation4 + $0x4a8] sm:$0xf0] }
 0x4d8   : > { %v9631_v19 = vadd.f32 %v3542_v46, %v3513_v14  ;;  %v9633_v6 = vpop.f32.mrf.mxu0  ;;  %v9635_v45 = vpop.f32.mrf.mxu1 }
 0x4d9   : > { %4919 = vmatpush.bf16.msrb.mxu2 %v6917_v48  ;;  %4948 = vmatpush.bf16.msrb.mxu3 %v6981_v9  ;;  %v6901_v48 = vor.u32 %v7458_v15, %v6898_v26  ;;  %v6965_v9 = vor.u32 %v7474_v2, %v6962_v8  ;;  %v7473_v26 = vld [vmem:[#allocation4 + $0x494] sm:$0xf0]  ;;  %v7470_v2 = vld [vmem:[#allocation4 + $0x484] sm:$0xf]  ;;  %v6946_v8 = vld [vmem:[#allocation4 + $0x488] sm:$0xf0] }
 0x4da   : > { %4859 = vmatpush.bf16.msrb.mxu0 %v6929_v62  ;;  %v7460_v62 = vld [vmem:[#allocation4 + $0x434] sm:$0xf] }
 0x4db   : > { %4888 = vmatpush.bf16.msrb.mxu1 %v6993_v13  ;;  %v6909_v55 = vor.u32 %v7460_v62, %v6906_v53  ;;  %v7476_v13 = vld [vmem:[#allocation4 + $0x4b4] sm:$0xf]  ;;  %v7475_v62 = vld [vmem:[#allocation4 + $0x4a4] sm:$0xf0] }
 0x4dc   : > { %v7456_v53 = vld [vmem:[#allocation4 + $0x414] sm:$0xf] }
 0x4dd   : > { %4920 = vmatpush.bf16.msrb.mxu2 %v6909_v55 }
 0x4de   : > { %4860 = vmatpush.bf16.msrb.mxu0 %v6921_v58  ;;  %v7461_v58 = vld [vmem:[#allocation4 + $0x434] sm:$0xf0] }
 0x4df   : > { %v9637_v42 = vpop.f32.mrf.mxu2  ;;  %v9639_v20 = vpop.f32.mrf.mxu3  ;;  %4889 = vmatpush.bf16.msrb.mxu1 %v6985_v38  ;;  %v6905_v25 = vor.u32 %v7461_v58, %v6904_v16  ;;  %v6969_v38 = vor.u32 %v7477_v7, %v6968_v36  ;;  %v6888_v36 = vld [vmem:[#allocation4 + $0x410] sm:$0xf] }
 0x4e0   : > { %v6952_v7 = vld [vmem:[#allocation4 + $0x490] sm:$0xf] }
 0x4e1   : > { %4921 = vmatpush.bf16.msrb.mxu2 %v6901_v48 }
 0x4e3   : > { %4128 = vmatmul.bf16.gmra.mxu0 %v6545_v24  ;;  %4157 = vmatmul.bf16.gmra.mxu1 %v6549_v30 }
 0x4e4   : > { %4186 = vmatmul.bf16.gmra.mxu2 %v6545_v24  ;;  %4215 = vmatmul.bf16.gmra.mxu3 %v6549_v30 }
 0x4e5   : > { %4890 = vmatpush.bf16.msrb.mxu1 %v6977_v12  ;;  %v6890_v12 = vld [vmem:[#allocation4 + $0x418] sm:$0xf0] }
 0x4e9   : > { %4891 = vmatpush.bf16.msrb.mxu1 %v6969_v38  ;;  %v6953_v38 = vor.u32 %v7473_v26, %v6952_v7 }
 0x4f0   : > { %v3460_v14 = vpop.f32.mrf.mxu0  ;;  %v3489_v46 = vpop.f32.mrf.mxu1 }
 0x4f1   : > { %v9641_v10 = vadd.f32 %v3489_v46, %v3460_v14  ;;  %v6689_v46 = vor.u32 %v7407_v60, %v6688_v54  ;;  %v7409_v60 = vld [vmem:[#allocation2 + $0x2c] sm:$0xf0] }
 0x4f3   : > { %4133 = vmatmul.bf16.gmra.mxu0 %v6553_v32  ;;  %4162 = vmatmul.bf16.gmra.mxu1 %v6557_v3 }
 0x4f4   : > { %4191 = vmatmul.bf16.gmra.mxu2 %v6553_v32  ;;  %4220 = vmatmul.bf16.gmra.mxu3 %v6557_v3  ;;  %v6912_v32 = vld [vmem:[#allocation4 + $0x440] sm:$0xf]  ;;  %v7463_v3 = vld [vmem:[#allocation4 + $0x444] sm:$0xf0] }
 0x4f5   : > { %v6913_v29 = vor.u32 %v7463_v3, %v6912_v32 }
 0x4f7   : > { %v3518_v33 = vpop.f32.mrf.mxu2  ;;  %v3547_v22 = vpop.f32.mrf.mxu3  ;;  %4861 = vmatpush.bf16.msrb.mxu0 %v6913_v29  ;;  %v6960_v29 = vld [vmem:[#allocation4 + $0x4a0] sm:$0xf] }
 0x4f8   : > { %v9643_v23 = vadd.f32 %v3547_v22, %v3518_v33  ;;  %v3462_v37 = vpop.f32.mrf.mxu0  ;;  %v3491_v24 = vpop.f32.mrf.mxu1  ;;  %v6961_v55 = vor.u32 %v7475_v62, %v6960_v29 }
 0x4f9   : > { %v9645_v30 = vadd.f32 %v3491_v24, %v3462_v37 }
 0x4fa   : > { %4892 = vmatpush.bf16.msrb.mxu1 %v6961_v55 }
 0x4fb   : > { %4862 = vmatpush.bf16.msrb.mxu0 %v6905_v25  ;;  %v7457_v25 = vld [vmem:[#allocation4 + $0x414] sm:$0xf0] }
 0x4fc   : > { %v6889_v15 = vor.u32 %v7457_v25, %v6888_v36  ;;  %v6712_v36 = vld [vmem:[#allocation2 + $0x48] sm:$0xf]  ;;  %v7412_v25 = vld [vmem:[#allocation2 + $0x4c] sm:$0xf] }
 0x4fe   : > { %4893 = vmatpush.bf16.msrb.mxu1 %v6953_v38 }
 0x4ff   : > { %v3520_v59 = vpop.f32.mrf.mxu2  ;;  %v3549_v0 = vpop.f32.mrf.mxu3 }
 0x500   : > { %v9647_v1 = vadd.f32 %v3549_v0, %v3520_v59  ;;  %v3761_v50 = vpop.f32.mrf.mxu0  ;;  %v3790_v61 = vpop.f32.mrf.mxu1 }
 0x501   : > { %v3762_v14 = vadd.f32 %v3761_v50, %v9603_v52  ;;  %v6973_v52 = vor.u32 %v7476_v13, %v6970_v44  ;;  %v6893_v13 = vor.u32 %v7456_v53, %v6890_v12  ;;  %v6954_v44 = vld [vmem:[#allocation4 + $0x498] sm:$0xf0]  ;;  %v3487_v53 = vadd.f32 %v9635_v45, %v9633_v6 }
 0x503   : > { %v9650_v27 = vadd.f32 %v3790_v61, %v3762_v14  ;;  %4492 = vmatmul.bf16.vlgmr.msra.gmra.mxu0 %v6689_v46  ;;  %4521 = vmatmul.bf16.vlgmr.msra.gmra.mxu1 %v6693_v34  ;;  %v7408_v14 = vld [vmem:[#allocation2 + $0x2c] sm:$0xf] }
 0x504   : > { %4550 = vmatmul.bf16.vlgmr.msra.gmra.mxu2 %v6689_v46  ;;  %4579 = vmatmul.bf16.vlgmr.msra.gmra.mxu3 %v6693_v34  ;;  %v6697_v34 = vor.u32 %v7409_v60, %v6696_v17  ;;  %v6701_v32 = vor.u32 %v7408_v14, %v6698_v43  ;;  %v6706_v60 = vld [vmem:[#allocation2 + $0x40] sm:$0xf0]  ;;  %v6949_v43 = vor.u32 %v7470_v2, %v6946_v8 }
 0x505   : > { %4949 = vmatpush.bf16.msrb.mxu3 %v6973_v52  ;;  %4922 = vmatpush.bf16.msrb.mxu2 %v6893_v13 }
 0x507   : > { %v3819_v4 = vpop.f32.mrf.mxu2  ;;  %v3848_v28 = vpop.f32.mrf.mxu3 }
 0x508   : > { %v3820_v33 = vadd.f32 %v3819_v4, %v9607_v63  ;;  %v3763_v22 = vpop.f32.mrf.mxu0  ;;  %v3792_v37 = vpop.f32.mrf.mxu1  ;;  %v3535_v63 = vadd.f32 %v9615_v41, %v9613_v21  ;;  %v6896_v41 = vld [vmem:[#allocation4 + $0x420] sm:$0xf] }
 0x509   : > { %v3764_v24 = vadd.f32 %v3763_v22, %v3477_v56  ;;  %4950 = vmatpush.bf16.msrb.mxu3 %v6965_v9  ;;  %v6897_v31 = vor.u32 %v7459_v57, %v6896_v41  ;;  %v3482_v56 = vadd.f32 %v9623_v5, %v9621_v47  ;;  %v7454_v47 = vld [vmem:[#allocation4 + $0x404] sm:$0xf]  ;;  %v6882_v5 = vld [vmem:[#allocation4 + $0x408] sm:$0xf0]  ;;  %v7471_v41 = vld [vmem:[#allocation4 + $0x484] sm:$0xf0] }
 0x50a   : > { %v9655_v11 = vadd.f32 %v3848_v28, %v3820_v33  ;;  %v6885_v48 = vor.u32 %v7454_v47, %v6882_v5 }
 0x50b   : > { %v9657_v39 = vadd.f32 %v3792_v37, %v3764_v24  ;;  %4863 = vmatpush.bf16.msrb.mxu0 %v6897_v31 }
 0x50c   : > { %4923 = vmatpush.bf16.msrb.mxu2 %v6885_v48 }
 0x50f   : > { %v3821_v59 = vpop.f32.mrf.mxu2  ;;  %v3850_v0 = vpop.f32.mrf.mxu3  ;;  %4864 = vmatpush.bf16.msrb.mxu0 %v6889_v15 }
 0x510   : > { %v3822_v50 = vadd.f32 %v3821_v59, %v3535_v63  ;;  %v3766_v61 = vpop.f32.mrf.mxu0  ;;  %v3795_v54 = vpop.f32.mrf.mxu1  ;;  %v7411_v63 = vld [vmem:[#allocation2 + $0x3c] sm:$0xf0] }
 0x511   : > { %v3767_v46 = vadd.f32 %v3766_v61, %v9617_v35  ;;  %v7472_v35 = vld [vmem:[#allocation4 + $0x494] sm:$0xf]  ;;  %v6944_v61 = vld [vmem:[#allocation4 + $0x480] sm:$0xf] }
 0x512   : > { %v9662_v3 = vadd.f32 %v3850_v0, %v3822_v50  ;;  %v6957_v52 = vor.u32 %v7472_v35, %v6954_v44  ;;  %v6880_v0 = vld [vmem:[#allocation4 + $0x400] sm:$0xf]  ;;  %v7455_v50 = vld [vmem:[#allocation4 + $0x404] sm:$0xf0]  ;;  %v6945_v29 = vor.u32 %v7471_v41, %v6944_v61  ;;  %v7446_v61 = vld [vmem:[#allocation2 + $0x24] sm:$0xf] }
 0x513   : > { %v9664_v21 = vadd.f32 %v3795_v54, %v3767_v46  ;;  %4497 = vmatmul.bf16.gmra.mxu0 %v6697_v34  ;;  %4526 = vmatmul.bf16.gmra.mxu1 %v6701_v32  ;;  %v6704_v46 = vld [vmem:[#allocation2 + $0x38] sm:$0xf] }
 0x514   : > { %4555 = vmatmul.bf16.gmra.mxu2 %v6697_v34  ;;  %4584 = vmatmul.bf16.gmra.mxu3 %v6701_v32  ;;  %v7410_v34 = vld [vmem:[#allocation2 + $0x3c] sm:$0xf]  ;;  %v6881_v32 = vor.u32 %v7455_v50, %v6880_v0  ;;  %v6848_v50 = vld [vmem:[#allocation2 + $0x20] sm:$0xf] }
 0x515   : > { %4951 = vmatpush.bf16.msrb.mxu3 %v6957_v52  ;;  %v6709_v57 = vor.u32 %v7410_v34, %v6706_v60  ;;  %4894 = vmatpush.bf16.msrb.mxu1 %v6945_v29 }
 0x516   : > { %4865 = vmatpush.bf16.msrb.mxu0 %v6881_v32 }
 0x517   : > { %v3824_v4 = vpop.f32.mrf.mxu2  ;;  %v3853_v28 = vpop.f32.mrf.mxu3 }
 0x518   : > { %v3825_v33 = vadd.f32 %v3824_v4, %v9619_v49  ;;  %v3768_v22 = vpop.f32.mrf.mxu0  ;;  %v3797_v37 = vpop.f32.mrf.mxu1  ;;  %v3540_v49 = vadd.f32 %v9627_v18, %v9625_v40  ;;  %v6705_v18 = vor.u32 %v7411_v63, %v6704_v46  ;;  %v3545_v4 = vadd.f32 %v9639_v20, %v9637_v42  ;;  %v6850_v63 = vld [vmem:[#allocation2 + $0x28] sm:$0xf0] }
 0x519   : > { %v3769_v24 = vadd.f32 %v3768_v22, %v3482_v56  ;;  %4952 = vmatpush.bf16.msrb.mxu3 %v6949_v43 }
 0x51a   : > { %v9669_v16 = vadd.f32 %v3853_v28, %v3825_v33  ;;  %v7413_v28 = vld [vmem:[#allocation2 + $0x4c] sm:$0xf0]  ;;  %v6714_v33 = vld [vmem:[#allocation2 + $0x50] sm:$0xf0] }
 0x51b   : > { %v9671_v58 = vadd.f32 %v3797_v37, %v3769_v24  ;;  %v6713_v7 = vor.u32 %v7413_v28, %v6712_v36  ;;  %v6717_v15 = vor.u32 %v7412_v25, %v6714_v33  ;;  %v7451_v36 = vld [vmem:[#allocation2 + $0x44] sm:$0xf0]  ;;  %v6866_v25 = vld [vmem:[#allocation2 + $0x48] sm:$0xf0] }
 0x51f   : > { %v3826_v9 = vpop.f32.mrf.mxu2  ;;  %v3855_v59 = vpop.f32.mrf.mxu3 }
 0x520   : > { %v3827_v54 = vadd.f32 %v3826_v9, %v3540_v49  ;;  %v3771_v17 = vpop.f32.mrf.mxu0  ;;  %v3800_v14 = vpop.f32.mrf.mxu1  ;;  %v7447_v49 = vld [vmem:[#allocation2 + $0x24] sm:$0xf0] }
 0x521   : > { %v3772_v40 = vadd.f32 %v3771_v17, %v9629_v51  ;;  %v6853_v17 = vor.u32 %v7446_v61, %v6850_v63  ;;  %v6874_v61 = vld [vmem:[#allocation2 + $0x58] sm:$0xf0] }
 0x522   : > { %v9676_v31 = vadd.f32 %v3855_v59, %v3827_v54 }
 0x523   : > { %v9678_v62 = vadd.f32 %v3800_v14, %v3772_v40  ;;  %4502 = vmatmul.bf16.gmra.mxu0 %v6705_v18  ;;  %4531 = vmatmul.bf16.gmra.mxu1 %v6709_v57 }
 0x524   : > { %4560 = vmatmul.bf16.gmra.mxu2 %v6705_v18  ;;  %4589 = vmatmul.bf16.gmra.mxu3 %v6709_v57  ;;  %v7449_v18 = vld [vmem:[#allocation2 + $0x34] sm:$0xf0]  ;;  %v6858_v57 = vld [vmem:[#allocation2 + $0x38] sm:$0xf0] }
 0x527   : > { %v3829_v12 = vpop.f32.mrf.mxu2  ;;  %v3858_v55 = vpop.f32.mrf.mxu3 }
 0x528   : > { %v3830_v51 = vadd.f32 %v3829_v12, %v9631_v19  ;;  %v3773_v13 = vpop.f32.mrf.mxu0  ;;  %v3802_v35 = vpop.f32.mrf.mxu1 }
 0x529   : > { %v3774_v44 = vadd.f32 %v3773_v13, %v3487_v53 }
 0x52a   : > { %v9683_v52 = vadd.f32 %v3858_v55, %v3830_v51  ;;  %v6856_v55 = vld [vmem:[#allocation2 + $0x30] sm:$0xf]  ;;  %v7448_v51 = vld [vmem:[#allocation2 + $0x34] sm:$0xf] }
 0x52b   : > { %v9685_v56 = vadd.f32 %v3802_v35, %v3774_v44  ;;  %v6857_v35 = vor.u32 %v7449_v18, %v6856_v55  ;;  %v6861_v44 = vor.u32 %v7448_v51, %v6858_v57 }
 0x52f   : > { %v3831_v22 = vpop.f32.mrf.mxu2  ;;  %v3860_v37 = vpop.f32.mrf.mxu3 }
 0x530   : > { %v3832_v24 = vadd.f32 %v3831_v22, %v3545_v4  ;;  %v3776_v6 = vpop.f32.mrf.mxu0  ;;  %v3805_v45 = vpop.f32.mrf.mxu1 }
 0x531   : > { %v3777_v19 = vadd.f32 %v3776_v6, %v9641_v10 }
 0x532   : > { %v9690_v26 = vadd.f32 %v3860_v37, %v3832_v24 }
 0x533   : > { %v9692_v47 = vadd.f32 %v3805_v45, %v3777_v19  ;;  %4507 = vmatmul.bf16.gmra.mxu0 %v6713_v7  ;;  %4536 = vmatmul.bf16.gmra.mxu1 %v6717_v15 }
 0x534   : > { %4565 = vmatmul.bf16.gmra.mxu2 %v6713_v7  ;;  %4594 = vmatmul.bf16.gmra.mxu3 %v6717_v15 }
 0x537   : > { %v3834_v42 = vpop.f32.mrf.mxu2  ;;  %v3863_v20 = vpop.f32.mrf.mxu3 }
 0x538   : > { %v3835_v5 = vadd.f32 %v3834_v42, %v9643_v23  ;;  %v3778_v38 = vpop.f32.mrf.mxu0  ;;  %v3807_v48 = vpop.f32.mrf.mxu1  ;;  %v6849_v23 = vor.u32 %v7447_v49, %v6848_v50 }
 0x539   : > { %v3779_v2 = vadd.f32 %v3778_v38, %v9645_v30 }
 0x53a   : > { %v9696_v8 = vadd.f32 %v3863_v20, %v3835_v5  ;;  %v6864_v20 = vld [vmem:[#allocation2 + $0x40] sm:$0xf]  ;;  %v7450_v5 = vld [vmem:[#allocation2 + $0x44] sm:$0xf] }
 0x53b   : > { %v9698_v10 = vadd.f32 %v3807_v48, %v3779_v2  ;;  %v6865_v48 = vor.u32 %v7451_v36, %v6864_v20  ;;  %v6869_v2 = vor.u32 %v7450_v5, %v6866_v25 }
 0x53f   : > { %v3836_v60 = vpop.f32.mrf.mxu2  ;;  %v3865_v43 = vpop.f32.mrf.mxu3 }
 0x540   : > { %v3837_v9 = vadd.f32 %v3836_v60, %v9647_v1  ;;  %v4119_v59 = vpop.f32.mrf.mxu0  ;;  %v4148_v0 = vpop.f32.mrf.mxu1 }
 0x541   : > { %v4149_v54 = vadd.f32 %v4148_v0, %v4119_v59 }
 0x542   : > { %v9701_v14 = vadd.f32 %v3865_v43, %v3837_v9 }
 0x543   : > { %v9704_v30 = vadd.f32 %v4149_v54, %v9650_v27  ;;  %4866 = vmatmul.bf16.vlgmr.msrb.gmra.mxu0 %v6849_v23  ;;  %4895 = vmatmul.bf16.vlgmr.msrb.gmra.mxu1 %v6853_v17 }
 0x544   : > { %4924 = vmatmul.bf16.vlgmr.msrb.gmra.mxu2 %v6849_v23  ;;  %4953 = vmatmul.bf16.vlgmr.msrb.gmra.mxu3 %v6853_v17 }
 0x547   : > { %v4177_v46 = vpop.f32.mrf.mxu2  ;;  %v4206_v34 = vpop.f32.mrf.mxu3 }
 0x548   : > { %v4207_v32 = vadd.f32 %v4206_v34, %v4177_v46  ;;  %v9706_v1 = vpop.f32.mrf.mxu0  ;;  %v9708_v41 = vpop.f32.mrf.mxu1  ;;  %v6872_v34 = vld [vmem:[#allocation2 + $0x50] sm:$0xf] }
 0x54a   : > { %v9711_v40 = vadd.f32 %v4207_v32, %v9655_v11  ;;  %v7452_v32 = vld [vmem:[#allocation2 + $0x54] sm:$0xf] }
 0x54f   : > { %v9713_v29 = vpop.f32.mrf.mxu2  ;;  %v9715_v27 = vpop.f32.mrf.mxu3 }
 0x550   : > { %v4124_v53 = vpop.f32.mrf.mxu0  ;;  %v4153_v12 = vpop.f32.mrf.mxu1 }
 0x551   : > { %v4154_v13 = vadd.f32 %v4153_v12, %v4124_v53  ;;  %v6877_v53 = vor.u32 %v7452_v32, %v6874_v61 }
 0x553   : > { %v9718_v4 = vadd.f32 %v4154_v13, %v9664_v21  ;;  %4871 = vmatmul.bf16.gmra.mxu0 %v6857_v35  ;;  %4900 = vmatmul.bf16.gmra.mxu1 %v6861_v44 }
 0x554   : > { %4929 = vmatmul.bf16.gmra.mxu2 %v6857_v35  ;;  %4958 = vmatmul.bf16.gmra.mxu3 %v6861_v44 }
 0x557   : > { %v4182_v11 = vpop.f32.mrf.mxu2  ;;  %v4211_v28 = vpop.f32.mrf.mxu3 }
 0x558   : > { %v4212_v33 = vadd.f32 %v4211_v28, %v4182_v11  ;;  %v4126_v22 = vpop.f32.mrf.mxu0  ;;  %v4155_v37 = vpop.f32.mrf.mxu1 }
 0x559   : > { %v4156_v24 = vadd.f32 %v4155_v37, %v4126_v22 }
 0x55a   : > { %v9721_v6 = vadd.f32 %v4212_v33, %v9669_v16 }
 0x55b   : > { %v9724_v45 = vadd.f32 %v4156_v24, %v9671_v58 }
 0x55f   : > { %v4184_v21 = vpop.f32.mrf.mxu2  ;;  %v4213_v19 = vpop.f32.mrf.mxu3 }
 0x560   : > { %v4214_v7 = vadd.f32 %v4213_v19, %v4184_v21  ;;  %v4129_v15 = vpop.f32.mrf.mxu0  ;;  %v4158_v42 = vpop.f32.mrf.mxu1 }
 0x561   : > { %v4159_v38 = vadd.f32 %v4158_v42, %v4129_v15 }
 0x562   : > { %v9727_v49 = vadd.f32 %v4214_v7, %v9676_v31  ;;  %v7453_v31 = vld [vmem:[#allocation2 + $0x54] sm:$0xf0] }
 0x563   : > { %v9730_v16 = vadd.f32 %v4159_v38, %v9678_v62  ;;  %4876 = vmatmul.bf16.gmra.mxu0 %v6865_v48  ;;  %4905 = vmatmul.bf16.gmra.mxu1 %v6869_v2  ;;  %v6873_v57 = vor.u32 %v7453_v31, %v6872_v34 }
 0x564   : > { %4934 = vmatmul.bf16.gmra.mxu2 %v6865_v48  ;;  %4963 = vmatmul.bf16.gmra.mxu3 %v6869_v2 }
 0x567   : > { %v4187_v58 = vpop.f32.mrf.mxu2  ;;  %v4216_v63 = vpop.f32.mrf.mxu3 }
 0x568   : > { %v4217_v60 = vadd.f32 %v4216_v63, %v4187_v58  ;;  %v4131_v43 = vpop.f32.mrf.mxu0  ;;  %v4160_v9 = vpop.f32.mrf.mxu1 }
 0x569   : > { %v4161_v59 = vadd.f32 %v4160_v9, %v4131_v43 }
 0x56a   : > { %v9733_v0 = vadd.f32 %v4217_v60, %v9683_v52 }
 0x56b   : > { %v9736_v50 = vadd.f32 %v4161_v59, %v9685_v56  ;;  %v7493_v59 = vld [vmem:[%s9992_s5 + $0x38] sm:$0xff] }
 0x56c   : > { %5160 = vmatpush.bf16.msra.mxu1 %v7493_v59 }
 0x56f   : > { %v4189_v62 = vpop.f32.mrf.mxu2  ;;  %v4218_v54 = vpop.f32.mrf.mxu3 }
 0x570   : > { %v4219_v23 = vadd.f32 %v4218_v54, %v4189_v62  ;;  %v4134_v17 = vpop.f32.mrf.mxu0  ;;  %v4163_v46 = vpop.f32.mrf.mxu1 }
 0x571   : > { %v4164_v18 = vadd.f32 %v4163_v46, %v4134_v17  ;;  %v7491_v17 = vld [vmem:[%s9992_s5 + $0x28] sm:$0xff] }
 0x572   : > { %v9739_v12 = vadd.f32 %v4219_v23, %v9690_v26 }
 0x573   : > { %v9742_v52 = vadd.f32 %v4164_v18, %v9692_v47  ;;  %4881 = vmatmul.bf16.gmra.mxu0 %v6873_v57  ;;  %4910 = vmatmul.bf16.gmra.mxu1 %v6877_v53  ;;  %v7490_v18 = vld [vmem:[%s9992_s5 + $0x20] sm:$0xff] }
 0x574   : > { %4939 = vmatmul.bf16.gmra.mxu2 %v6873_v57  ;;  %4968 = vmatmul.bf16.gmra.mxu3 %v6877_v53  ;;  %v7509_v57 = vld [vmem:[%s9992_s5 + $0xb8] sm:$0xff] }
 0x575   : > { %v7517_v53 = vld [vmem:[%s9992_s5 + $0xf8] sm:$0xff]  ;;  %5238 = vmatpush.bf16.msra.mxu2 %v7509_v57 }
 0x576   : > { %5317 = vmatpush.bf16.msra.mxu3 %v7517_v53 }
 0x577   : > { %v4192_v56 = vpop.f32.mrf.mxu2  ;;  %v4221_v55 = vpop.f32.mrf.mxu3 }
 0x578   : > { %v4222_v51 = vadd.f32 %v4221_v55, %v4192_v56  ;;  %v4136_v13 = vpop.f32.mrf.mxu0  ;;  %v4165_v35 = vpop.f32.mrf.mxu1 }
 0x579   : > { %v4166_v44 = vadd.f32 %v4165_v35, %v4136_v13 }
 0x57a   : > { %v9745_v11 = vadd.f32 %v4222_v51, %v9696_v8  ;;  %v7489_v51 = vld [vmem:[%s9992_s5 + $0x18] sm:$0xff] }
 0x57b   : > { %v9748_v28 = vadd.f32 %v4166_v44, %v9698_v10 }
 0x57f   : > { %v4194_v26 = vpop.f32.mrf.mxu2  ;;  %v4223_v33 = vpop.f32.mrf.mxu3 }
 0x580   : > { %v4224_v47 = vadd.f32 %v4223_v33, %v4194_v26  ;;  %v4493_v22 = vpop.f32.mrf.mxu0  ;;  %v4522_v37 = vpop.f32.mrf.mxu1  ;;  %v7500_v33 = vld [vmem:[%s9992_s5 + $0x70] sm:$0xff] }
 0x581   : > { %v4523_v24 = vadd.f32 %v4522_v37, %v4493_v22 }
 0x582   : > { %v9751_v36 = vadd.f32 %v4224_v47, %v9701_v14  ;;  %v7488_v47 = vld [vmem:[%s9992_s5 + $0x10] sm:$0xff] }
 0x583   : > { %v9754_v25 = vadd.f32 %v4523_v24, %v9704_v30  ;;  %v7499_v24 = vld [vmem:[%s9992_s5 + $0x68] sm:$0xff] }
 0x587   : > { %v4551_v21 = vpop.f32.mrf.mxu2  ;;  %v4580_v19 = vpop.f32.mrf.mxu3 }
 0x588   : > { %v4581_v7 = vadd.f32 %v4580_v19, %v4551_v21  ;;  %v9756_v8 = vpop.f32.mrf.mxu0  ;;  %v9758_v15 = vpop.f32.mrf.mxu1 }
 0x58a   : > { %v9761_v10 = vadd.f32 %v4581_v7, %v9711_v40 }
 0x58f   : > { %v9763_v42 = vpop.f32.mrf.mxu2  ;;  %v9765_v20 = vpop.f32.mrf.mxu3 }
 0x590   : > { %v4498_v5 = vpop.f32.mrf.mxu0  ;;  %v4527_v14 = vpop.f32.mrf.mxu1 }
 0x591   : > { %v4528_v38 = vadd.f32 %v4527_v14, %v4498_v5  ;;  %v7498_v14 = vld [vmem:[%s9992_s5 + $0x60] sm:$0xff] }
 0x593   : > { %v9768_v30 = vadd.f32 %v4528_v38, %v9718_v4  ;;  %v7486_v38 = vld [vmem:[%s9992_s5] sm:$0xff] }
 0x597   : > { %v4556_v48 = vpop.f32.mrf.mxu2  ;;  %v4585_v2 = vpop.f32.mrf.mxu3 }
 0x598   : > { %v4586_v58 = vadd.f32 %v4585_v2, %v4556_v48  ;;  %v9770_v63 = vpop.f32.mrf.mxu0  ;;  %v9772_v60 = vpop.f32.mrf.mxu1  ;;  %v7508_v48 = vld [vmem:[%s9992_s5 + $0xb0] sm:$0xff] }
 0x599   : > { %v7516_v2 = vld [vmem:[%s9992_s5 + $0xf0] sm:$0xff]  ;;  %5239 = vmatpush.bf16.msra.mxu2 %v7508_v48 }
 0x59a   : > { %v9775_v40 = vadd.f32 %v4586_v58, %v9721_v6  ;;  %v7492_v6 = vld [vmem:[%s9992_s5 + $0x30] sm:$0xff]  ;;  %5318 = vmatpush.bf16.msra.mxu3 %v7516_v2  ;;  %v7515_v58 = vld [vmem:[%s9992_s5 + $0xe8] sm:$0xff] }
 0x59b   : > { %5161 = vmatpush.bf16.msra.mxu1 %v7492_v6  ;;  %v7504_v48 = vld [vmem:[%s9992_s5 + $0x90] sm:$0xff] }
 0x59e   : > { %5319 = vmatpush.bf16.msra.mxu3 %v7515_v58  ;;  %v4530_v58 = vadd.f32 %v9772_v60, %v9770_v63 }
 0x59f   : > { %v9777_v43 = vpop.f32.mrf.mxu2  ;;  %v9779_v9 = vpop.f32.mrf.mxu3  ;;  %5162 = vmatpush.bf16.msra.mxu1 %v7491_v17  ;;  %v4525_v17 = vadd.f32 %v9758_v15, %v9756_v8 }
 0x5a0   : > { %v4503_v4 = vpop.f32.mrf.mxu0  ;;  %v4532_v31 = vpop.f32.mrf.mxu1 }
 0x5a1   : > { %v4533_v61 = vadd.f32 %v4532_v31, %v4503_v4  ;;  %v7497_v31 = vld [vmem:[%s9992_s5 + $0x58] sm:$0xff] }
 0x5a3   : > { %v9785_v62 = vadd.f32 %v4533_v61, %v9730_v16  ;;  %5163 = vmatpush.bf16.msra.mxu1 %v7490_v18 }
 0x5a7   : > { %v4561_v54 = vpop.f32.mrf.mxu2  ;;  %v4590_v23 = vpop.f32.mrf.mxu3  ;;  %5164 = vmatpush.bf16.msra.mxu1 %v7489_v51 }
 0x5a8   : > { %v4591_v46 = vadd.f32 %v4590_v23, %v4561_v54  ;;  %v9793_v34 = vpop.f32.mrf.mxu0  ;;  %v9795_v32 = vpop.f32.mrf.mxu1  ;;  %v4151_v54 = vadd.f32 %v9708_v41, %v9706_v1  ;;  %v7496_v23 = vld [vmem:[%s9992_s5 + $0x50] sm:$0xff] }
 0x5aa   : > { %v9798_v16 = vadd.f32 %v4591_v46, %v9733_v0  ;;  %v7501_v0 = vld [vmem:[%s9992_s5 + $0x78] sm:$0xff]  ;;  %v4228_v46 = vadd.f32 %v4151_v54, %v9657_v39  ;;  %v7506_v39 = vld [vmem:[%s9992_s5 + $0xa0] sm:$0xff]  ;;  %v7503_v54 = vld [vmem:[%s9992_s5 + $0x88] sm:$0xff] }
 0x5ab   : > { %5099 = vmatpush.bf16.msra.mxu0 %v7501_v0  ;;  %5165 = vmatpush.bf16.msra.mxu1 %v7488_v47  ;;  %v7495_v0 = vld [vmem:[%s9992_s5 + $0x48] sm:$0xff]  ;;  %v7514_v47 = vld [vmem:[%s9992_s5 + $0xe0] sm:$0xff] }
 0x5ac   : > { %v4602_v1 = vadd.f32 %v4525_v17, %v4228_v46  ;;  %5320 = vmatpush.bf16.msra.mxu3 %v7514_v47 }
 0x5af   : > { %v9809_v56 = vpop.f32.mrf.mxu2  ;;  %v9811_v55 = vpop.f32.mrf.mxu3  ;;  %5100 = vmatpush.bf16.msra.mxu0 %v7500_v33  ;;  %v4583_v33 = vadd.f32 %v9765_v20, %v9763_v42 }
 0x5b0   : > { %v4508_v13 = vpop.f32.mrf.mxu0  ;;  %v4537_v35 = vpop.f32.mrf.mxu1 }
 0x5b1   : > { %v4538_v44 = vadd.f32 %v4537_v35, %v4508_v13  ;;  %v4209_v35 = vadd.f32 %v9715_v27, %v9713_v29 }
 0x5b3   : > { %v9820_v26 = vadd.f32 %v4538_v44, %v9742_v52  ;;  %v7487_v52 = vld [vmem:[%s9992_s5 + $0x8] sm:$0xff]  ;;  %5101 = vmatpush.bf16.msra.mxu0 %v7499_v24  ;;  %v7494_v44 = vld [vmem:[%s9992_s5 + $0x40] sm:$0xff]  ;;  %v4229_v29 = vadd.f32 %v4209_v35, %v9662_v3 }
 0x5b4   : > { %5166 = vmatpush.bf16.msra.mxu1 %v7487_v52 }
 0x5b5   : > { %v4603_v24 = vadd.f32 %v4583_v33, %v4229_v29 }
 0x5b7   : > { %v4566_v22 = vpop.f32.mrf.mxu2  ;;  %v4595_v37 = vpop.f32.mrf.mxu3  ;;  %5102 = vmatpush.bf16.msra.mxu0 %v7498_v14 }
 0x5b8   : > { %v4596_v21 = vadd.f32 %v4595_v37, %v4566_v22  ;;  %v9834_v19 = vpop.f32.mrf.mxu0  ;;  %v9836_v7 = vpop.f32.mrf.mxu1  ;;  %5167 = vmatpush.bf16.msra.mxu1 %v7486_v38  ;;  %v7513_v37 = vld [vmem:[%s9992_s5 + $0xd8] sm:$0xff] }
 0x5b9   : > { %5321 = vmatpush.bf16.msra.mxu3 %v7513_v37 }
 0x5ba   : > { %v9839_v5 = vadd.f32 %v4596_v21, %v9745_v11  ;;  %v7507_v11 = vld [vmem:[%s9992_s5 + $0xa8] sm:$0xff] }
 0x5bb   : > { %5103 = vmatpush.bf16.msra.mxu0 %v7497_v31  ;;  %5240 = vmatpush.bf16.msra.mxu2 %v7507_v11  ;;  %v9905_v11 = vld [vmem:[%s9991_s4] ss:$0 sm:$0xff] }
 0x5bf   : > { %v9859_v59 = vpop.f32.mrf.mxu2  ;;  %v9861_v4 = vpop.f32.mrf.mxu3  ;;  %5104 = vmatpush.bf16.msra.mxu0 %v7496_v23  ;;  %5241 = vmatpush.bf16.msra.mxu2 %v7506_v39 }
 0x5c0   : > { %v4867_v61 = vpop.f32.mrf.mxu0  ;;  %v4896_v6 = vpop.f32.mrf.mxu1 }
 0x5c1   : > { %v4897_v18 = vadd.f32 %v4896_v6, %v4867_v61 }
 0x5c3   : > { %5105 = vmatpush.bf16.msra.mxu0 %v7495_v0  ;;  %v4974_v8 = vadd.f32 %v4897_v18, %v9754_v25  ;;  %v7505_v25 = vld [vmem:[%s9992_s5 + $0x98] sm:$0xff]  ;;  %v4606_v18 = vadd.f32 %v4530_v58, %v9724_v45  ;;  %v7502_v0 = vld [vmem:[%s9992_s5 + $0x80] sm:$0xff] }
 0x5c4   : > { %5242 = vmatpush.bf16.msra.mxu2 %v7505_v25 }
 0x5c7   : > { %v4925_v57 = vpop.f32.mrf.mxu2  ;;  %v4954_v53 = vpop.f32.mrf.mxu3  ;;  %5106 = vmatpush.bf16.msra.mxu0 %v7494_v44 }
 0x5c8   : > { %v4869_v51 = vpop.f32.mrf.mxu0  ;;  %v4898_v13 = vpop.f32.mrf.mxu1  ;;  %v4955_v27 = vadd.f32 %v4954_v53, %v4925_v57  ;;  %5243 = vmatpush.bf16.msra.mxu2 %v7504_v48 }
 0x5c9   : > { %v4899_v41 = vadd.f32 %v4898_v13, %v4869_v51  ;;  %v4588_v51 = vadd.f32 %v9779_v9, %v9777_v43 }
 0x5ca   : > { %v4975_v38 = vadd.f32 %v4955_v27, %v9761_v10 }
 0x5cb   : > { %v4976_v15 = vadd.f32 %v4899_v41, %v4602_v1  ;;  %v7512_v1 = vld [vmem:[%s9992_s5 + $0xd0] sm:$0xff] }
 0x5cc   : > { %5244 = vmatpush.bf16.msra.mxu2 %v7503_v54  ;;  %5322 = vmatpush.bf16.msra.mxu3 %v7512_v1 }
 0x5cd   : > { %v4990_v22 = vmax.f32 %v4974_v8, %v4976_v15  ;;  %v4607_v15 = vadd.f32 %v4588_v51, %v9727_v49  ;;  %v4598_v51 = vadd.f32 %v9861_v4, %v9859_v59 }
 0x5cf   : > { %v4927_v42 = vpop.f32.mrf.mxu2  ;;  %v4956_v20 = vpop.f32.mrf.mxu3 }
 0x5d0   : > { %v4957_v52 = vadd.f32 %v4956_v20, %v4927_v42  ;;  %v4872_v21 = vpop.f32.mrf.mxu0  ;;  %v4901_v14 = vpop.f32.mrf.mxu1  ;;  %5245 = vmatpush.bf16.msra.mxu2 %v7502_v0 }
 0x5d1   : > { %v4902_v61 = vadd.f32 %v4901_v14, %v4872_v21 }
 0x5d2   : > { %v4977_v3 = vadd.f32 %v4957_v52, %v4603_v24 }
 0x5d3   : > { %v4978_v63 = vadd.f32 %v4902_v61, %v9768_v30  ;;  %v7511_v30 = vld [vmem:[%s9992_s5 + $0xc8] sm:$0xff] }
 0x5d4   : > { %v4991_v2 = vmax.f32 %v4975_v38, %v4977_v3  ;;  %5323 = vmatpush.bf16.msra.mxu3 %v7511_v30  ;;  %v7510_v38 = vld [vmem:[%s9992_s5 + $0xc0] sm:$0xff] }
 0x5d6   : > { %v4998_v31 = vmax.f32 %v4990_v22, %v4991_v2  ;;  %v4535_v22 = vadd.f32 %v9795_v32, %v9793_v34  ;;  %v4593_v34 = vadd.f32 %v9811_v55, %v9809_v56 }
 0x5d7   : > { %v4930_v6 = vpop.f32.mrf.mxu2  ;;  %v4959_v10 = vpop.f32.mrf.mxu3 }
 0x5d8   : > { %v5006_v23 = vadd.f32 %v9905_v11, %v4998_v31  ;;  %v4874_v17 = vpop.f32.mrf.mxu0  ;;  %v4903_v46 = vpop.f32.mrf.mxu1  ;;  %v4960_v45 = vadd.f32 %v4959_v10, %v4930_v6  ;;  %v4610_v49 = vadd.f32 %v4535_v22, %v9736_v50  ;;  %5324 = vmatpush.bf16.msra.mxu3 %v7510_v38  ;;  %v4611_v50 = vadd.f32 %v4593_v34, %v9739_v12 }
 0x5d9   : > { %v4904_v57 = vadd.f32 %v4903_v46, %v4874_v17 }
 0x5da   : > { %v5010_v53 = vmax.f32 %v5006_v23, 0.0  ;;  %v4979_v44 = vadd.f32 %v4960_v45, %v9775_v40  ;;  %v4540_v23 = vadd.f32 %v9836_v7, %v9834_v19  ;;  %v4615_v45 = vadd.f32 %v4598_v51, %v9751_v36 }
 0x5db   : > { %v4980_v60 = vadd.f32 %v4904_v57, %v4606_v18 }
 0x5dc   : > { %v5014_v13 = vpack.c.bf16 %v5010_v53, %v5010_v53  ;;  %v4614_v12 = vadd.f32 %v4540_v23, %v9748_v28 }
 0x5dd   : > { %v4992_v41 = vmax.f32 %v4978_v63, %v4980_v60 }
 0x5de   : > { %5168 = vmatmul.bf16.vlgmr.msra.gmra.mxu1 %v5014_v13 }
 0x5df   : > { %v4932_v35 = vpop.f32.mrf.mxu2  ;;  %v4961_v8 = vpop.f32.mrf.mxu3 }
 0x5e0   : > { %v4962_v39 = vadd.f32 %v4961_v8, %v4932_v35  ;;  %v4877_v43 = vpop.f32.mrf.mxu0  ;;  %v4906_v9 = vpop.f32.mrf.mxu1 }
 0x5e1   : > { %v4907_v27 = vadd.f32 %v4906_v9, %v4877_v43 }
 0x5e2   : > { %v4981_v33 = vadd.f32 %v4962_v39, %v4607_v15 }
 0x5e3   : > { %v4982_v40 = vadd.f32 %v4907_v27, %v9785_v62 }
 0x5e4   : > { %v4993_v47 = vmax.f32 %v4979_v44, %v4981_v33 }
 0x5e6   : > { %v4999_v29 = vmax.f32 %v4992_v41, %v4993_v47 }
 0x5e7   : > { %v4935_v25 = vpop.f32.mrf.mxu2  ;;  %v4964_v37 = vpop.f32.mrf.mxu3 }
 0x5e8   : > { %v5007_v42 = vadd.f32 %v9905_v11, %v4999_v29  ;;  %v4879_v20 = vpop.f32.mrf.mxu0  ;;  %v4908_v24 = vpop.f32.mrf.mxu1  ;;  %v4965_v48 = vadd.f32 %v4964_v37, %v4935_v25 }
 0x5e9   : > { %v4909_v52 = vadd.f32 %v4908_v24, %v4879_v20 }
 0x5ea   : > { %v5011_v21 = vmax.f32 %v5007_v42, 0.0  ;;  %v4983_v6 = vadd.f32 %v4965_v48, %v9798_v16 }
 0x5eb   : > { %v4984_v14 = vadd.f32 %v4909_v52, %v4610_v49 }
 0x5ec   : > { %v5015_v32 = vpack.c.bf16 %v5011_v21, %v5011_v21 }
 0x5ed   : > { %v4994_v3 = vmax.f32 %v4982_v40, %v4984_v14 }
 0x5ee   : > { %5107 = vmatmul.bf16.vlgmr.msra.gmra.mxu0 %v5015_v32 }
 0x5ef   : > { %v4937_v2 = vpop.f32.mrf.mxu2  ;;  %v4966_v58 = vpop.f32.mrf.mxu3 }
 0x5f0   : > { %v4967_v31 = vadd.f32 %v4966_v58, %v4937_v2  ;;  %v4882_v61 = vpop.f32.mrf.mxu0  ;;  %v4911_v62 = vpop.f32.mrf.mxu1 }
 0x5f1   : > { %v4912_v55 = vadd.f32 %v4911_v62, %v4882_v61 }
 0x5f2   : > { %v4985_v10 = vadd.f32 %v4967_v31, %v4611_v50 }
 0x5f3   : > { %v4986_v0 = vadd.f32 %v4912_v55, %v9820_v26 }
 0x5f4   : > { %v4995_v54 = vmax.f32 %v4983_v6, %v4985_v10 }
 0x5f6   : > { %v5000_v56 = vmax.f32 %v4994_v3, %v4995_v54 }
 0x5f7   : > { %v4940_v17 = vpop.f32.mrf.mxu2  ;;  %v4969_v46 = vpop.f32.mrf.mxu3 }
 0x5f8   : > { %v5008_v18 = vadd.f32 %v9905_v11, %v5000_v56  ;;  %v4884_v57 = vpop.f32.mrf.mxu0  ;;  %v4913_v53 = vpop.f32.mrf.mxu1  ;;  %v4970_v7 = vadd.f32 %v4969_v46, %v4940_v17 }
 0x5f9   : > { %v4914_v63 = vadd.f32 %v4913_v53, %v4884_v57 }
 0x5fa   : > { %v5012_v60 = vmax.f32 %v5008_v18, 0.0  ;;  %v4987_v28 = vadd.f32 %v4970_v7, %v9839_v5 }
 0x5fb   : > { %v4988_v16 = vadd.f32 %v4914_v63, %v4614_v12 }
 0x5fc   : > { %v5016_v13 = vpack.c.bf16 %v5012_v60, %v5012_v60 }
 0x5fd   : > { %v4996_v19 = vmax.f32 %v4986_v0, %v4988_v16 }
 0x5fe   : > { %5246 = vmatmul.bf16.vlgmr.msra.gmra.mxu2 %v5016_v13 }
 0x5ff   : > { %v4942_v1 = vpop.f32.mrf.mxu2  ;;  %v4971_v41 = vpop.f32.mrf.mxu3 }
 0x600   : > { %v4972_v30 = vadd.f32 %v4971_v41, %v4942_v1 }
 0x602   : > { %v4989_v35 = vadd.f32 %v4972_v30, %v4615_v45 }
 0x604   : > { %v4997_v8 = vmax.f32 %v4987_v28, %v4989_v35 }
 0x606   : > { %v5001_v26 = vmax.f32 %v4996_v19, %v4997_v8 }
 0x608   : > { %v5009_v15 = vadd.f32 %v9905_v11, %v5001_v26  ;;  %v7573_v11 = vld [vmem:[%s9993_s6] ss:$0 sm:$0xff] }
 0x60a   : > { %v5013_v39 = vmax.f32 %v5009_v15, 0.0 }
 0x60c   : > { %v5017_v59 = vpack.c.bf16 %v5013_v39, %v5013_v39 }
 0x60e   : > { %5325 = vmatmul.bf16.vlgmr.msra.gmra.mxu3 %v5017_v59 }
 0x65b   : > { %v5169_v4 = vpop.f32.mrf.mxu1 }
 0x663   : > { %v5171_v43 = vpop.f32.mrf.mxu1 }
 0x66b   : > { %v5108_v9 = vpop.f32.mrf.mxu0 }
 0x66c   : > { %v5170_v36 = vadd.f32 %v5169_v4, %v5108_v9 }
 0x673   : > { %v5110_v44 = vpop.f32.mrf.mxu0 }
 0x681   : > { %v5247_v33 = vpop.f32.mrf.mxu2 }
 0x682   : > { %v5251_v5 = vadd.f32 %v5247_v33, %v5170_v36 }
 0x689   : > { %v5249_v47 = vpop.f32.mrf.mxu2 }
 0x691   : > { %v5326_v22 = vpop.f32.mrf.mxu3 }
 0x692   : > { %v5330_v29 = vadd.f32 %v5326_v22, %v5251_v5 }
 0x694   : > { %v5335_v27 = vadd.f32 %v7573_v11, %v5330_v29 }
 0x696   : > { %5336 = vst [vmem:[%s444_s20] sm:$0xff] %v5335_v27 }
 0x697   : > { %7631 = shalt.err (!%p7628_p9)
}
 0x698   : > { %7524 = dma.vmem_to_hbm [thread:$0]  (%p7758_p6), %s5351_s14, 128, %s5353_s21, %s5338_s28  }
 0x699   : > { %v5328_v25 = vpop.f32.mrf.mxu3 }
 0x69a PF: > { %s5364_s16 = sand.u32 1, %s7658_s24   ;;  %p7531_p11 = pnand %p5433_p1, %p7764_p10 }
 0x69b   : > { %s5365_s11 = scalar_lea.sflag [#allocation6], %s5364_s16 }
 0x69c   : > { %p7532_p12 = pneg %p7531_p11 }
 0x69e   : > { %7653 = dma.done.wait (%p7532_p12), %s5365_s11, 128  }
 0x69f   : > { %7655 = vsyncadd (%p7532_p12), %s5365_s11, 4294967168  ;;  %p18_p13 = scmp.ge.s32.totalorder %s7740_s30, 4   ;;  %s10467_s24 = smov %s7662_s25 }
 0x6a0   : > { %s10468_s25 = smov %s7666_s26  ;;  %s10469_s26 = smov %s7752_s10 }
 0x6a1   : > { %s10470_s27 = smov %s7740_s30  ;;  %20 = sbr.rel (!%p18_p13) target bundleno = 4 (0x4), region = 153 }
 0x6a6   :  { %5371 = vsyncpa [#allocation5], 1 }
 0x6a7   :  { %5373 = vsyncpa [#allocation5 + $0x1], 1 }
 0x6a8   :  { %5374 = vsyncpa [#allocation6], 1 }
 0x6a9   :  { %5376 = vsyncpa [#allocation6 + $0x1], 1 }

</bundles_post_ra>
